<compile_context>
chip_gen: v5e
topology: v5e:2x2
jax: 0.10.0
libtpu: 0.0.40
codegen_flags: <defaults>
</compile_context>

<pallas_src>
import functools

import jax
import jax.numpy as jnp
from jax import lax
from jax.experimental import pallas as pl
from jax.experimental.pallas import tpu as pltpu

_EPS = 1e-5
_PARALLEL1 = pltpu.CompilerParams(dimension_semantics=("parallel",))


# ----------------------------------------------------------------------------
# helpers
# ----------------------------------------------------------------------------

def _pick_bm(m):
    """Largest row tile dividing M that still leaves >=2 grid steps (v7x dual-TC)."""
    for bm in (256, 128, 64, 32, 16, 8):
        if m % bm == 0 and m // bm >= 2:
            return bm
    return m


def _ln_rows(x, g, b, eps=_EPS):
    """Row-wise LayerNorm (torch semantics, biased variance). x:(M,D), g/b:(1,D)."""
    mean = jnp.mean(x, axis=-1, keepdims=True)
    xc = x - mean
    var = jnp.mean(xc * xc, axis=-1, keepdims=True)
    return xc * lax.rsqrt(var + eps) * g + b


def _rel_shift_2d(x):
    """Exact Transformer-XL `_rel_shift` on one (q, k) score tile, done fully in-VMEM.

    Semantics: prepend a zero column, flatten row-major, drop the first q elements and
    re-chunk into rows of k.  Built from static slices + concats (q is small for SeqTrack);
    for very large qlen a roll-based variant would be preferable.
    """
    q, k = x.shape
    xp = jnp.concatenate([jnp.zeros((q, 1), x.dtype), x], axis=1)   # (q, k+1)
    rows = []
    for i in range(q):
        r0, c0 = divmod(q + i * k, k + 1)
        n1 = min(k, (k + 1) - c0)
        pieces = [xp[r0:r0 + 1, c0:c0 + n1]]
        if n1 < k:
            pieces.append(xp[r0 + 1:r0 + 2, 0:k - n1])
        rows.append(pieces[0] if len(pieces) == 1 else jnp.concatenate(pieces, axis=1))
    return jnp.concatenate(rows, axis=0)


def _softmax_pv(s, v_h):
    """softmax over keys + P·V; normalization folded into the (L, d_head) output."""
    m = jnp.max(s, axis=-1, keepdims=True)
    p = jnp.exp(s - m)
    denom = jnp.sum(p, axis=-1, keepdims=True)
    pv = jnp.dot(p, v_h, preferred_element_type=jnp.float32)
    # TODO(synk): on real-HW builds use pl.reciprocal(denom, approx=True) (EUP slot);
    # exact divide kept here for numerical parity with the reference.
    return pv * (1.0 / denom)


# ----------------------------------------------------------------------------
# projection kernels (row-tiled, parallel grid)
# ----------------------------------------------------------------------------

def _qkv_split_kernel(x_ref, w_ref, q_ref, k_ref, v_ref):
    y = jnp.dot(x_ref[...], w_ref[...], preferred_element_type=jnp.float32)
    hd = q_ref.shape[-1]
    q_ref[...] = y[:, 0 * hd:1 * hd].astype(q_ref.dtype)
    k_ref[...] = y[:, 1 * hd:2 * hd].astype(k_ref.dtype)
    v_ref[...] = y[:, 2 * hd:3 * hd].astype(v_ref.dtype)


def qkv_proj(x, w):
    m, kdim = x.shape
    n = w.shape[1]
    hd = n // 3
    bm = _pick_bm(m)
    sds = jax.ShapeDtypeStruct((m, hd), x.dtype)
    out_spec = pl.BlockSpec((bm, hd), lambda i: (i, 0))
    return pl.pallas_call(
        _qkv_split_kernel,
        out_shape=(sds, sds, sds),
        grid=(m // bm,),
        in_specs=[pl.BlockSpec((bm, kdim), lambda i: (i, 0)),
                  pl.BlockSpec((kdim, n), lambda i: (0, 0))],
        out_specs=(out_spec, out_spec, out_spec),
        compiler_params=_PARALLEL1,
    )(x, w)


def _matmul_kernel(x_ref, w_ref, o_ref):
    o_ref[...] = jnp.dot(x_ref[...], w_ref[...],
                         preferred_element_type=jnp.float32).astype(o_ref.dtype)


def linear_nobias(x, w):
    m, kdim = x.shape
    n = w.shape[1]
    bm = _pick_bm(m)
    return pl.pallas_call(
        _matmul_kernel,
        out_shape=jax.ShapeDtypeStruct((m, n), x.dtype),
        grid=(m // bm,),
        in_specs=[pl.BlockSpec((bm, kdim), lambda i: (i, 0)),
                  pl.BlockSpec((kdim, n), lambda i: (0, 0))],
        out_specs=pl.BlockSpec((bm, n), lambda i: (i, 0)),
        compiler_params=_PARALLEL1,
    )(x, w)


def _add_linear_scale_kernel(x_ref, a_ref, w_ref, b_ref, o_ref, *, scale):
    y = jnp.dot(x_ref[...] + a_ref[...], w_ref[...],
                preferred_element_type=jnp.float32) + b_ref[...]
    o_ref[...] = (y * scale).astype(o_ref.dtype)


def add_linear(x, addend, w, b, scale=1.0):
    """(x + addend) @ w + b, optionally scaled (query_pos add + q scaling folded in)."""
    m, kdim = x.shape
    n = w.shape[1]
    bm = _pick_bm(m)
    return pl.pallas_call(
        functools.partial(_add_linear_scale_kernel, scale=scale),
        out_shape=jax.ShapeDtypeStruct((m, n), x.dtype),
        grid=(m // bm,),
        in_specs=[pl.BlockSpec((bm, kdim), lambda i: (i, 0)),
                  pl.BlockSpec((bm, kdim), lambda i: (i, 0)),
                  pl.BlockSpec((kdim, n), lambda i: (0, 0)),
                  pl.BlockSpec((1, n), lambda i: (0, 0))],
        out_specs=pl.BlockSpec((bm, n), lambda i: (i, 0)),
        compiler_params=_PARALLEL1,
    )(x, addend, w, b)


def _kv_proj_kernel(m_ref, p_ref, wk_ref, bk_ref, wv_ref, bv_ref, k_ref, v_ref):
    mem = m_ref[...]
    k_ref[...] = (jnp.dot(mem + p_ref[...], wk_ref[...],
                          preferred_element_type=jnp.float32) + bk_ref[...]).astype(k_ref.dtype)
    v_ref[...] = (jnp.dot(mem, wv_ref[...],
                          preferred_element_type=jnp.float32) + bv_ref[...]).astype(v_ref.dtype)


def cross_kv_proj(mem, pos, wk, bk, wv, bv):
    """k = (mem+pos)@wk + bk ; v = mem@wv + bv   — both from one kernel."""
    m, d = mem.shape
    n = wk.shape[1]
    bm = _pick_bm(m)
    sds = jax.ShapeDtypeStruct((m, n), mem.dtype)
    out_spec = pl.BlockSpec((bm, n), lambda i: (i, 0))
    return pl.pallas_call(
        _kv_proj_kernel,
        out_shape=(sds, sds),
        grid=(m // bm,),
        in_specs=[pl.BlockSpec((bm, d), lambda i: (i, 0)),
                  pl.BlockSpec((bm, d), lambda i: (i, 0)),
                  pl.BlockSpec((d, n), lambda i: (0, 0)),
                  pl.BlockSpec((1, n), lambda i: (0, 0)),
                  pl.BlockSpec((d, n), lambda i: (0, 0)),
                  pl.BlockSpec((1, n), lambda i: (0, 0))],
        out_specs=(out_spec, out_spec),
        compiler_params=_PARALLEL1,
    )(mem, pos, wk, bk, wv, bv)


# ----------------------------------------------------------------------------
# fused attention cores (grid over batch, heads unrolled in-kernel)
# ----------------------------------------------------------------------------

def _rel_attn_kernel(q_ref, k_ref, v_ref, rk_ref, rwb_ref, rrb_ref, o_ref,
                     *, n_head, d_head, scale):
    q = q_ref[0]                      # (L, H*dh)
    k = k_ref[0]                      # (S, H*dh)
    v = v_ref[0]                      # (S, H*dh)
    rk = rk_ref[0]                    # (R, H*dh), R == S
    rwb = rwb_ref[...]                # (H, dh)
    rrb = rrb_ref[...]                # (H, dh)
    outs = []
    for h in range(n_head):           # static unroll over heads
        sl = slice(h * d_head, (h + 1) * d_head)
        q_h = q[:, sl]
        q_rw = (q_h + rwb[h:h + 1, :]) * scale      # scale folded into q (AC & BD)
        q_rr = (q_h + rrb[h:h + 1, :]) * scale
        ac = lax.dot_general(q_rw, k[:, sl], (((1,), (1,)), ((), ())),
                             preferred_element_type=jnp.float32)        # (L, S)
        bd = lax.dot_general(q_rr, rk[:, sl], (((1,), (1,)), ((), ())),
                             preferred_element_type=jnp.float32)        # (L, R)
        s = ac + _rel_shift_2d(bd)                  # rel_shift done in VMEM
        # TODO(synk): attn_mask (tgt_mask) masked_fill branch not implemented; demo passes None.
        outs.append(_softmax_pv(s, v[:, sl]))
    o_ref[0] = jnp.concatenate(outs, axis=-1).astype(o_ref.dtype)


def rel_attention(q, k, v, rk, r_w_bias, r_r_bias, *, n_head, d_head, scale):
    bsz, qlen, c = q.shape
    klen = k.shape[1]
    rlen = rk.shape[1]
    assert rlen == klen, "rel-attention requires rlen == klen"
    kern = functools.partial(_rel_attn_kernel, n_head=n_head, d_head=d_head, scale=scale)
    return pl.pallas_call(
        kern,
        out_shape=jax.ShapeDtypeStruct((bsz, qlen, c), q.dtype),
        grid=(bsz,),
        in_specs=[pl.BlockSpec((1, qlen, c), lambda b: (b, 0, 0)),
                  pl.BlockSpec((1, klen, c), lambda b: (b, 0, 0)),
                  pl.BlockSpec((1, klen, c), lambda b: (b, 0, 0)),
                  pl.BlockSpec((1, rlen, c), lambda b: (b, 0, 0)),
                  pl.BlockSpec((n_head, d_head), lambda b: (0, 0)),
                  pl.BlockSpec((n_head, d_head), lambda b: (0, 0))],
        out_specs=pl.BlockSpec((1, qlen, c), lambda b: (b, 0, 0)),
        compiler_params=_PARALLEL1,
    )(q, k, v, rk, r_w_bias, r_r_bias)


def _mha_core_kernel(q_ref, k_ref, v_ref, o_ref, *, n_head, d_head):
    q = q_ref[0]
    k = k_ref[0]
    v = v_ref[0]
    outs = []
    for h in range(n_head):
        sl = slice(h * d_head, (h + 1) * d_head)
        s = lax.dot_general(q[:, sl], k[:, sl], (((1,), (1,)), ((), ())),
                            preferred_element_type=jnp.float32)
        # TODO(synk): memory_mask / key_padding_mask branches not implemented; demo passes None.
        outs.append(_softmax_pv(s, v[:, sl]))
    o_ref[0] = jnp.concatenate(outs, axis=-1).astype(o_ref.dtype)


def mha_attention(q, k, v, *, n_head, d_head):
    bsz, qlen, c = q.shape
    klen = k.shape[1]
    kern = functools.partial(_mha_core_kernel, n_head=n_head, d_head=d_head)
    return pl.pallas_call(
        kern,
        out_shape=jax.ShapeDtypeStruct((bsz, qlen, c), q.dtype),
        grid=(bsz,),
        in_specs=[pl.BlockSpec((1, qlen, c), lambda b: (b, 0, 0)),
                  pl.BlockSpec((1, klen, c), lambda b: (b, 0, 0)),
                  pl.BlockSpec((1, klen, c), lambda b: (b, 0, 0))],
        out_specs=pl.BlockSpec((1, qlen, c), lambda b: (b, 0, 0)),
        compiler_params=_PARALLEL1,
    )(q, k, v)


# ----------------------------------------------------------------------------
# fused epilogues
# ----------------------------------------------------------------------------

def _out_double_ln_kernel(av_ref, ow_ref, res_ref, g1_ref, b1_ref, g2_ref, b2_ref, o_ref):
    res = res_ref[...]
    attn_out = jnp.dot(av_ref[...], ow_ref[...], preferred_element_type=jnp.float32)
    t1 = _ln_rows(res + attn_out, g1_ref[...], b1_ref[...])   # self_attn.layer_norm (post-norm)
    t2 = _ln_rows(res + t1, g2_ref[...], b2_ref[...])         # decoder norm1
    o_ref[...] = t2.astype(o_ref.dtype)


def self_attn_out(av, o_w, res, g_sa, b_sa, g_n1, b_n1):
    m, c = av.shape
    d = o_w.shape[1]
    bm = _pick_bm(m)
    return pl.pallas_call(
        _out_double_ln_kernel,
        out_shape=jax.ShapeDtypeStruct((m, d), res.dtype),
        grid=(m // bm,),
        in_specs=[pl.BlockSpec((bm, c), lambda i: (i, 0)),
                  pl.BlockSpec((c, d), lambda i: (0, 0)),
                  pl.BlockSpec((bm, d), lambda i: (i, 0)),
                  pl.BlockSpec((1, d), lambda i: (0, 0)),
                  pl.BlockSpec((1, d), lambda i: (0, 0)),
                  pl.BlockSpec((1, d), lambda i: (0, 0)),
                  pl.BlockSpec((1, d), lambda i: (0, 0))],
        out_specs=pl.BlockSpec((bm, d), lambda i: (i, 0)),
        compiler_params=_PARALLEL1,
    )(av, o_w, res, g_sa, b_sa, g_n1, b_n1)


def _out_residual_kernel(av_ref, w_ref, b_ref, res_ref, o_ref):
    y = jnp.dot(av_ref[...], w_ref[...], preferred_element_type=jnp.float32) + b_ref[...]
    o_ref[...] = (res_ref[...] + y).astype(o_ref.dtype)


def cross_attn_out(av, w, b, res):
    m, c = av.shape
    d = w.shape[1]
    bm = _pick_bm(m)
    return pl.pallas_call(
        _out_residual_kernel,
        out_shape=jax.ShapeDtypeStruct((m, d), res.dtype),
        grid=(m // bm,),
        in_specs=[pl.BlockSpec((bm, c), lambda i: (i, 0)),
                  pl.BlockSpec((c, d), lambda i: (0, 0)),
                  pl.BlockSpec((1, d), lambda i: (0, 0)),
                  pl.BlockSpec((bm, d), lambda i: (i, 0))],
        out_specs=pl.BlockSpec((bm, d), lambda i: (i, 0)),
        compiler_params=_PARALLEL1,
    )(av, w, b, res)


def _ffn_kernel(x_ref, w1_ref, b1_ref, w2_ref, b2_ref, g_ref, bln_ref, o_ref):
    x = x_ref[...]
    h = jnp.maximum(jnp.dot(x, w1_ref[...], preferred_element_type=jnp.float32) + b1_ref[...], 0.0)
    y = jnp.dot(h, w2_ref[...], preferred_element_type=jnp.float32) + b2_ref[...]
    o_ref[...] = _ln_rows(x + y, g_ref[...], bln_ref[...]).astype(o_ref.dtype)


def ffn_block(x, w1, b1, w2, b2, g, bln):
    m, d = x.shape
    f = w1.shape[1]
    bm = _pick_bm(m)
    return pl.pallas_call(
        _ffn_kernel,
        out_shape=jax.ShapeDtypeStruct((m, d), x.dtype),
        grid=(m // bm,),
        in_specs=[pl.BlockSpec((bm, d), lambda i: (i, 0)),
                  pl.BlockSpec((d, f), lambda i: (0, 0)),
                  pl.BlockSpec((1, f), lambda i: (0, 0)),
                  pl.BlockSpec((f, d), lambda i: (0, 0)),
                  pl.BlockSpec((1, d), lambda i: (0, 0)),
                  pl.BlockSpec((1, d), lambda i: (0, 0)),
                  pl.BlockSpec((1, d), lambda i: (0, 0))],
        out_specs=pl.BlockSpec((bm, d), lambda i: (i, 0)),
        compiler_params=_PARALLEL1,
    )(x, w1, b1, w2, b2, g, bln)


# ----------------------------------------------------------------------------
# Module forward (normalize_before=False, activation='relu', eval-mode dropout)
# ----------------------------------------------------------------------------

def decoder_layer_forward(params, tgt, memory, r_w_bias, r_r_bias, r,
                          pos=None, query_pos=None, *, n_head):
    qlen, bsz, d_model = tgt.shape
    slen = memory.shape[0]
    rlen = r.shape[0]
    h = n_head
    dh = d_model // h
    scale = 1.0 / (dh ** 0.5)

    # batch-major layout for the kernels (tiny one-time transposes; 2D row views are free)
    tgt_b = jnp.transpose(tgt, (1, 0, 2))
    mem_b = jnp.transpose(memory, (1, 0, 2))
    r_b = jnp.transpose(r, (1, 0, 2))
    pos_b = jnp.transpose(pos, (1, 0, 2)) if pos is not None else jnp.zeros_like(mem_b)
    qpos_b = (jnp.transpose(query_pos, (1, 0, 2)) if query_pos is not None
              else jnp.zeros_like(tgt_b))

    tgt2d = tgt_b.reshape(bsz * qlen, d_model)
    mem2d = mem_b.reshape(bsz * slen, d_model)
    r2d = r_b.reshape(bsz * rlen, d_model)
    pos2d = pos_b.reshape(bsz * slen, d_model)
    qpos2d = qpos_b.reshape(bsz * qlen, d_model)

    # ---------------- self-attention (Transformer-XL relative, mems=None) ----------------
    p_sa = params["self_attn"]
    q2d, k2d, v2d = qkv_proj(tgt2d, p_sa["qkv_w"])            # each (B*L, H*dh)
    rk2d = linear_nobias(r2d, p_sa["r_w"])                    # (B*R, H*dh)

    attn_vec = rel_attention(q2d.reshape(bsz, qlen, h * dh),
                             k2d.reshape(bsz, qlen, h * dh),
                             v2d.reshape(bsz, qlen, h * dh),
                             rk2d.reshape(bsz, rlen, h * dh),
                             r_w_bias, r_r_bias,
                             n_head=h, d_head=dh, scale=scale)        # (B, L, H*dh)

    # o_net + (w + attn_out) + self_attn.layer_norm + (tgt + tgt2) + norm1, all fused
    tgt1_2d = self_attn_out(attn_vec.reshape(bsz * qlen, h * dh), p_sa["o_w"], tgt2d,
                            p_sa["ln_g"].reshape(1, d_model), p_sa["ln_b"].reshape(1, d_model),
                            params["norm1_g"].reshape(1, d_model),
                            params["norm1_b"].reshape(1, d_model))

    # ---------------- cross-attention (nn.MultiheadAttention, eval, no masks) ----------------
    p_ca = params["cross_attn"]
    wq, wk, wv = jnp.split(p_ca["in_proj_w"], 3, axis=0)      # torch layout (D, D) each
    bq, bk, bv = jnp.split(p_ca["in_proj_b"], 3)

    q_c = add_linear(tgt1_2d, qpos2d, wq.T, bq.reshape(1, d_model), scale=scale)
    k_c, v_c = cross_kv_proj(mem2d, pos2d, wk.T, bk.reshape(1, d_model),
                             wv.T, bv.reshape(1, d_model))
    ca_vec = mha_attention(q_c.reshape(bsz, qlen, d_model),
                           k_c.reshape(bsz, slen, d_model),
                           v_c.reshape(bsz, slen, d_model),
                           n_head=h, d_head=dh)               # (B, L, D)
    tgt2_2d = cross_attn_out(ca_vec.reshape(bsz * qlen, d_model), p_ca["out_proj_w"].T,
                             p_ca["out_proj_b"].reshape(1, d_model), tgt1_2d)
    # NOTE: norm2 is defined by the reference module but never applied in its forward.

    # ---------------- feed-forward (linear1 + ReLU + linear2 + residual + norm3, fused) ------
    out2d = ffn_block(tgt2_2d,
                      params["linear1_w"].T, params["linear1_b"].reshape(1, -1),
                      params["linear2_w"].T, params["linear2_b"].reshape(1, d_model),
                      params["norm3_g"].reshape(1, d_model), params["norm3_b"].reshape(1, d_model))

    return jnp.transpose(out2d.reshape(bsz, qlen, d_model), (1, 0, 2))   # back to (L, B, D)


# ----------------------------------------------------------------------------
# Deterministic parameter construction (no static ints inside the traced pytree)
# ----------------------------------------------------------------------------

def make_params(key, d_model, nhead, dim_ff):
    dh = d_model // nhead
    ks = jax.random.split(key, 11)
    n = lambda k, s: (jax.random.normal(k, s) * 0.02).astype(jnp.float32)
    ones = lambda s: jnp.ones(s, jnp.float32)
    zeros = lambda s: jnp.zeros(s, jnp.float32)
    return {
        "self_attn": {
            "qkv_w": n(ks[0], (d_model, 3 * nhead * dh)),   # x@W layout (== torch weight.T)
            "r_w":   n(ks[1], (d_model, nhead * dh)),
            "o_w":   n(ks[2], (nhead * dh, d_model)),
            "ln_g":  ones((d_model,)), "ln_b": zeros((d_model,)),
        },
        "cross_attn": {
            "in_proj_w":  n(ks[3], (3 * d_model, d_model)),  # torch layout
            "in_proj_b":  n(ks[4], (3 * d_model,)),
            "out_proj_w": n(ks[5], (d_model, d_model)),      # torch layout
            "out_proj_b": n(ks[6], (d_model,)),
        },
        "linear1_w": n(ks[7], (dim_ff, d_model)),  "linear1_b": n(ks[8], (dim_ff,)),
        "linear2_w": n(ks[9], (d_model, dim_ff)),  "linear2_b": n(ks[10], (d_model,)),
        "norm1_g": ones((d_model,)), "norm1_b": zeros((d_model,)),
        "norm2_g": ones((d_model,)), "norm2_b": zeros((d_model,)),   # unused (faithful)
        "norm3_g": ones((d_model,)), "norm3_b": zeros((d_model,)),
    }


if __name__ == "__main__":
    d_model, nhead, dim_ff = 32, 4, 64
    dh = d_model // nhead
    qlen, bsz, mlen = 8, 2, 12          # rlen must equal klen (= qlen, no mems)

    key = jax.random.PRNGKey(0)
    kp, k1, k2, k3, k4, k5, k6, k7 = jax.random.split(key, 8)
    params = make_params(kp, d_model, nhead, dim_ff)

    tgt       = jax.random.normal(k1, (qlen, bsz, d_model), jnp.float32)
    memory    = jax.random.normal(k2, (mlen, bsz, d_model), jnp.float32)
    r         = jax.random.normal(k3, (qlen, bsz, d_model), jnp.float32)
    pos       = jax.random.normal(k4, (mlen, bsz, d_model), jnp.float32)
    query_pos = jax.random.normal(k5, (qlen, bsz, d_model), jnp.float32)
    r_w_bias  = (jax.random.normal(k6, (nhead, dh)) * 0.02).astype(jnp.float32)
    r_r_bias  = (jax.random.normal(k7, (nhead, dh)) * 0.02).astype(jnp.float32)

    # n_head is bound statically via functools.partial (fixes the previous tracer-shape error).
    fwd = jax.jit(functools.partial(decoder_layer_forward, n_head=nhead))
    out = fwd(params, tgt, memory, r_w_bias, r_r_bias, r, pos=pos, query_pos=query_pos)
    out = jax.block_until_ready(out)

    assert out.shape == (qlen, bsz, d_model)
    assert bool(jnp.all(jnp.isfinite(out)))
    print("KERNEL_OK")
</pallas_src>

<mosaic_0001>
module attributes {stable_mosaic.version = 11 : i64} {
  func.func @_matmul_kernel(%arg0: i32, %arg1: memref<8x32xf32, #tpu.memory_space<vmem>>, %arg2: memref<32x32xf32, #tpu.memory_space<vmem>>, %arg3: memref<8x32xf32, #tpu.memory_space<vmem>>) attributes {dimension_semantics = [#tpu.dimension_semantics<parallel>], iteration_bounds = array<i64: 2>, scalar_prefetch = 0 : i64, scratch_operands = 0 : i64, tpu.core_type = #tpu.core_type<tc>, window_params = [{transform_indices = @transform_0, window_bounds = array<i64: 8, 32>}, {pipeline_mode = #tpu.pipeline_mode<synchronous>, transform_indices = @transform_1, window_bounds = array<i64: 32, 32>}, {transform_indices = @transform_2, window_bounds = array<i64: 8, 32>}]} {
    %c0 = arith.constant 0 : index
    %c0_0 = arith.constant 0 : index
    %0 = vector.load %arg1[%c0, %c0_0] : memref<8x32xf32, #tpu.memory_space<vmem>>, vector<8x32xf32>
    %c0_1 = arith.constant 0 : index
    %c0_2 = arith.constant 0 : index
    %1 = vector.load %arg2[%c0_1, %c0_2] : memref<32x32xf32, #tpu.memory_space<vmem>>, vector<32x32xf32>
    %cst = arith.constant dense<0.000000e+00> : vector<8x32xf32>
    %2 = tpu.matmul %0, %1, %cst {dimension_numbers = #tpu.dot_dimension_numbers<[1], [0], [0], [1], [0, 0, 1, 1], [], []>} : vector<8x32xf32>, vector<32x32xf32>, vector<8x32xf32> -> vector<8x32xf32>
    %c0_3 = arith.constant 0 : index
    %c0_4 = arith.constant 0 : index
    %3 = vector.load %arg3[%c0_3, %c0_4] : memref<8x32xf32, #tpu.memory_space<vmem>>, vector<8x32xf32>
    tpu.vector_store %arg3[%c0_3, %c0_4], %2 {strides = array<i32>} : memref<8x32xf32, #tpu.memory_space<vmem>>, vector<8x32xf32>,
    return
  }
  func.func @transform_0(%arg0: i32) -> (i32, i32) {
    %c0_i32 = arith.constant 0 : i32
    %c0_i32_0 = arith.constant 0 : i32
    return %arg0, %c0_i32 : i32, i32
  }
  func.func @transform_1(%arg0: i32) -> (i32, i32) {
    %c0_i32 = arith.constant 0 : i32
    %c0_i32_0 = arith.constant 0 : i32
    %c0_i32_1 = arith.constant 0 : i32
    return %c0_i32, %c0_i32_0 : i32, i32
  }
  func.func @transform_2(%arg0: i32) -> (i32, i32) {
    %c0_i32 = arith.constant 0 : i32
    %c0_i32_0 = arith.constant 0 : i32
    return %arg0, %c0_i32 : i32, i32
  }
}

module attributes {stable_mosaic.version = 11 : i64} {
  func.func @_qkv_split_kernel(%arg0: i32, %arg1: memref<8x32xf32, #tpu.memory_space<vmem>>, %arg2: memref<32x96xf32, #tpu.memory_space<vmem>>, %arg3: memref<8x32xf32, #tpu.memory_space<vmem>>, %arg4: memref<8x32xf32, #tpu.memory_space<vmem>>, %arg5: memref<8x32xf32, #tpu.memory_space<vmem>>) attributes {dimension_semantics = [#tpu.dimension_semantics<parallel>], iteration_bounds = array<i64: 2>, scalar_prefetch = 0 : i64, scratch_operands = 0 : i64, tpu.core_type = #tpu.core_type<tc>, window_params = [{transform_indices = @transform_0, window_bounds = array<i64: 8, 32>}, {pipeline_mode = #tpu.pipeline_mode<synchronous>, transform_indices = @transform_1, window_bounds = array<i64: 32, 96>}, {transform_indices = @transform_2, window_bounds = array<i64: 8, 32>}, {transform_indices = @transform_3, window_bounds = array<i64: 8, 32>}, {transform_indices = @transform_4, window_bounds = array<i64: 8, 32>}]} {
    %c0 = arith.constant 0 : index
    %c0_0 = arith.constant 0 : index
    %0 = vector.load %arg1[%c0, %c0_0] : memref<8x32xf32, #tpu.memory_space<vmem>>, vector<8x32xf32>
    %c0_1 = arith.constant 0 : index
    %c0_2 = arith.constant 0 : index
    %1 = vector.load %arg2[%c0_1, %c0_2] : memref<32x96xf32, #tpu.memory_space<vmem>>, vector<32x96xf32>
    %cst = arith.constant dense<0.000000e+00> : vector<8x96xf32>
    %2 = tpu.matmul %0, %1, %cst {dimension_numbers = #tpu.dot_dimension_numbers<[1], [0], [0], [1], [0, 0, 1, 1], [], []>} : vector<8x32xf32>, vector<32x96xf32>, vector<8x96xf32> -> vector<8x96xf32>
    %3 = vector.extract_strided_slice %2 {offsets = [0, 0], sizes = [8, 32], strides = [1, 1]} : vector<8x96xf32> to vector<8x32xf32>
    %c0_3 = arith.constant 0 : index
    %c0_4 = arith.constant 0 : index
    %4 = vector.load %arg3[%c0_3, %c0_4] : memref<8x32xf32, #tpu.memory_space<vmem>>, vector<8x32xf32>
    tpu.vector_store %arg3[%c0_3, %c0_4], %3 {strides = array<i32>} : memref<8x32xf32, #tpu.memory_space<vmem>>, vector<8x32xf32>,
    %5 = vector.extract_strided_slice %2 {offsets = [0, 32], sizes = [8, 32], strides = [1, 1]} : vector<8x96xf32> to vector<8x32xf32>
    %c0_5 = arith.constant 0 : index
    %c0_6 = arith.constant 0 : index
    %6 = vector.load %arg4[%c0_5, %c0_6] : memref<8x32xf32, #tpu.memory_space<vmem>>, vector<8x32xf32>
    tpu.vector_store %arg4[%c0_5, %c0_6], %5 {strides = array<i32>} : memref<8x32xf32, #tpu.memory_space<vmem>>, vector<8x32xf32>,
    %7 = vector.extract_strided_slice %2 {offsets = [0, 64], sizes = [8, 32], strides = [1, 1]} : vector<8x96xf32> to vector<8x32xf32>
    %c0_7 = arith.constant 0 : index
    %c0_8 = arith.constant 0 : index
    %8 = vector.load %arg5[%c0_7, %c0_8] : memref<8x32xf32, #tpu.memory_space<vmem>>, vector<8x32xf32>
    tpu.vector_store %arg5[%c0_7, %c0_8], %7 {strides = array<i32>} : memref<8x32xf32, #tpu.memory_space<vmem>>, vector<8x32xf32>,
    return
  }
  func.func @transform_0(%arg0: i32) -> (i32, i32) {
    %c0_i32 = arith.constant 0 : i32
    %c0_i32_0 = arith.constant 0 : i32
    return %arg0, %c0_i32 : i32, i32
  }
  func.func @transform_1(%arg0: i32) -> (i32, i32) {
    %c0_i32 = arith.constant 0 : i32
    %c0_i32_0 = arith.constant 0 : i32
    %c0_i32_1 = arith.constant 0 : i32
    return %c0_i32, %c0_i32_0 : i32, i32
  }
  func.func @transform_2(%arg0: i32) -> (i32, i32) {
    %c0_i32 = arith.constant 0 : i32
    %c0_i32_0 = arith.constant 0 : i32
    return %arg0, %c0_i32 : i32, i32
  }
  func.func @transform_3(%arg0: i32) -> (i32, i32) {
    %c0_i32 = arith.constant 0 : i32
    %c0_i32_0 = arith.constant 0 : i32
    return %arg0, %c0_i32 : i32, i32
  }
  func.func @transform_4(%arg0: i32) -> (i32, i32) {
    %c0_i32 = arith.constant 0 : i32
    %c0_i32_0 = arith.constant 0 : i32
    return %arg0, %c0_i32 : i32, i32
  }
}

module attributes {stable_mosaic.version = 11 : i64} {
  func.func @_rel_attn_kernel(%arg0: i32, %arg1: memref<1x8x32xf32, #tpu.memory_space<vmem>>, %arg2: memref<1x8x32xf32, #tpu.memory_space<vmem>>, %arg3: memref<1x8x32xf32, #tpu.memory_space<vmem>>, %arg4: memref<1x8x32xf32, #tpu.memory_space<vmem>>, %arg5: memref<4x8xf32, #tpu.memory_space<vmem>>, %arg6: memref<4x8xf32, #tpu.memory_space<vmem>>, %arg7: memref<1x8x32xf32, #tpu.memory_space<vmem>>) attributes {dimension_semantics = [#tpu.dimension_semantics<parallel>], iteration_bounds = array<i64: 2>, scalar_prefetch = 0 : i64, scratch_operands = 0 : i64, tpu.core_type = #tpu.core_type<tc>, window_params = [{transform_indices = @transform_0, window_bounds = array<i64: 1, 8, 32>}, {transform_indices = @transform_1, window_bounds = array<i64: 1, 8, 32>}, {transform_indices = @transform_2, window_bounds = array<i64: 1, 8, 32>}, {transform_indices = @transform_3, window_bounds = array<i64: 1, 8, 32>}, {pipeline_mode = #tpu.pipeline_mode<synchronous>, transform_indices = @transform_4, window_bounds = array<i64: 4, 8>}, {pipeline_mode = #tpu.pipeline_mode<synchronous>, transform_indices = @transform_5, window_bounds = array<i64: 4, 8>}, {transform_indices = @transform_6, window_bounds = array<i64: 1, 8, 32>}]} {
    %c0 = arith.constant 0 : index
    %c0_0 = arith.constant 0 : index
    %c0_1 = arith.constant 0 : index
    %0 = vector.load %arg1[%c0, %c0_0, %c0_1] : memref<1x8x32xf32, #tpu.memory_space<vmem>>, vector<1x8x32xf32>
    %1 = vector.shape_cast %0 : vector<1x8x32xf32> to vector<8x32xf32>
    %c0_2 = arith.constant 0 : index
    %c0_3 = arith.constant 0 : index
    %c0_4 = arith.constant 0 : index
    %2 = vector.load %arg2[%c0_2, %c0_3, %c0_4] : memref<1x8x32xf32, #tpu.memory_space<vmem>>, vector<1x8x32xf32>
    %3 = vector.shape_cast %2 : vector<1x8x32xf32> to vector<8x32xf32>
    %c0_5 = arith.constant 0 : index
    %c0_6 = arith.constant 0 : index
    %c0_7 = arith.constant 0 : index
    %4 = vector.load %arg3[%c0_5, %c0_6, %c0_7] : memref<1x8x32xf32, #tpu.memory_space<vmem>>, vector<1x8x32xf32>
    %5 = vector.shape_cast %4 : vector<1x8x32xf32> to vector<8x32xf32>
    %c0_8 = arith.constant 0 : index
    %c0_9 = arith.constant 0 : index
    %c0_10 = arith.constant 0 : index
    %6 = vector.load %arg4[%c0_8, %c0_9, %c0_10] : memref<1x8x32xf32, #tpu.memory_space<vmem>>, vector<1x8x32xf32>
    %7 = vector.shape_cast %6 : vector<1x8x32xf32> to vector<8x32xf32>
    %c0_11 = arith.constant 0 : index
    %c0_12 = arith.constant 0 : index
    %8 = vector.load %arg5[%c0_11, %c0_12] : memref<4x8xf32, #tpu.memory_space<vmem>>, vector<4x8xf32>
    %c0_13 = arith.constant 0 : index
    %c0_14 = arith.constant 0 : index
    %9 = vector.load %arg6[%c0_13, %c0_14] : memref<4x8xf32, #tpu.memory_space<vmem>>, vector<4x8xf32>
    %10 = vector.extract_strided_slice %1 {offsets = [0, 0], sizes = [8, 8], strides = [1, 1]} : vector<8x32xf32> to vector<8x8xf32>
    %11 = vector.extract_strided_slice %8 {offsets = [0, 0], sizes = [1, 8], strides = [1, 1]} : vector<4x8xf32> to vector<1x8xf32>
    %12 = vector.broadcast %11 : vector<1x8xf32> to vector<8x8xf32>
    %13 = arith.addf %10, %12 : vector<8x8xf32>
    %cst = arith.constant 0.353553385 : f32
    %14 = vector.broadcast %cst : f32 to vector<8x8xf32>
    %15 = arith.mulf %13, %14 : vector<8x8xf32>
    %16 = vector.extract_strided_slice %9 {offsets = [0, 0], sizes = [1, 8], strides = [1, 1]} : vector<4x8xf32> to vector<1x8xf32>
    %17 = vector.broadcast %16 : vector<1x8xf32> to vector<8x8xf32>
    %18 = arith.addf %10, %17 : vector<8x8xf32>
    %cst_15 = arith.constant 0.353553385 : f32
    %19 = vector.broadcast %cst_15 : f32 to vector<8x8xf32>
    %20 = arith.mulf %18, %19 : vector<8x8xf32>
    %21 = vector.extract_strided_slice %3 {offsets = [0, 0], sizes = [8, 8], strides = [1, 1]} : vector<8x32xf32> to vector<8x8xf32>
    %cst_16 = arith.constant dense<0.000000e+00> : vector<8x8xf32>
    %22 = tpu.matmul %15, %21, %cst_16 {dimension_numbers = #tpu.dot_dimension_numbers<[1], [1], [0], [0], [0, 0, 1, 0], [], []>} : vector<8x8xf32>, vector<8x8xf32>, vector<8x8xf32> -> vector<8x8xf32>
    %23 = vector.extract_strided_slice %7 {offsets = [0, 0], sizes = [8, 8], strides = [1, 1]} : vector<8x32xf32> to vector<8x8xf32>
    %cst_17 = arith.constant dense<0.000000e+00> : vector<8x8xf32>
    %24 = tpu.matmul %20, %23, %cst_17 {dimension_numbers = #tpu.dot_dimension_numbers<[1], [1], [0], [0], [0, 0, 1, 0], [], []>} : vector<8x8xf32>, vector<8x8xf32>, vector<8x8xf32> -> vector<8x8xf32>
    %cst_18 = arith.constant 0.000000e+00 : f32
    %25 = vector.broadcast %cst_18 : f32 to vector<8x1xf32>
    %26 = tpu.concatenate %25, %24 in 1 : vector<8x1xf32>, vector<8x8xf32> -> vector<8x9xf32>
    %27 = vector.extract_strided_slice %26 {offsets = [0, 8], sizes = [1, 1], strides = [1, 1]} : vector<8x9xf32> to vector<1x1xf32>
    %28 = vector.extract_strided_slice %26 {offsets = [1, 0], sizes = [1, 7], strides = [1, 1]} : vector<8x9xf32> to vector<1x7xf32>
    %29 = tpu.concatenate %27, %28 in 1 : vector<1x1xf32>, vector<1x7xf32> -> vector<1x8xf32>
    %30 = vector.extract_strided_slice %26 {offsets = [1, 7], sizes = [1, 2], strides = [1, 1]} : vector<8x9xf32> to vector<1x2xf32>
    %31 = vector.extract_strided_slice %26 {offsets = [2, 0], sizes = [1, 6], strides = [1, 1]} : vector<8x9xf32> to vector<1x6xf32>
    %32 = tpu.concatenate %30, %31 in 1 : vector<1x2xf32>, vector<1x6xf32> -> vector<1x8xf32>
    %33 = vector.extract_strided_slice %26 {offsets = [2, 6], sizes = [1, 3], strides = [1, 1]} : vector<8x9xf32> to vector<1x3xf32>
    %34 = vector.extract_strided_slice %26 {offsets = [3, 0], sizes = [1, 5], strides = [1, 1]} : vector<8x9xf32> to vector<1x5xf32>
    %35 = tpu.concatenate %33, %34 in 1 : vector<1x3xf32>, vector<1x5xf32> -> vector<1x8xf32>
    %36 = vector.extract_strided_slice %26 {offsets = [3, 5], sizes = [1, 4], strides = [1, 1]} : vector<8x9xf32> to vector<1x4xf32>
    %37 = vector.extract_strided_slice %26 {offsets = [4, 0], sizes = [1, 4], strides = [1, 1]} : vector<8x9xf32> to vector<1x4xf32>
    %38 = tpu.concatenate %36, %37 in 1 : vector<1x4xf32>, vector<1x4xf32> -> vector<1x8xf32>
    %39 = vector.extract_strided_slice %26 {offsets = [4, 4], sizes = [1, 5], strides = [1, 1]} : vector<8x9xf32> to vector<1x5xf32>
    %40 = vector.extract_strided_slice %26 {offsets = [5, 0], sizes = [1, 3], strides = [1, 1]} : vector<8x9xf32> to vector<1x3xf32>
    %41 = tpu.concatenate %39, %40 in 1 : vector<1x5xf32>, vector<1x3xf32> -> vector<1x8xf32>
    %42 = vector.extract_strided_slice %26 {offsets = [5, 3], sizes = [1, 6], strides = [1, 1]} : vector<8x9xf32> to vector<1x6xf32>
    %43 = vector.extract_strided_slice %26 {offsets = [6, 0], sizes = [1, 2], strides = [1, 1]} : vector<8x9xf32> to vector<1x2xf32>
    %44 = tpu.concatenate %42, %43 in 1 : vector<1x6xf32>, vector<1x2xf32> -> vector<1x8xf32>
    %45 = vector.extract_strided_slice %26 {offsets = [6, 2], sizes = [1, 7], strides = [1, 1]} : vector<8x9xf32> to vector<1x7xf32>
    %46 = vector.extract_strided_slice %26 {offsets = [7, 0], sizes = [1, 1], strides = [1, 1]} : vector<8x9xf32> to vector<1x1xf32>
    %47 = tpu.concatenate %45, %46 in 1 : vector<1x7xf32>, vector<1x1xf32> -> vector<1x8xf32>
    %48 = vector.extract_strided_slice %26 {offsets = [7, 1], sizes = [1, 8], strides = [1, 1]} : vector<8x9xf32> to vector<1x8xf32>
    %49 = tpu.concatenate %29, %32, %35, %38, %41, %44, %47, %48 in 0 : vector<1x8xf32>, vector<1x8xf32>, vector<1x8xf32>, vector<1x8xf32>, vector<1x8xf32>, vector<1x8xf32>, vector<1x8xf32>, vector<1x8xf32> -> vector<8x8xf32>
    %50 = arith.addf %22, %49 : vector<8x8xf32>
    %51 = vector.extract_strided_slice %5 {offsets = [0, 0], sizes = [8, 8], strides = [1, 1]} : vector<8x32xf32> to vector<8x8xf32>
    %cst_19 = arith.constant dense<0xFF800000> : vector<8xf32>
    %52 = vector.multi_reduction <maximumf>, %50, %cst_19 [1] : vector<8x8xf32> to vector<8xf32>
    %53 = vector.shape_cast %52 : vector<8xf32> to vector<8x1xf32>
    %54 = vector.broadcast %53 : vector<8x1xf32> to vector<8x8xf32>
    %55 = arith.subf %50, %54 : vector<8x8xf32>
    %56 = math.exp %55 : vector<8x8xf32>
    %cst_20 = arith.constant dense<0.000000e+00> : vector<8xf32>
    %57 = vector.multi_reduction <add>, %56, %cst_20 [1] : vector<8x8xf32> to vector<8xf32>
    %58 = vector.shape_cast %57 : vector<8xf32> to vector<8x1xf32>
    %cst_21 = arith.constant dense<0.000000e+00> : vector<8x8xf32>
    %59 = tpu.matmul %56, %51, %cst_21 {dimension_numbers = #tpu.dot_dimension_numbers<[1], [0], [0], [1], [0, 0, 1, 1], [], []>} : vector<8x8xf32>, vector<8x8xf32>, vector<8x8xf32> -> vector<8x8xf32>
    %cst_22 = arith.constant 1.000000e+00 : f32
    %60 = vector.broadcast %cst_22 : f32 to vector<8x1xf32>
    %61 = arith.divf %60, %58 : vector<8x1xf32>
    %62 = vector.broadcast %61 : vector<8x1xf32> to vector<8x8xf32>
    %63 = arith.mulf %59, %62 : vector<8x8xf32>
    %64 = vector.extract_strided_slice %1 {offsets = [0, 8], sizes = [8, 8], strides = [1, 1]} : vector<8x32xf32> to vector<8x8xf32>
    %65 = vector.extract_strided_slice %8 {offsets = [1, 0], sizes = [1, 8], strides = [1, 1]} : vector<4x8xf32> to vector<1x8xf32>
    %66 = vector.broadcast %65 : vector<1x8xf32> to vector<8x8xf32>
    %67 = arith.addf %64, %66 : vector<8x8xf32>
    %cst_23 = arith.constant 0.353553385 : f32
    %68 = vector.broadcast %cst_23 : f32 to vector<8x8xf32>
    %69 = arith.mulf %67, %68 : vector<8x8xf32>
    %70 = vector.extract_strided_slice %9 {offsets = [1, 0], sizes = [1, 8], strides = [1, 1]} : vector<4x8xf32> to vector<1x8xf32>
    %71 = vector.broadcast %70 : vector<1x8xf32> to vector<8x8xf32>
    %72 = arith.addf %64, %71 : vector<8x8xf32>
    %cst_24 = arith.constant 0.353553385 : f32
    %73 = vector.broadcast %cst_24 : f32 to vector<8x8xf32>
    %74 = arith.mulf %72, %73 : vector<8x8xf32>
    %75 = vector.extract_strided_slice %3 {offsets = [0, 8], sizes = [8, 8], strides = [1, 1]} : vector<8x32xf32> to vector<8x8xf32>
    %cst_25 = arith.constant dense<0.000000e+00> : vector<8x8xf32>
    %76 = tpu.matmul %69, %75, %cst_25 {dimension_numbers = #tpu.dot_dimension_numbers<[1], [1], [0], [0], [0, 0, 1, 0], [], []>} : vector<8x8xf32>, vector<8x8xf32>, vector<8x8xf32> -> vector<8x8xf32>
    %77 = vector.extract_strided_slice %7 {offsets = [0, 8], sizes = [8, 8], strides = [1, 1]} : vector<8x32xf32> to vector<8x8xf32>
    %cst_26 = arith.constant dense<0.000000e+00> : vector<8x8xf32>
    %78 = tpu.matmul %74, %77, %cst_26 {dimension_numbers = #tpu.dot_dimension_numbers<[1], [1], [0], [0], [0, 0, 1, 0], [], []>} : vector<8x8xf32>, vector<8x8xf32>, vector<8x8xf32> -> vector<8x8xf32>
    %cst_27 = arith.constant 0.000000e+00 : f32
    %79 = vector.broadcast %cst_27 : f32 to vector<8x1xf32>
    %80 = tpu.concatenate %79, %78 in 1 : vector<8x1xf32>, vector<8x8xf32> -> vector<8x9xf32>
    %81 = vector.extract_strided_slice %80 {offsets = [0, 8], sizes = [1, 1], strides = [1, 1]} : vector<8x9xf32> to vector<1x1xf32>
    %82 = vector.extract_strided_slice %80 {offsets = [1, 0], sizes = [1, 7], strides = [1, 1]} : vector<8x9xf32> to vector<1x7xf32>
    %83 = tpu.concatenate %81, %82 in 1 : vector<1x1xf32>, vector<1x7xf32> -> vector<1x8xf32>
    %84 = vector.extract_strided_slice %80 {offsets = [1, 7], sizes = [1, 2], strides = [1, 1]} : vector<8x9xf32> to vector<1x2xf32>
    %85 = vector.extract_strided_slice %80 {offsets = [2, 0], sizes = [1, 6], strides = [1, 1]} : vector<8x9xf32> to vector<1x6xf32>
    %86 = tpu.concatenate %84, %85 in 1 : vector<1x2xf32>, vector<1x6xf32> -> vector<1x8xf32>
    %87 = vector.extract_strided_slice %80 {offsets = [2, 6], sizes = [1, 3], strides = [1, 1]} : vector<8x9xf32> to vector<1x3xf32>
    %88 = vector.extract_strided_slice %80 {offsets = [3, 0], sizes = [1, 5], strides = [1, 1]} : vector<8x9xf32> to vector<1x5xf32>
    %89 = tpu.concatenate %87, %88 in 1 : vector<1x3xf32>, vector<1x5xf32> -> vector<1x8xf32>
    %90 = vector.extract_strided_slice %80 {offsets = [3, 5], sizes = [1, 4], strides = [1, 1]} : vector<8x9xf32> to vector<1x4xf32>
    %91 = vector.extract_strided_slice %80 {offsets = [4, 0], sizes = [1, 4], strides = [1, 1]} : vector<8x9xf32> to vector<1x4xf32>
    %92 = tpu.concatenate %90, %91 in 1 : vector<1x4xf32>, vector<1x4xf32> -> vector<1x8xf32>
    %93 = vector.extract_strided_slice %80 {offsets = [4, 4], sizes = [1, 5], strides = [1, 1]} : vector<8x9xf32> to vector<1x5xf32>
    %94 = vector.extract_strided_slice %80 {offsets = [5, 0], sizes = [1, 3], strides = [1, 1]} : vector<8x9xf32> to vector<1x3xf32>
    %95 = tpu.concatenate %93, %94 in 1 : vector<1x5xf32>, vector<1x3xf32> -> vector<1x8xf32>
    %96 = vector.extract_strided_slice %80 {offsets = [5, 3], sizes = [1, 6], strides = [1, 1]} : vector<8x9xf32> to vector<1x6xf32>
    %97 = vector.extract_strided_slice %80 {offsets = [6, 0], sizes = [1, 2], strides = [1, 1]} : vector<8x9xf32> to vector<1x2xf32>
    %98 = tpu.concatenate %96, %97 in 1 : vector<1x6xf32>, vector<1x2xf32> -> vector<1x8xf32>
    %99 = vector.extract_strided_slice %80 {offsets = [6, 2], sizes = [1, 7], strides = [1, 1]} : vector<8x9xf32> to vector<1x7xf32>
    %100 = vector.extract_strided_slice %80 {offsets = [7, 0], sizes = [1, 1], strides = [1, 1]} : vector<8x9xf32> to vector<1x1xf32>
    %101 = tpu.concatenate %99, %100 in 1 : vector<1x7xf32>, vector<1x1xf32> -> vector<1x8xf32>
    %102 = vector.extract_strided_slice %80 {offsets = [7, 1], sizes = [1, 8], strides = [1, 1]} : vector<8x9xf32> to vector<1x8xf32>
    %103 = tpu.concatenate %83, %86, %89, %92, %95, %98, %101, %102 in 0 : vector<1x8xf32>, vector<1x8xf32>, vector<1x8xf32>, vector<1x8xf32>, vector<1x8xf32>, vector<1x8xf32>, vector<1x8xf32>, vector<1x8xf32> -> vector<8x8xf32>
    %104 = arith.addf %76, %103 : vector<8x8xf32>
    %105 = vector.extract_strided_slice %5 {offsets = [0, 8], sizes = [8, 8], strides = [1, 1]} : vector<8x32xf32> to vector<8x8xf32>
    %cst_28 = arith.constant dense<0xFF800000> : vector<8xf32>
    %106 = vector.multi_reduction <maximumf>, %104, %cst_28 [1] : vector<8x8xf32> to vector<8xf32>
    %107 = vector.shape_cast %106 : vector<8xf32> to vector<8x1xf32>
    %108 = vector.broadcast %107 : vector<8x1xf32> to vector<8x8xf32>
    %109 = arith.subf %104, %108 : vector<8x8xf32>
    %110 = math.exp %109 : vector<8x8xf32>
    %cst_29 = arith.constant dense<0.000000e+00> : vector<8xf32>
    %111 = vector.multi_reduction <add>, %110, %cst_29 [1] : vector<8x8xf32> to vector<8xf32>
    %112 = vector.shape_cast %111 : vector<8xf32> to vector<8x1xf32>
    %cst_30 = arith.constant dense<0.000000e+00> : vector<8x8xf32>
    %113 = tpu.matmul %110, %105, %cst_30 {dimension_numbers = #tpu.dot_dimension_numbers<[1], [0], [0], [1], [0, 0, 1, 1], [], []>} : vector<8x8xf32>, vector<8x8xf32>, vector<8x8xf32> -> vector<8x8xf32>
    %cst_31 = arith.constant 1.000000e+00 : f32
    %114 = vector.broadcast %cst_31 : f32 to vector<8x1xf32>
    %115 = arith.divf %114, %112 : vector<8x1xf32>
    %116 = vector.broadcast %115 : vector<8x1xf32> to vector<8x8xf32>
    %117 = arith.mulf %113, %116 : vector<8x8xf32>
    %118 = vector.extract_strided_slice %1 {offsets = [0, 16], sizes = [8, 8], strides = [1, 1]} : vector<8x32xf32> to vector<8x8xf32>
    %119 = vector.extract_strided_slice %8 {offsets = [2, 0], sizes = [1, 8], strides = [1, 1]} : vector<4x8xf32> to vector<1x8xf32>
    %120 = vector.broadcast %119 : vector<1x8xf32> to vector<8x8xf32>
    %121 = arith.addf %118, %120 : vector<8x8xf32>
    %cst_32 = arith.constant 0.353553385 : f32
    %122 = vector.broadcast %cst_32 : f32 to vector<8x8xf32>
    %123 = arith.mulf %121, %122 : vector<8x8xf32>
    %124 = vector.extract_strided_slice %9 {offsets = [2, 0], sizes = [1, 8], strides = [1, 1]} : vector<4x8xf32> to vector<1x8xf32>
    %125 = vector.broadcast %124 : vector<1x8xf32> to vector<8x8xf32>
    %126 = arith.addf %118, %125 : vector<8x8xf32>
    %cst_33 = arith.constant 0.353553385 : f32
    %127 = vector.broadcast %cst_33 : f32 to vector<8x8xf32>
    %128 = arith.mulf %126, %127 : vector<8x8xf32>
    %129 = vector.extract_strided_slice %3 {offsets = [0, 16], sizes = [8, 8], strides = [1, 1]} : vector<8x32xf32> to vector<8x8xf32>
    %cst_34 = arith.constant dense<0.000000e+00> : vector<8x8xf32>
    %130 = tpu.matmul %123, %129, %cst_34 {dimension_numbers = #tpu.dot_dimension_numbers<[1], [1], [0], [0], [0, 0, 1, 0], [], []>} : vector<8x8xf32>, vector<8x8xf32>, vector<8x8xf32> -> vector<8x8xf32>
    %131 = vector.extract_strided_slice %7 {offsets = [0, 16], sizes = [8, 8], strides = [1, 1]} : vector<8x32xf32> to vector<8x8xf32>
    %cst_35 = arith.constant dense<0.000000e+00> : vector<8x8xf32>
    %132 = tpu.matmul %128, %131, %cst_35 {dimension_numbers = #tpu.dot_dimension_numbers<[1], [1], [0], [0], [0, 0, 1, 0], [], []>} : vector<8x8xf32>, vector<8x8xf32>, vector<8x8xf32> -> vector<8x8xf32>
    %cst_36 = arith.constant 0.000000e+00 : f32
    %133 = vector.broadcast %cst_36 : f32 to vector<8x1xf32>
    %134 = tpu.concatenate %133, %132 in 1 : vector<8x1xf32>, vector<8x8xf32> -> vector<8x9xf32>
    %135 = vector.extract_strided_slice %134 {offsets = [0, 8], sizes = [1, 1], strides = [1, 1]} : vector<8x9xf32> to vector<1x1xf32>
    %136 = vector.extract_strided_slice %134 {offsets = [1, 0], sizes = [1, 7], strides = [1, 1]} : vector<8x9xf32> to vector<1x7xf32>
    %137 = tpu.concatenate %135, %136 in 1 : vector<1x1xf32>, vector<1x7xf32> -> vector<1x8xf32>
    %138 = vector.extract_strided_slice %134 {offsets = [1, 7], sizes = [1, 2], strides = [1, 1]} : vector<8x9xf32> to vector<1x2xf32>
    %139 = vector.extract_strided_slice %134 {offsets = [2, 0], sizes = [1, 6], strides = [1, 1]} : vector<8x9xf32> to vector<1x6xf32>
    %140 = tpu.concatenate %138, %139 in 1 : vector<1x2xf32>, vector<1x6xf32> -> vector<1x8xf32>
    %141 = vector.extract_strided_slice %134 {offsets = [2, 6], sizes = [1, 3], strides = [1, 1]} : vector<8x9xf32> to vector<1x3xf32>
    %142 = vector.extract_strided_slice %134 {offsets = [3, 0], sizes = [1, 5], strides = [1, 1]} : vector<8x9xf32> to vector<1x5xf32>
    %143 = tpu.concatenate %141, %142 in 1 : vector<1x3xf32>, vector<1x5xf32> -> vector<1x8xf32>
    %144 = vector.extract_strided_slice %134 {offsets = [3, 5], sizes = [1, 4], strides = [1, 1]} : vector<8x9xf32> to vector<1x4xf32>
    %145 = vector.extract_strided_slice %134 {offsets = [4, 0], sizes = [1, 4], strides = [1, 1]} : vector<8x9xf32> to vector<1x4xf32>
    %146 = tpu.concatenate %144, %145 in 1 : vector<1x4xf32>, vector<1x4xf32> -> vector<1x8xf32>
    %147 = vector.extract_strided_slice %134 {offsets = [4, 4], sizes = [1, 5], strides = [1, 1]} : vector<8x9xf32> to vector<1x5xf32>
    %148 = vector.extract_strided_slice %134 {offsets = [5, 0], sizes = [1, 3], strides = [1, 1]} : vector<8x9xf32> to vector<1x3xf32>
    %149 = tpu.concatenate %147, %148 in 1 : vector<1x5xf32>, vector<1x3xf32> -> vector<1x8xf32>
    %150 = vector.extract_strided_slice %134 {offsets = [5, 3], sizes = [1, 6], strides = [1, 1]} : vector<8x9xf32> to vector<1x6xf32>
    %151 = vector.extract_strided_slice %134 {offsets = [6, 0], sizes = [1, 2], strides = [1, 1]} : vector<8x9xf32> to vector<1x2xf32>
    %152 = tpu.concatenate %150, %151 in 1 : vector<1x6xf32>, vector<1x2xf32> -> vector<1x8xf32>
    %153 = vector.extract_strided_slice %134 {offsets = [6, 2], sizes = [1, 7], strides = [1, 1]} : vector<8x9xf32> to vector<1x7xf32>
    %154 = vector.extract_strided_slice %134 {offsets = [7, 0], sizes = [1, 1], strides = [1, 1]} : vector<8x9xf32> to vector<1x1xf32>
    %155 = tpu.concatenate %153, %154 in 1 : vector<1x7xf32>, vector<1x1xf32> -> vector<1x8xf32>
    %156 = vector.extract_strided_slice %134 {offsets = [7, 1], sizes = [1, 8], strides = [1, 1]} : vector<8x9xf32> to vector<1x8xf32>
    %157 = tpu.concatenate %137, %140, %143, %146, %149, %152, %155, %156 in 0 : vector<1x8xf32>, vector<1x8xf32>, vector<1x8xf32>, vector<1x8xf32>, vector<1x8xf32>, vector<1x8xf32>, vector<1x8xf32>, vector<1x8xf32> -> vector<8x8xf32>
    %158 = arith.addf %130, %157 : vector<8x8xf32>
    %159 = vector.extract_strided_slice %5 {offsets = [0, 16], sizes = [8, 8], strides = [1, 1]} : vector<8x32xf32> to vector<8x8xf32>
    %cst_37 = arith.constant dense<0xFF800000> : vector<8xf32>
    %160 = vector.multi_reduction <maximumf>, %158, %cst_37 [1] : vector<8x8xf32> to vector<8xf32>
    %161 = vector.shape_cast %160 : vector<8xf32> to vector<8x1xf32>
    %162 = vector.broadcast %161 : vector<8x1xf32> to vector<8x8xf32>
    %163 = arith.subf %158, %162 : vector<8x8xf32>
    %164 = math.exp %163 : vector<8x8xf32>
    %cst_38 = arith.constant dense<0.000000e+00> : vector<8xf32>
    %165 = vector.multi_reduction <add>, %164, %cst_38 [1] : vector<8x8xf32> to vector<8xf32>
    %166 = vector.shape_cast %165 : vector<8xf32> to vector<8x1xf32>
    %cst_39 = arith.constant dense<0.000000e+00> : vector<8x8xf32>
    %167 = tpu.matmul %164, %159, %cst_39 {dimension_numbers = #tpu.dot_dimension_numbers<[1], [0], [0], [1], [0, 0, 1, 1], [], []>} : vector<8x8xf32>, vector<8x8xf32>, vector<8x8xf32> -> vector<8x8xf32>
    %cst_40 = arith.constant 1.000000e+00 : f32
    %168 = vector.broadcast %cst_40 : f32 to vector<8x1xf32>
    %169 = arith.divf %168, %166 : vector<8x1xf32>
    %170 = vector.broadcast %169 : vector<8x1xf32> to vector<8x8xf32>
    %171 = arith.mulf %167, %170 : vector<8x8xf32>
    %172 = vector.extract_strided_slice %1 {offsets = [0, 24], sizes = [8, 8], strides = [1, 1]} : vector<8x32xf32> to vector<8x8xf32>
    %173 = vector.extract_strided_slice %8 {offsets = [3, 0], sizes = [1, 8], strides = [1, 1]} : vector<4x8xf32> to vector<1x8xf32>
    %174 = vector.broadcast %173 : vector<1x8xf32> to vector<8x8xf32>
    %175 = arith.addf %172, %174 : vector<8x8xf32>
    %cst_41 = arith.constant 0.353553385 : f32
    %176 = vector.broadcast %cst_41 : f32 to vector<8x8xf32>
    %177 = arith.mulf %175, %176 : vector<8x8xf32>
    %178 = vector.extract_strided_slice %9 {offsets = [3, 0], sizes = [1, 8], strides = [1, 1]} : vector<4x8xf32> to vector<1x8xf32>
    %179 = vector.broadcast %178 : vector<1x8xf32> to vector<8x8xf32>
    %180 = arith.addf %172, %179 : vector<8x8xf32>
    %cst_42 = arith.constant 0.353553385 : f32
    %181 = vector.broadcast %cst_42 : f32 to vector<8x8xf32>
    %182 = arith.mulf %180, %181 : vector<8x8xf32>
    %183 = vector.extract_strided_slice %3 {offsets = [0, 24], sizes = [8, 8], strides = [1, 1]} : vector<8x32xf32> to vector<8x8xf32>
    %cst_43 = arith.constant dense<0.000000e+00> : vector<8x8xf32>
    %184 = tpu.matmul %177, %183, %cst_43 {dimension_numbers = #tpu.dot_dimension_numbers<[1], [1], [0], [0], [0, 0, 1, 0], [], []>} : vector<8x8xf32>, vector<8x8xf32>, vector<8x8xf32> -> vector<8x8xf32>
    %185 = vector.extract_strided_slice %7 {offsets = [0, 24], sizes = [8, 8], strides = [1, 1]} : vector<8x32xf32> to vector<8x8xf32>
    %cst_44 = arith.constant dense<0.000000e+00> : vector<8x8xf32>
    %186 = tpu.matmul %182, %185, %cst_44 {dimension_numbers = #tpu.dot_dimension_numbers<[1], [1], [0], [0], [0, 0, 1, 0], [], []>} : vector<8x8xf32>, vector<8x8xf32>, vector<8x8xf32> -> vector<8x8xf32>
    %cst_45 = arith.constant 0.000000e+00 : f32
    %187 = vector.broadcast %cst_45 : f32 to vector<8x1xf32>
    %188 = tpu.concatenate %187, %186 in 1 : vector<8x1xf32>, vector<8x8xf32> -> vector<8x9xf32>
    %189 = vector.extract_strided_slice %188 {offsets = [0, 8], sizes = [1, 1], strides = [1, 1]} : vector<8x9xf32> to vector<1x1xf32>
    %190 = vector.extract_strided_slice %188 {offsets = [1, 0], sizes = [1, 7], strides = [1, 1]} : vector<8x9xf32> to vector<1x7xf32>
    %191 = tpu.concatenate %189, %190 in 1 : vector<1x1xf32>, vector<1x7xf32> -> vector<1x8xf32>
    %192 = vector.extract_strided_slice %188 {offsets = [1, 7], sizes = [1, 2], strides = [1, 1]} : vector<8x9xf32> to vector<1x2xf32>
    %193 = vector.extract_strided_slice %188 {offsets = [2, 0], sizes = [1, 6], strides = [1, 1]} : vector<8x9xf32> to vector<1x6xf32>
    %194 = tpu.concatenate %192, %193 in 1 : vector<1x2xf32>, vector<1x6xf32> -> vector<1x8xf32>
    %195 = vector.extract_strided_slice %188 {offsets = [2, 6], sizes = [1, 3], strides = [1, 1]} : vector<8x9xf32> to vector<1x3xf32>
    %196 = vector.extract_strided_slice %188 {offsets = [3, 0], sizes = [1, 5], strides = [1, 1]} : vector<8x9xf32> to vector<1x5xf32>
    %197 = tpu.concatenate %195, %196 in 1 : vector<1x3xf32>, vector<1x5xf32> -> vector<1x8xf32>
    %198 = vector.extract_strided_slice %188 {offsets = [3, 5], sizes = [1, 4], strides = [1, 1]} : vector<8x9xf32> to vector<1x4xf32>
    %199 = vector.extract_strided_slice %188 {offsets = [4, 0], sizes = [1, 4], strides = [1, 1]} : vector<8x9xf32> to vector<1x4xf32>
    %200 = tpu.concatenate %198, %199 in 1 : vector<1x4xf32>, vector<1x4xf32> -> vector<1x8xf32>
    %201 = vector.extract_strided_slice %188 {offsets = [4, 4], sizes = [1, 5], strides = [1, 1]} : vector<8x9xf32> to vector<1x5xf32>
    %202 = vector.extract_strided_slice %188 {offsets = [5, 0], sizes = [1, 3], strides = [1, 1]} : vector<8x9xf32> to vector<1x3xf32>
    %203 = tpu.concatenate %201, %202 in 1 : vector<1x5xf32>, vector<1x3xf32> -> vector<1x8xf32>
    %204 = vector.extract_strided_slice %188 {offsets = [5, 3], sizes = [1, 6], strides = [1, 1]} : vector<8x9xf32> to vector<1x6xf32>
    %205 = vector.extract_strided_slice %188 {offsets = [6, 0], sizes = [1, 2], strides = [1, 1]} : vector<8x9xf32> to vector<1x2xf32>
    %206 = tpu.concatenate %204, %205 in 1 : vector<1x6xf32>, vector<1x2xf32> -> vector<1x8xf32>
    %207 = vector.extract_strided_slice %188 {offsets = [6, 2], sizes = [1, 7], strides = [1, 1]} : vector<8x9xf32> to vector<1x7xf32>
    %208 = vector.extract_strided_slice %188 {offsets = [7, 0], sizes = [1, 1], strides = [1, 1]} : vector<8x9xf32> to vector<1x1xf32>
    %209 = tpu.concatenate %207, %208 in 1 : vector<1x7xf32>, vector<1x1xf32> -> vector<1x8xf32>
    %210 = vector.extract_strided_slice %188 {offsets = [7, 1], sizes = [1, 8], strides = [1, 1]} : vector<8x9xf32> to vector<1x8xf32>
    %211 = tpu.concatenate %191, %194, %197, %200, %203, %206, %209, %210 in 0 : vector<1x8xf32>, vector<1x8xf32>, vector<1x8xf32>, vector<1x8xf32>, vector<1x8xf32>, vector<1x8xf32>, vector<1x8xf32>, vector<1x8xf32> -> vector<8x8xf32>
    %212 = arith.addf %184, %211 : vector<8x8xf32>
    %213 = vector.extract_strided_slice %5 {offsets = [0, 24], sizes = [8, 8], strides = [1, 1]} : vector<8x32xf32> to vector<8x8xf32>
    %cst_46 = arith.constant dense<0xFF800000> : vector<8xf32>
    %214 = vector.multi_reduction <maximumf>, %212, %cst_46 [1] : vector<8x8xf32> to vector<8xf32>
    %215 = vector.shape_cast %214 : vector<8xf32> to vector<8x1xf32>
    %216 = vector.broadcast %215 : vector<8x1xf32> to vector<8x8xf32>
    %217 = arith.subf %212, %216 : vector<8x8xf32>
    %218 = math.exp %217 : vector<8x8xf32>
    %cst_47 = arith.constant dense<0.000000e+00> : vector<8xf32>
    %219 = vector.multi_reduction <add>, %218, %cst_47 [1] : vector<8x8xf32> to vector<8xf32>
    %220 = vector.shape_cast %219 : vector<8xf32> to vector<8x1xf32>
    %cst_48 = arith.constant dense<0.000000e+00> : vector<8x8xf32>
    %221 = tpu.matmul %218, %213, %cst_48 {dimension_numbers = #tpu.dot_dimension_numbers<[1], [0], [0], [1], [0, 0, 1, 1], [], []>} : vector<8x8xf32>, vector<8x8xf32>, vector<8x8xf32> -> vector<8x8xf32>
    %cst_49 = arith.constant 1.000000e+00 : f32
    %222 = vector.broadcast %cst_49 : f32 to vector<8x1xf32>
    %223 = arith.divf %222, %220 : vector<8x1xf32>
    %224 = vector.broadcast %223 : vector<8x1xf32> to vector<8x8xf32>
    %225 = arith.mulf %221, %224 : vector<8x8xf32>
    %226 = tpu.concatenate %63, %117, %171, %225 in 1 : vector<8x8xf32>, vector<8x8xf32>, vector<8x8xf32>, vector<8x8xf32> -> vector<8x32xf32>
    %c0_50 = arith.constant 0 : index
    %c0_51 = arith.constant 0 : index
    %c0_52 = arith.constant 0 : index
    %227 = vector.load %arg7[%c0_50, %c0_51, %c0_52] : memref<1x8x32xf32, #tpu.memory_space<vmem>>, vector<1x8x32xf32>
    %228 = vector.shape_cast %227 : vector<1x8x32xf32> to vector<8x32xf32>
    %229 = vector.shape_cast %226 : vector<8x32xf32> to vector<1x8x32xf32>
    tpu.vector_store %arg7[%c0_50, %c0_51, %c0_52], %229 {strides = array<i32>} : memref<1x8x32xf32, #tpu.memory_space<vmem>>, vector<1x8x32xf32>,
    return
  }
  func.func @transform_0(%arg0: i32) -> (i32, i32, i32) {
    %c0_i32 = arith.constant 0 : i32
    %c0_i32_0 = arith.constant 0 : i32
    %c0_i32_1 = arith.constant 0 : i32
    return %arg0, %c0_i32, %c0_i32_0 : i32, i32, i32
  }
  func.func @transform_1(%arg0: i32) -> (i32, i32, i32) {
    %c0_i32 = arith.constant 0 : i32
    %c0_i32_0 = arith.constant 0 : i32
    %c0_i32_1 = arith.constant 0 : i32
    return %arg0, %c0_i32, %c0_i32_0 : i32, i32, i32
  }
  func.func @transform_2(%arg0: i32) -> (i32, i32, i32) {
    %c0_i32 = arith.constant 0 : i32
    %c0_i32_0 = arith.constant 0 : i32
    %c0_i32_1 = arith.constant 0 : i32
    return %arg0, %c0_i32, %c0_i32_0 : i32, i32, i32
  }
  func.func @transform_3(%arg0: i32) -> (i32, i32, i32) {
    %c0_i32 = arith.constant 0 : i32
    %c0_i32_0 = arith.constant 0 : i32
    %c0_i32_1 = arith.constant 0 : i32
    return %arg0, %c0_i32, %c0_i32_0 : i32, i32, i32
  }
  func.func @transform_4(%arg0: i32) -> (i32, i32) {
    %c0_i32 = arith.constant 0 : i32
    %c0_i32_0 = arith.constant 0 : i32
    %c0_i32_1 = arith.constant 0 : i32
    return %c0_i32, %c0_i32_0 : i32, i32
  }
  func.func @transform_5(%arg0: i32) -> (i32, i32) {
    %c0_i32 = arith.constant 0 : i32
    %c0_i32_0 = arith.constant 0 : i32
    %c0_i32_1 = arith.constant 0 : i32
    return %c0_i32, %c0_i32_0 : i32, i32
  }
  func.func @transform_6(%arg0: i32) -> (i32, i32, i32) {
    %c0_i32 = arith.constant 0 : i32
    %c0_i32_0 = arith.constant 0 : i32
    %c0_i32_1 = arith.constant 0 : i32
    return %arg0, %c0_i32, %c0_i32_0 : i32, i32, i32
  }
}

module attributes {stable_mosaic.version = 11 : i64} {
  func.func @_out_double_ln_kernel(%arg0: i32, %arg1: memref<8x32xf32, #tpu.memory_space<vmem>>, %arg2: memref<32x32xf32, #tpu.memory_space<vmem>>, %arg3: memref<8x32xf32, #tpu.memory_space<vmem>>, %arg4: memref<1x32xf32, #tpu.memory_space<vmem>>, %arg5: memref<1x32xf32, #tpu.memory_space<vmem>>, %arg6: memref<1x32xf32, #tpu.memory_space<vmem>>, %arg7: memref<1x32xf32, #tpu.memory_space<vmem>>, %arg8: memref<8x32xf32, #tpu.memory_space<vmem>>) attributes {dimension_semantics = [#tpu.dimension_semantics<parallel>], iteration_bounds = array<i64: 2>, scalar_prefetch = 0 : i64, scratch_operands = 0 : i64, tpu.core_type = #tpu.core_type<tc>, window_params = [{transform_indices = @transform_0, window_bounds = array<i64: 8, 32>}, {pipeline_mode = #tpu.pipeline_mode<synchronous>, transform_indices = @transform_1, window_bounds = array<i64: 32, 32>}, {transform_indices = @transform_2, window_bounds = array<i64: 8, 32>}, {pipeline_mode = #tpu.pipeline_mode<synchronous>, transform_indices = @transform_3, window_bounds = array<i64: 1, 32>}, {pipeline_mode = #tpu.pipeline_mode<synchronous>, transform_indices = @transform_4, window_bounds = array<i64: 1, 32>}, {pipeline_mode = #tpu.pipeline_mode<synchronous>, transform_indices = @transform_5, window_bounds = array<i64: 1, 32>}, {pipeline_mode = #tpu.pipeline_mode<synchronous>, transform_indices = @transform_6, window_bounds = array<i64: 1, 32>}, {transform_indices = @transform_7, window_bounds = array<i64: 8, 32>}]} {
    %c0 = arith.constant 0 : index
    %c0_0 = arith.constant 0 : index
    %0 = vector.load %arg3[%c0, %c0_0] : memref<8x32xf32, #tpu.memory_space<vmem>>, vector<8x32xf32>
    %c0_1 = arith.constant 0 : index
    %c0_2 = arith.constant 0 : index
    %1 = vector.load %arg1[%c0_1, %c0_2] : memref<8x32xf32, #tpu.memory_space<vmem>>, vector<8x32xf32>
    %c0_3 = arith.constant 0 : index
    %c0_4 = arith.constant 0 : index
    %2 = vector.load %arg2[%c0_3, %c0_4] : memref<32x32xf32, #tpu.memory_space<vmem>>, vector<32x32xf32>
    %cst = arith.constant dense<0.000000e+00> : vector<8x32xf32>
    %3 = tpu.matmul %1, %2, %cst {dimension_numbers = #tpu.dot_dimension_numbers<[1], [0], [0], [1], [0, 0, 1, 1], [], []>} : vector<8x32xf32>, vector<32x32xf32>, vector<8x32xf32> -> vector<8x32xf32>
    %4 = arith.addf %0, %3 : vector<8x32xf32>
    %c0_5 = arith.constant 0 : index
    %c0_6 = arith.constant 0 : index
    %5 = vector.load %arg4[%c0_5, %c0_6] : memref<1x32xf32, #tpu.memory_space<vmem>>, vector<1x32xf32>
    %c0_7 = arith.constant 0 : index
    %c0_8 = arith.constant 0 : index
    %6 = vector.load %arg5[%c0_7, %c0_8] : memref<1x32xf32, #tpu.memory_space<vmem>>, vector<1x32xf32>
    %cst_9 = arith.constant dense<0.000000e+00> : vector<8xf32>
    %7 = vector.multi_reduction <add>, %4, %cst_9 [1] : vector<8x32xf32> to vector<8xf32>
    %8 = vector.shape_cast %7 : vector<8xf32> to vector<8x1xf32>
    %cst_10 = arith.constant 3.200000e+01 : f32
    %9 = vector.broadcast %cst_10 : f32 to vector<8x1xf32>
    %10 = arith.divf %8, %9 : vector<8x1xf32>
    %11 = vector.broadcast %10 : vector<8x1xf32> to vector<8x32xf32>
    %12 = arith.subf %4, %11 : vector<8x32xf32>
    %13 = arith.mulf %12, %12 : vector<8x32xf32>
    %cst_11 = arith.constant dense<0.000000e+00> : vector<8xf32>
    %14 = vector.multi_reduction <add>, %13, %cst_11 [1] : vector<8x32xf32> to vector<8xf32>
    %15 = vector.shape_cast %14 : vector<8xf32> to vector<8x1xf32>
    %cst_12 = arith.constant 3.200000e+01 : f32
    %16 = vector.broadcast %cst_12 : f32 to vector<8x1xf32>
    %17 = arith.divf %15, %16 : vector<8x1xf32>
    %cst_13 = arith.constant 9.99999974E-6 : f32
    %18 = vector.broadcast %cst_13 : f32 to vector<8x1xf32>
    %19 = arith.addf %17, %18 : vector<8x1xf32>
    %20 = math.rsqrt %19 : vector<8x1xf32>
    %21 = vector.broadcast %20 : vector<8x1xf32> to vector<8x32xf32>
    %22 = arith.mulf %12, %21 : vector<8x32xf32>
    %23 = vector.broadcast %5 : vector<1x32xf32> to vector<8x32xf32>
    %24 = arith.mulf %22, %23 : vector<8x32xf32>
    %25 = vector.broadcast %6 : vector<1x32xf32> to vector<8x32xf32>
    %26 = arith.addf %24, %25 : vector<8x32xf32>
    %27 = arith.addf %0, %26 : vector<8x32xf32>
    %c0_14 = arith.constant 0 : index
    %c0_15 = arith.constant 0 : index
    %28 = vector.load %arg6[%c0_14, %c0_15] : memref<1x32xf32, #tpu.memory_space<vmem>>, vector<1x32xf32>
    %c0_16 = arith.constant 0 : index
    %c0_17 = arith.constant 0 : index
    %29 = vector.load %arg7[%c0_16, %c0_17] : memref<1x32xf32, #tpu.memory_space<vmem>>, vector<1x32xf32>
    %cst_18 = arith.constant dense<0.000000e+00> : vector<8xf32>
    %30 = vector.multi_reduction <add>, %27, %cst_18 [1] : vector<8x32xf32> to vector<8xf32>
    %31 = vector.shape_cast %30 : vector<8xf32> to vector<8x1xf32>
    %cst_19 = arith.constant 3.200000e+01 : f32
    %32 = vector.broadcast %cst_19 : f32 to vector<8x1xf32>
    %33 = arith.divf %31, %32 : vector<8x1xf32>
    %34 = vector.broadcast %33 : vector<8x1xf32> to vector<8x32xf32>
    %35 = arith.subf %27, %34 : vector<8x32xf32>
    %36 = arith.mulf %35, %35 : vector<8x32xf32>
    %cst_20 = arith.constant dense<0.000000e+00> : vector<8xf32>
    %37 = vector.multi_reduction <add>, %36, %cst_20 [1] : vector<8x32xf32> to vector<8xf32>
    %38 = vector.shape_cast %37 : vector<8xf32> to vector<8x1xf32>
    %cst_21 = arith.constant 3.200000e+01 : f32
    %39 = vector.broadcast %cst_21 : f32 to vector<8x1xf32>
    %40 = arith.divf %38, %39 : vector<8x1xf32>
    %cst_22 = arith.constant 9.99999974E-6 : f32
    %41 = vector.broadcast %cst_22 : f32 to vector<8x1xf32>
    %42 = arith.addf %40, %41 : vector<8x1xf32>
    %43 = math.rsqrt %42 : vector<8x1xf32>
    %44 = vector.broadcast %43 : vector<8x1xf32> to vector<8x32xf32>
    %45 = arith.mulf %35, %44 : vector<8x32xf32>
    %46 = vector.broadcast %28 : vector<1x32xf32> to vector<8x32xf32>
    %47 = arith.mulf %45, %46 : vector<8x32xf32>
    %48 = vector.broadcast %29 : vector<1x32xf32> to vector<8x32xf32>
    %49 = arith.addf %47, %48 : vector<8x32xf32>
    %c0_23 = arith.constant 0 : index
    %c0_24 = arith.constant 0 : index
    %50 = vector.load %arg8[%c0_23, %c0_24] : memref<8x32xf32, #tpu.memory_space<vmem>>, vector<8x32xf32>
    tpu.vector_store %arg8[%c0_23, %c0_24], %49 {strides = array<i32>} : memref<8x32xf32, #tpu.memory_space<vmem>>, vector<8x32xf32>,
    return
  }
  func.func @transform_0(%arg0: i32) -> (i32, i32) {
    %c0_i32 = arith.constant 0 : i32
    %c0_i32_0 = arith.constant 0 : i32
    return %arg0, %c0_i32 : i32, i32
  }
  func.func @transform_1(%arg0: i32) -> (i32, i32) {
    %c0_i32 = arith.constant 0 : i32
    %c0_i32_0 = arith.constant 0 : i32
    %c0_i32_1 = arith.constant 0 : i32
    return %c0_i32, %c0_i32_0 : i32, i32
  }
  func.func @transform_2(%arg0: i32) -> (i32, i32) {
    %c0_i32 = arith.constant 0 : i32
    %c0_i32_0 = arith.constant 0 : i32
    return %arg0, %c0_i32 : i32, i32
  }
  func.func @transform_3(%arg0: i32) -> (i32, i32) {
    %c0_i32 = arith.constant 0 : i32
    %c0_i32_0 = arith.constant 0 : i32
    %c0_i32_1 = arith.constant 0 : i32
    return %c0_i32, %c0_i32_0 : i32, i32
  }
  func.func @transform_4(%arg0: i32) -> (i32, i32) {
    %c0_i32 = arith.constant 0 : i32
    %c0_i32_0 = arith.constant 0 : i32
    %c0_i32_1 = arith.constant 0 : i32
    return %c0_i32, %c0_i32_0 : i32, i32
  }
  func.func @transform_5(%arg0: i32) -> (i32, i32) {
    %c0_i32 = arith.constant 0 : i32
    %c0_i32_0 = arith.constant 0 : i32
    %c0_i32_1 = arith.constant 0 : i32
    return %c0_i32, %c0_i32_0 : i32, i32
  }
  func.func @transform_6(%arg0: i32) -> (i32, i32) {
    %c0_i32 = arith.constant 0 : i32
    %c0_i32_0 = arith.constant 0 : i32
    %c0_i32_1 = arith.constant 0 : i32
    return %c0_i32, %c0_i32_0 : i32, i32
  }
  func.func @transform_7(%arg0: i32) -> (i32, i32) {
    %c0_i32 = arith.constant 0 : i32
    %c0_i32_0 = arith.constant 0 : i32
    return %arg0, %c0_i32 : i32, i32
  }
}

module attributes {stable_mosaic.version = 11 : i64} {
  func.func @_add_linear_scale_kernel(%arg0: i32, %arg1: memref<8x32xf32, #tpu.memory_space<vmem>>, %arg2: memref<8x32xf32, #tpu.memory_space<vmem>>, %arg3: memref<32x32xf32, #tpu.memory_space<vmem>>, %arg4: memref<1x32xf32, #tpu.memory_space<vmem>>, %arg5: memref<8x32xf32, #tpu.memory_space<vmem>>) attributes {dimension_semantics = [#tpu.dimension_semantics<parallel>], iteration_bounds = array<i64: 2>, scalar_prefetch = 0 : i64, scratch_operands = 0 : i64, tpu.core_type = #tpu.core_type<tc>, window_params = [{transform_indices = @transform_0, window_bounds = array<i64: 8, 32>}, {transform_indices = @transform_1, window_bounds = array<i64: 8, 32>}, {pipeline_mode = #tpu.pipeline_mode<synchronous>, transform_indices = @transform_2, window_bounds = array<i64: 32, 32>}, {pipeline_mode = #tpu.pipeline_mode<synchronous>, transform_indices = @transform_3, window_bounds = array<i64: 1, 32>}, {transform_indices = @transform_4, window_bounds = array<i64: 8, 32>}]} {
    %c0 = arith.constant 0 : index
    %c0_0 = arith.constant 0 : index
    %0 = vector.load %arg1[%c0, %c0_0] : memref<8x32xf32, #tpu.memory_space<vmem>>, vector<8x32xf32>
    %c0_1 = arith.constant 0 : index
    %c0_2 = arith.constant 0 : index
    %1 = vector.load %arg2[%c0_1, %c0_2] : memref<8x32xf32, #tpu.memory_space<vmem>>, vector<8x32xf32>
    %2 = arith.addf %0, %1 : vector<8x32xf32>
    %c0_3 = arith.constant 0 : index
    %c0_4 = arith.constant 0 : index
    %3 = vector.load %arg3[%c0_3, %c0_4] : memref<32x32xf32, #tpu.memory_space<vmem>>, vector<32x32xf32>
    %cst = arith.constant dense<0.000000e+00> : vector<8x32xf32>
    %4 = tpu.matmul %2, %3, %cst {dimension_numbers = #tpu.dot_dimension_numbers<[1], [0], [0], [1], [0, 0, 1, 1], [], []>} : vector<8x32xf32>, vector<32x32xf32>, vector<8x32xf32> -> vector<8x32xf32>
    %c0_5 = arith.constant 0 : index
    %c0_6 = arith.constant 0 : index
    %5 = vector.load %arg4[%c0_5, %c0_6] : memref<1x32xf32, #tpu.memory_space<vmem>>, vector<1x32xf32>
    %6 = vector.broadcast %5 : vector<1x32xf32> to vector<8x32xf32>
    %7 = arith.addf %4, %6 : vector<8x32xf32>
    %cst_7 = arith.constant 0.353553385 : f32
    %8 = vector.broadcast %cst_7 : f32 to vector<8x32xf32>
    %9 = arith.mulf %7, %8 : vector<8x32xf32>
    %c0_8 = arith.constant 0 : index
    %c0_9 = arith.constant 0 : index
    %10 = vector.load %arg5[%c0_8, %c0_9] : memref<8x32xf32, #tpu.memory_space<vmem>>, vector<8x32xf32>
    tpu.vector_store %arg5[%c0_8, %c0_9], %9 {strides = array<i32>} : memref<8x32xf32, #tpu.memory_space<vmem>>, vector<8x32xf32>,
    return
  }
  func.func @transform_0(%arg0: i32) -> (i32, i32) {
    %c0_i32 = arith.constant 0 : i32
    %c0_i32_0 = arith.constant 0 : i32
    return %arg0, %c0_i32 : i32, i32
  }
  func.func @transform_1(%arg0: i32) -> (i32, i32) {
    %c0_i32 = arith.constant 0 : i32
    %c0_i32_0 = arith.constant 0 : i32
    return %arg0, %c0_i32 : i32, i32
  }
  func.func @transform_2(%arg0: i32) -> (i32, i32) {
    %c0_i32 = arith.constant 0 : i32
    %c0_i32_0 = arith.constant 0 : i32
    %c0_i32_1 = arith.constant 0 : i32
    return %c0_i32, %c0_i32_0 : i32, i32
  }
  func.func @transform_3(%arg0: i32) -> (i32, i32) {
    %c0_i32 = arith.constant 0 : i32
    %c0_i32_0 = arith.constant 0 : i32
    %c0_i32_1 = arith.constant 0 : i32
    return %c0_i32, %c0_i32_0 : i32, i32
  }
  func.func @transform_4(%arg0: i32) -> (i32, i32) {
    %c0_i32 = arith.constant 0 : i32
    %c0_i32_0 = arith.constant 0 : i32
    return %arg0, %c0_i32 : i32, i32
  }
}

module attributes {stable_mosaic.version = 11 : i64} {
  func.func @_kv_proj_kernel(%arg0: i32, %arg1: memref<8x32xf32, #tpu.memory_space<vmem>>, %arg2: memref<8x32xf32, #tpu.memory_space<vmem>>, %arg3: memref<32x32xf32, #tpu.memory_space<vmem>>, %arg4: memref<1x32xf32, #tpu.memory_space<vmem>>, %arg5: memref<32x32xf32, #tpu.memory_space<vmem>>, %arg6: memref<1x32xf32, #tpu.memory_space<vmem>>, %arg7: memref<8x32xf32, #tpu.memory_space<vmem>>, %arg8: memref<8x32xf32, #tpu.memory_space<vmem>>) attributes {dimension_semantics = [#tpu.dimension_semantics<parallel>], iteration_bounds = array<i64: 3>, scalar_prefetch = 0 : i64, scratch_operands = 0 : i64, tpu.core_type = #tpu.core_type<tc>, window_params = [{transform_indices = @transform_0, window_bounds = array<i64: 8, 32>}, {transform_indices = @transform_1, window_bounds = array<i64: 8, 32>}, {pipeline_mode = #tpu.pipeline_mode<synchronous>, transform_indices = @transform_2, window_bounds = array<i64: 32, 32>}, {pipeline_mode = #tpu.pipeline_mode<synchronous>, transform_indices = @transform_3, window_bounds = array<i64: 1, 32>}, {pipeline_mode = #tpu.pipeline_mode<synchronous>, transform_indices = @transform_4, window_bounds = array<i64: 32, 32>}, {pipeline_mode = #tpu.pipeline_mode<synchronous>, transform_indices = @transform_5, window_bounds = array<i64: 1, 32>}, {transform_indices = @transform_6, window_bounds = array<i64: 8, 32>}, {transform_indices = @transform_7, window_bounds = array<i64: 8, 32>}]} {
    %c0 = arith.constant 0 : index
    %c0_0 = arith.constant 0 : index
    %0 = vector.load %arg1[%c0, %c0_0] : memref<8x32xf32, #tpu.memory_space<vmem>>, vector<8x32xf32>
    %c0_1 = arith.constant 0 : index
    %c0_2 = arith.constant 0 : index
    %1 = vector.load %arg2[%c0_1, %c0_2] : memref<8x32xf32, #tpu.memory_space<vmem>>, vector<8x32xf32>
    %2 = arith.addf %0, %1 : vector<8x32xf32>
    %c0_3 = arith.constant 0 : index
    %c0_4 = arith.constant 0 : index
    %3 = vector.load %arg3[%c0_3, %c0_4] : memref<32x32xf32, #tpu.memory_space<vmem>>, vector<32x32xf32>
    %cst = arith.constant dense<0.000000e+00> : vector<8x32xf32>
    %4 = tpu.matmul %2, %3, %cst {dimension_numbers = #tpu.dot_dimension_numbers<[1], [0], [0], [1], [0, 0, 1, 1], [], []>} : vector<8x32xf32>, vector<32x32xf32>, vector<8x32xf32> -> vector<8x32xf32>
    %c0_5 = arith.constant 0 : index
    %c0_6 = arith.constant 0 : index
    %5 = vector.load %arg4[%c0_5, %c0_6] : memref<1x32xf32, #tpu.memory_space<vmem>>, vector<1x32xf32>
    %6 = vector.broadcast %5 : vector<1x32xf32> to vector<8x32xf32>
    %7 = arith.addf %4, %6 : vector<8x32xf32>
    %c0_7 = arith.constant 0 : index
    %c0_8 = arith.constant 0 : index
    %8 = vector.load %arg7[%c0_7, %c0_8] : memref<8x32xf32, #tpu.memory_space<vmem>>, vector<8x32xf32>
    tpu.vector_store %arg7[%c0_7, %c0_8], %7 {strides = array<i32>} : memref<8x32xf32, #tpu.memory_space<vmem>>, vector<8x32xf32>,
    %c0_9 = arith.constant 0 : index
    %c0_10 = arith.constant 0 : index
    %9 = vector.load %arg5[%c0_9, %c0_10] : memref<32x32xf32, #tpu.memory_space<vmem>>, vector<32x32xf32>
    %cst_11 = arith.constant dense<0.000000e+00> : vector<8x32xf32>
    %10 = tpu.matmul %0, %9, %cst_11 {dimension_numbers = #tpu.dot_dimension_numbers<[1], [0], [0], [1], [0, 0, 1, 1], [], []>} : vector<8x32xf32>, vector<32x32xf32>, vector<8x32xf32> -> vector<8x32xf32>
    %c0_12 = arith.constant 0 : index
    %c0_13 = arith.constant 0 : index
    %11 = vector.load %arg6[%c0_12, %c0_13] : memref<1x32xf32, #tpu.memory_space<vmem>>, vector<1x32xf32>
    %12 = vector.broadcast %11 : vector<1x32xf32> to vector<8x32xf32>
    %13 = arith.addf %10, %12 : vector<8x32xf32>
    %c0_14 = arith.constant 0 : index
    %c0_15 = arith.constant 0 : index
    %14 = vector.load %arg8[%c0_14, %c0_15] : memref<8x32xf32, #tpu.memory_space<vmem>>, vector<8x32xf32>
    tpu.vector_store %arg8[%c0_14, %c0_15], %13 {strides = array<i32>} : memref<8x32xf32, #tpu.memory_space<vmem>>, vector<8x32xf32>,
    return
  }
  func.func @transform_0(%arg0: i32) -> (i32, i32) {
    %c0_i32 = arith.constant 0 : i32
    %c0_i32_0 = arith.constant 0 : i32
    return %arg0, %c0_i32 : i32, i32
  }
  func.func @transform_1(%arg0: i32) -> (i32, i32) {
    %c0_i32 = arith.constant 0 : i32
    %c0_i32_0 = arith.constant 0 : i32
    return %arg0, %c0_i32 : i32, i32
  }
  func.func @transform_2(%arg0: i32) -> (i32, i32) {
    %c0_i32 = arith.constant 0 : i32
    %c0_i32_0 = arith.constant 0 : i32
    %c0_i32_1 = arith.constant 0 : i32
    return %c0_i32, %c0_i32_0 : i32, i32
  }
  func.func @transform_3(%arg0: i32) -> (i32, i32) {
    %c0_i32 = arith.constant 0 : i32
    %c0_i32_0 = arith.constant 0 : i32
    %c0_i32_1 = arith.constant 0 : i32
    return %c0_i32, %c0_i32_0 : i32, i32
  }
  func.func @transform_4(%arg0: i32) -> (i32, i32) {
    %c0_i32 = arith.constant 0 : i32
    %c0_i32_0 = arith.constant 0 : i32
    %c0_i32_1 = arith.constant 0 : i32
    return %c0_i32, %c0_i32_0 : i32, i32
  }
  func.func @transform_5(%arg0: i32) -> (i32, i32) {
    %c0_i32 = arith.constant 0 : i32
    %c0_i32_0 = arith.constant 0 : i32
    %c0_i32_1 = arith.constant 0 : i32
    return %c0_i32, %c0_i32_0 : i32, i32
  }
  func.func @transform_6(%arg0: i32) -> (i32, i32) {
    %c0_i32 = arith.constant 0 : i32
    %c0_i32_0 = arith.constant 0 : i32
    return %arg0, %c0_i32 : i32, i32
  }
  func.func @transform_7(%arg0: i32) -> (i32, i32) {
    %c0_i32 = arith.constant 0 : i32
    %c0_i32_0 = arith.constant 0 : i32
    return %arg0, %c0_i32 : i32, i32
  }
}

module attributes {stable_mosaic.version = 11 : i64} {
  func.func @_out_residual_kernel(%arg0: i32, %arg1: memref<8x32xf32, #tpu.memory_space<vmem>>, %arg2: memref<32x32xf32, #tpu.memory_space<vmem>>, %arg3: memref<1x32xf32, #tpu.memory_space<vmem>>, %arg4: memref<8x32xf32, #tpu.memory_space<vmem>>, %arg5: memref<8x32xf32, #tpu.memory_space<vmem>>) attributes {dimension_semantics = [#tpu.dimension_semantics<parallel>], iteration_bounds = array<i64: 2>, scalar_prefetch = 0 : i64, scratch_operands = 0 : i64, tpu.core_type = #tpu.core_type<tc>, window_params = [{transform_indices = @transform_0, window_bounds = array<i64: 8, 32>}, {pipeline_mode = #tpu.pipeline_mode<synchronous>, transform_indices = @transform_1, window_bounds = array<i64: 32, 32>}, {pipeline_mode = #tpu.pipeline_mode<synchronous>, transform_indices = @transform_2, window_bounds = array<i64: 1, 32>}, {transform_indices = @transform_3, window_bounds = array<i64: 8, 32>}, {transform_indices = @transform_4, window_bounds = array<i64: 8, 32>}]} {
    %c0 = arith.constant 0 : index
    %c0_0 = arith.constant 0 : index
    %0 = vector.load %arg1[%c0, %c0_0] : memref<8x32xf32, #tpu.memory_space<vmem>>, vector<8x32xf32>
    %c0_1 = arith.constant 0 : index
    %c0_2 = arith.constant 0 : index
    %1 = vector.load %arg2[%c0_1, %c0_2] : memref<32x32xf32, #tpu.memory_space<vmem>>, vector<32x32xf32>
    %cst = arith.constant dense<0.000000e+00> : vector<8x32xf32>
    %2 = tpu.matmul %0, %1, %cst {dimension_numbers = #tpu.dot_dimension_numbers<[1], [0], [0], [1], [0, 0, 1, 1], [], []>} : vector<8x32xf32>, vector<32x32xf32>, vector<8x32xf32> -> vector<8x32xf32>
    %c0_3 = arith.constant 0 : index
    %c0_4 = arith.constant 0 : index
    %3 = vector.load %arg3[%c0_3, %c0_4] : memref<1x32xf32, #tpu.memory_space<vmem>>, vector<1x32xf32>
    %4 = vector.broadcast %3 : vector<1x32xf32> to vector<8x32xf32>
    %5 = arith.addf %2, %4 : vector<8x32xf32>
    %c0_5 = arith.constant 0 : index
    %c0_6 = arith.constant 0 : index
    %6 = vector.load %arg4[%c0_5, %c0_6] : memref<8x32xf32, #tpu.memory_space<vmem>>, vector<8x32xf32>
    %7 = arith.addf %6, %5 : vector<8x32xf32>
    %c0_7 = arith.constant 0 : index
    %c0_8 = arith.constant 0 : index
    %8 = vector.load %arg5[%c0_7, %c0_8] : memref<8x32xf32, #tpu.memory_space<vmem>>, vector<8x32xf32>
    tpu.vector_store %arg5[%c0_7, %c0_8], %7 {strides = array<i32>} : memref<8x32xf32, #tpu.memory_space<vmem>>, vector<8x32xf32>,
    return
  }
  func.func @transform_0(%arg0: i32) -> (i32, i32) {
    %c0_i32 = arith.constant 0 : i32
    %c0_i32_0 = arith.constant 0 : i32
    return %arg0, %c0_i32 : i32, i32
  }
  func.func @transform_1(%arg0: i32) -> (i32, i32) {
    %c0_i32 = arith.constant 0 : i32
    %c0_i32_0 = arith.constant 0 : i32
    %c0_i32_1 = arith.constant 0 : i32
    return %c0_i32, %c0_i32_0 : i32, i32
  }
  func.func @transform_2(%arg0: i32) -> (i32, i32) {
    %c0_i32 = arith.constant 0 : i32
    %c0_i32_0 = arith.constant 0 : i32
    %c0_i32_1 = arith.constant 0 : i32
    return %c0_i32, %c0_i32_0 : i32, i32
  }
  func.func @transform_3(%arg0: i32) -> (i32, i32) {
    %c0_i32 = arith.constant 0 : i32
    %c0_i32_0 = arith.constant 0 : i32
    return %arg0, %c0_i32 : i32, i32
  }
  func.func @transform_4(%arg0: i32) -> (i32, i32) {
    %c0_i32 = arith.constant 0 : i32
    %c0_i32_0 = arith.constant 0 : i32
    return %arg0, %c0_i32 : i32, i32
  }
}

module attributes {stable_mosaic.version = 11 : i64} {
  func.func @_mha_core_kernel(%arg0: i32, %arg1: memref<1x8x32xf32, #tpu.memory_space<vmem>>, %arg2: memref<1x12x32xf32, #tpu.memory_space<vmem>>, %arg3: memref<1x12x32xf32, #tpu.memory_space<vmem>>, %arg4: memref<1x8x32xf32, #tpu.memory_space<vmem>>) attributes {dimension_semantics = [#tpu.dimension_semantics<parallel>], iteration_bounds = array<i64: 2>, scalar_prefetch = 0 : i64, scratch_operands = 0 : i64, tpu.core_type = #tpu.core_type<tc>, window_params = [{transform_indices = @transform_0, window_bounds = array<i64: 1, 8, 32>}, {transform_indices = @transform_1, window_bounds = array<i64: 1, 12, 32>}, {transform_indices = @transform_2, window_bounds = array<i64: 1, 12, 32>}, {transform_indices = @transform_3, window_bounds = array<i64: 1, 8, 32>}]} {
    %c0 = arith.constant 0 : index
    %c0_0 = arith.constant 0 : index
    %c0_1 = arith.constant 0 : index
    %0 = vector.load %arg1[%c0, %c0_0, %c0_1] : memref<1x8x32xf32, #tpu.memory_space<vmem>>, vector<1x8x32xf32>
    %1 = vector.shape_cast %0 : vector<1x8x32xf32> to vector<8x32xf32>
    %c0_2 = arith.constant 0 : index
    %c0_3 = arith.constant 0 : index
    %c0_4 = arith.constant 0 : index
    %2 = vector.load %arg2[%c0_2, %c0_3, %c0_4] : memref<1x12x32xf32, #tpu.memory_space<vmem>>, vector<1x12x32xf32>
    %3 = vector.shape_cast %2 : vector<1x12x32xf32> to vector<12x32xf32>
    %c0_5 = arith.constant 0 : index
    %c0_6 = arith.constant 0 : index
    %c0_7 = arith.constant 0 : index
    %4 = vector.load %arg3[%c0_5, %c0_6, %c0_7] : memref<1x12x32xf32, #tpu.memory_space<vmem>>, vector<1x12x32xf32>
    %5 = vector.shape_cast %4 : vector<1x12x32xf32> to vector<12x32xf32>
    %6 = vector.extract_strided_slice %1 {offsets = [0, 0], sizes = [8, 8], strides = [1, 1]} : vector<8x32xf32> to vector<8x8xf32>
    %7 = vector.extract_strided_slice %3 {offsets = [0, 0], sizes = [12, 8], strides = [1, 1]} : vector<12x32xf32> to vector<12x8xf32>
    %cst = arith.constant dense<0.000000e+00> : vector<8x12xf32>
    %8 = tpu.matmul %6, %7, %cst {dimension_numbers = #tpu.dot_dimension_numbers<[1], [1], [0], [0], [0, 0, 1, 0], [], []>} : vector<8x8xf32>, vector<12x8xf32>, vector<8x12xf32> -> vector<8x12xf32>
    %9 = vector.extract_strided_slice %5 {offsets = [0, 0], sizes = [12, 8], strides = [1, 1]} : vector<12x32xf32> to vector<12x8xf32>
    %cst_8 = arith.constant dense<0xFF800000> : vector<8xf32>
    %10 = vector.multi_reduction <maximumf>, %8, %cst_8 [1] : vector<8x12xf32> to vector<8xf32>
    %11 = vector.shape_cast %10 : vector<8xf32> to vector<8x1xf32>
    %12 = vector.broadcast %11 : vector<8x1xf32> to vector<8x12xf32>
    %13 = arith.subf %8, %12 : vector<8x12xf32>
    %14 = math.exp %13 : vector<8x12xf32>
    %cst_9 = arith.constant dense<0.000000e+00> : vector<8xf32>
    %15 = vector.multi_reduction <add>, %14, %cst_9 [1] : vector<8x12xf32> to vector<8xf32>
    %16 = vector.shape_cast %15 : vector<8xf32> to vector<8x1xf32>
    %cst_10 = arith.constant dense<0.000000e+00> : vector<8x8xf32>
    %17 = tpu.matmul %14, %9, %cst_10 {dimension_numbers = #tpu.dot_dimension_numbers<[1], [0], [0], [1], [0, 0, 1, 1], [], []>} : vector<8x12xf32>, vector<12x8xf32>, vector<8x8xf32> -> vector<8x8xf32>
    %cst_11 = arith.constant 1.000000e+00 : f32
    %18 = vector.broadcast %cst_11 : f32 to vector<8x1xf32>
    %19 = arith.divf %18, %16 : vector<8x1xf32>
    %20 = vector.broadcast %19 : vector<8x1xf32> to vector<8x8xf32>
    %21 = arith.mulf %17, %20 : vector<8x8xf32>
    %22 = vector.extract_strided_slice %1 {offsets = [0, 8], sizes = [8, 8], strides = [1, 1]} : vector<8x32xf32> to vector<8x8xf32>
    %23 = vector.extract_strided_slice %3 {offsets = [0, 8], sizes = [12, 8], strides = [1, 1]} : vector<12x32xf32> to vector<12x8xf32>
    %cst_12 = arith.constant dense<0.000000e+00> : vector<8x12xf32>
    %24 = tpu.matmul %22, %23, %cst_12 {dimension_numbers = #tpu.dot_dimension_numbers<[1], [1], [0], [0], [0, 0, 1, 0], [], []>} : vector<8x8xf32>, vector<12x8xf32>, vector<8x12xf32> -> vector<8x12xf32>
    %25 = vector.extract_strided_slice %5 {offsets = [0, 8], sizes = [12, 8], strides = [1, 1]} : vector<12x32xf32> to vector<12x8xf32>
    %cst_13 = arith.constant dense<0xFF800000> : vector<8xf32>
    %26 = vector.multi_reduction <maximumf>, %24, %cst_13 [1] : vector<8x12xf32> to vector<8xf32>
    %27 = vector.shape_cast %26 : vector<8xf32> to vector<8x1xf32>
    %28 = vector.broadcast %27 : vector<8x1xf32> to vector<8x12xf32>
    %29 = arith.subf %24, %28 : vector<8x12xf32>
    %30 = math.exp %29 : vector<8x12xf32>
    %cst_14 = arith.constant dense<0.000000e+00> : vector<8xf32>
    %31 = vector.multi_reduction <add>, %30, %cst_14 [1] : vector<8x12xf32> to vector<8xf32>
    %32 = vector.shape_cast %31 : vector<8xf32> to vector<8x1xf32>
    %cst_15 = arith.constant dense<0.000000e+00> : vector<8x8xf32>
    %33 = tpu.matmul %30, %25, %cst_15 {dimension_numbers = #tpu.dot_dimension_numbers<[1], [0], [0], [1], [0, 0, 1, 1], [], []>} : vector<8x12xf32>, vector<12x8xf32>, vector<8x8xf32> -> vector<8x8xf32>
    %cst_16 = arith.constant 1.000000e+00 : f32
    %34 = vector.broadcast %cst_16 : f32 to vector<8x1xf32>
    %35 = arith.divf %34, %32 : vector<8x1xf32>
    %36 = vector.broadcast %35 : vector<8x1xf32> to vector<8x8xf32>
    %37 = arith.mulf %33, %36 : vector<8x8xf32>
    %38 = vector.extract_strided_slice %1 {offsets = [0, 16], sizes = [8, 8], strides = [1, 1]} : vector<8x32xf32> to vector<8x8xf32>
    %39 = vector.extract_strided_slice %3 {offsets = [0, 16], sizes = [12, 8], strides = [1, 1]} : vector<12x32xf32> to vector<12x8xf32>
    %cst_17 = arith.constant dense<0.000000e+00> : vector<8x12xf32>
    %40 = tpu.matmul %38, %39, %cst_17 {dimension_numbers = #tpu.dot_dimension_numbers<[1], [1], [0], [0], [0, 0, 1, 0], [], []>} : vector<8x8xf32>, vector<12x8xf32>, vector<8x12xf32> -> vector<8x12xf32>
    %41 = vector.extract_strided_slice %5 {offsets = [0, 16], sizes = [12, 8], strides = [1, 1]} : vector<12x32xf32> to vector<12x8xf32>
    %cst_18 = arith.constant dense<0xFF800000> : vector<8xf32>
    %42 = vector.multi_reduction <maximumf>, %40, %cst_18 [1] : vector<8x12xf32> to vector<8xf32>
    %43 = vector.shape_cast %42 : vector<8xf32> to vector<8x1xf32>
    %44 = vector.broadcast %43 : vector<8x1xf32> to vector<8x12xf32>
    %45 = arith.subf %40, %44 : vector<8x12xf32>
    %46 = math.exp %45 : vector<8x12xf32>
    %cst_19 = arith.constant dense<0.000000e+00> : vector<8xf32>
    %47 = vector.multi_reduction <add>, %46, %cst_19 [1] : vector<8x12xf32> to vector<8xf32>
    %48 = vector.shape_cast %47 : vector<8xf32> to vector<8x1xf32>
    %cst_20 = arith.constant dense<0.000000e+00> : vector<8x8xf32>
    %49 = tpu.matmul %46, %41, %cst_20 {dimension_numbers = #tpu.dot_dimension_numbers<[1], [0], [0], [1], [0, 0, 1, 1], [], []>} : vector<8x12xf32>, vector<12x8xf32>, vector<8x8xf32> -> vector<8x8xf32>
    %cst_21 = arith.constant 1.000000e+00 : f32
    %50 = vector.broadcast %cst_21 : f32 to vector<8x1xf32>
    %51 = arith.divf %50, %48 : vector<8x1xf32>
    %52 = vector.broadcast %51 : vector<8x1xf32> to vector<8x8xf32>
    %53 = arith.mulf %49, %52 : vector<8x8xf32>
    %54 = vector.extract_strided_slice %1 {offsets = [0, 24], sizes = [8, 8], strides = [1, 1]} : vector<8x32xf32> to vector<8x8xf32>
    %55 = vector.extract_strided_slice %3 {offsets = [0, 24], sizes = [12, 8], strides = [1, 1]} : vector<12x32xf32> to vector<12x8xf32>
    %cst_22 = arith.constant dense<0.000000e+00> : vector<8x12xf32>
    %56 = tpu.matmul %54, %55, %cst_22 {dimension_numbers = #tpu.dot_dimension_numbers<[1], [1], [0], [0], [0, 0, 1, 0], [], []>} : vector<8x8xf32>, vector<12x8xf32>, vector<8x12xf32> -> vector<8x12xf32>
    %57 = vector.extract_strided_slice %5 {offsets = [0, 24], sizes = [12, 8], strides = [1, 1]} : vector<12x32xf32> to vector<12x8xf32>
    %cst_23 = arith.constant dense<0xFF800000> : vector<8xf32>
    %58 = vector.multi_reduction <maximumf>, %56, %cst_23 [1] : vector<8x12xf32> to vector<8xf32>
    %59 = vector.shape_cast %58 : vector<8xf32> to vector<8x1xf32>
    %60 = vector.broadcast %59 : vector<8x1xf32> to vector<8x12xf32>
    %61 = arith.subf %56, %60 : vector<8x12xf32>
    %62 = math.exp %61 : vector<8x12xf32>
    %cst_24 = arith.constant dense<0.000000e+00> : vector<8xf32>
    %63 = vector.multi_reduction <add>, %62, %cst_24 [1] : vector<8x12xf32> to vector<8xf32>
    %64 = vector.shape_cast %63 : vector<8xf32> to vector<8x1xf32>
    %cst_25 = arith.constant dense<0.000000e+00> : vector<8x8xf32>
    %65 = tpu.matmul %62, %57, %cst_25 {dimension_numbers = #tpu.dot_dimension_numbers<[1], [0], [0], [1], [0, 0, 1, 1], [], []>} : vector<8x12xf32>, vector<12x8xf32>, vector<8x8xf32> -> vector<8x8xf32>
    %cst_26 = arith.constant 1.000000e+00 : f32
    %66 = vector.broadcast %cst_26 : f32 to vector<8x1xf32>
    %67 = arith.divf %66, %64 : vector<8x1xf32>
    %68 = vector.broadcast %67 : vector<8x1xf32> to vector<8x8xf32>
    %69 = arith.mulf %65, %68 : vector<8x8xf32>
    %70 = tpu.concatenate %21, %37, %53, %69 in 1 : vector<8x8xf32>, vector<8x8xf32>, vector<8x8xf32>, vector<8x8xf32> -> vector<8x32xf32>
    %c0_27 = arith.constant 0 : index
    %c0_28 = arith.constant 0 : index
    %c0_29 = arith.constant 0 : index
    %71 = vector.load %arg4[%c0_27, %c0_28, %c0_29] : memref<1x8x32xf32, #tpu.memory_space<vmem>>, vector<1x8x32xf32>
    %72 = vector.shape_cast %71 : vector<1x8x32xf32> to vector<8x32xf32>
    %73 = vector.shape_cast %70 : vector<8x32xf32> to vector<1x8x32xf32>
    tpu.vector_store %arg4[%c0_27, %c0_28, %c0_29], %73 {strides = array<i32>} : memref<1x8x32xf32, #tpu.memory_space<vmem>>, vector<1x8x32xf32>,
    return
  }
  func.func @transform_0(%arg0: i32) -> (i32, i32, i32) {
    %c0_i32 = arith.constant 0 : i32
    %c0_i32_0 = arith.constant 0 : i32
    %c0_i32_1 = arith.constant 0 : i32
    return %arg0, %c0_i32, %c0_i32_0 : i32, i32, i32
  }
  func.func @transform_1(%arg0: i32) -> (i32, i32, i32) {
    %c0_i32 = arith.constant 0 : i32
    %c0_i32_0 = arith.constant 0 : i32
    %c0_i32_1 = arith.constant 0 : i32
    return %arg0, %c0_i32, %c0_i32_0 : i32, i32, i32
  }
  func.func @transform_2(%arg0: i32) -> (i32, i32, i32) {
    %c0_i32 = arith.constant 0 : i32
    %c0_i32_0 = arith.constant 0 : i32
    %c0_i32_1 = arith.constant 0 : i32
    return %arg0, %c0_i32, %c0_i32_0 : i32, i32, i32
  }
  func.func @transform_3(%arg0: i32) -> (i32, i32, i32) {
    %c0_i32 = arith.constant 0 : i32
    %c0_i32_0 = arith.constant 0 : i32
    %c0_i32_1 = arith.constant 0 : i32
    return %arg0, %c0_i32, %c0_i32_0 : i32, i32, i32
  }
}

module attributes {stable_mosaic.version = 11 : i64} {
  func.func @_ffn_kernel(%arg0: i32, %arg1: memref<8x32xf32, #tpu.memory_space<vmem>>, %arg2: memref<32x64xf32, #tpu.memory_space<vmem>>, %arg3: memref<1x64xf32, #tpu.memory_space<vmem>>, %arg4: memref<64x32xf32, #tpu.memory_space<vmem>>, %arg5: memref<1x32xf32, #tpu.memory_space<vmem>>, %arg6: memref<1x32xf32, #tpu.memory_space<vmem>>, %arg7: memref<1x32xf32, #tpu.memory_space<vmem>>, %arg8: memref<8x32xf32, #tpu.memory_space<vmem>>) attributes {dimension_semantics = [#tpu.dimension_semantics<parallel>], iteration_bounds = array<i64: 2>, scalar_prefetch = 0 : i64, scratch_operands = 0 : i64, tpu.core_type = #tpu.core_type<tc>, window_params = [{transform_indices = @transform_0, window_bounds = array<i64: 8, 32>}, {pipeline_mode = #tpu.pipeline_mode<synchronous>, transform_indices = @transform_1, window_bounds = array<i64: 32, 64>}, {pipeline_mode = #tpu.pipeline_mode<synchronous>, transform_indices = @transform_2, window_bounds = array<i64: 1, 64>}, {pipeline_mode = #tpu.pipeline_mode<synchronous>, transform_indices = @transform_3, window_bounds = array<i64: 64, 32>}, {pipeline_mode = #tpu.pipeline_mode<synchronous>, transform_indices = @transform_4, window_bounds = array<i64: 1, 32>}, {pipeline_mode = #tpu.pipeline_mode<synchronous>, transform_indices = @transform_5, window_bounds = array<i64: 1, 32>}, {pipeline_mode = #tpu.pipeline_mode<synchronous>, transform_indices = @transform_6, window_bounds = array<i64: 1, 32>}, {transform_indices = @transform_7, window_bounds = array<i64: 8, 32>}]} {
    %c0 = arith.constant 0 : index
    %c0_0 = arith.constant 0 : index
    %0 = vector.load %arg1[%c0, %c0_0] : memref<8x32xf32, #tpu.memory_space<vmem>>, vector<8x32xf32>
    %c0_1 = arith.constant 0 : index
    %c0_2 = arith.constant 0 : index
    %1 = vector.load %arg2[%c0_1, %c0_2] : memref<32x64xf32, #tpu.memory_space<vmem>>, vector<32x64xf32>
    %cst = arith.constant dense<0.000000e+00> : vector<8x64xf32>
    %2 = tpu.matmul %0, %1, %cst {dimension_numbers = #tpu.dot_dimension_numbers<[1], [0], [0], [1], [0, 0, 1, 1], [], []>} : vector<8x32xf32>, vector<32x64xf32>, vector<8x64xf32> -> vector<8x64xf32>
    %c0_3 = arith.constant 0 : index
    %c0_4 = arith.constant 0 : index
    %3 = vector.load %arg3[%c0_3, %c0_4] : memref<1x64xf32, #tpu.memory_space<vmem>>, vector<1x64xf32>
    %4 = vector.broadcast %3 : vector<1x64xf32> to vector<8x64xf32>
    %5 = arith.addf %2, %4 : vector<8x64xf32>
    %cst_5 = arith.constant 0.000000e+00 : f32
    %6 = vector.broadcast %cst_5 : f32 to vector<8x64xf32>
    %7 = arith.maximumf %5, %6 : vector<8x64xf32>
    %c0_6 = arith.constant 0 : index
    %c0_7 = arith.constant 0 : index
    %8 = vector.load %arg4[%c0_6, %c0_7] : memref<64x32xf32, #tpu.memory_space<vmem>>, vector<64x32xf32>
    %cst_8 = arith.constant dense<0.000000e+00> : vector<8x32xf32>
    %9 = tpu.matmul %7, %8, %cst_8 {dimension_numbers = #tpu.dot_dimension_numbers<[1], [0], [0], [1], [0, 0, 1, 1], [], []>} : vector<8x64xf32>, vector<64x32xf32>, vector<8x32xf32> -> vector<8x32xf32>
    %c0_9 = arith.constant 0 : index
    %c0_10 = arith.constant 0 : index
    %10 = vector.load %arg5[%c0_9, %c0_10] : memref<1x32xf32, #tpu.memory_space<vmem>>, vector<1x32xf32>
    %11 = vector.broadcast %10 : vector<1x32xf32> to vector<8x32xf32>
    %12 = arith.addf %9, %11 : vector<8x32xf32>
    %13 = arith.addf %0, %12 : vector<8x32xf32>
    %c0_11 = arith.constant 0 : index
    %c0_12 = arith.constant 0 : index
    %14 = vector.load %arg6[%c0_11, %c0_12] : memref<1x32xf32, #tpu.memory_space<vmem>>, vector<1x32xf32>
    %c0_13 = arith.constant 0 : index
    %c0_14 = arith.constant 0 : index
    %15 = vector.load %arg7[%c0_13, %c0_14] : memref<1x32xf32, #tpu.memory_space<vmem>>, vector<1x32xf32>
    %cst_15 = arith.constant dense<0.000000e+00> : vector<8xf32>
    %16 = vector.multi_reduction <add>, %13, %cst_15 [1] : vector<8x32xf32> to vector<8xf32>
    %17 = vector.shape_cast %16 : vector<8xf32> to vector<8x1xf32>
    %cst_16 = arith.constant 3.200000e+01 : f32
    %18 = vector.broadcast %cst_16 : f32 to vector<8x1xf32>
    %19 = arith.divf %17, %18 : vector<8x1xf32>
    %20 = vector.broadcast %19 : vector<8x1xf32> to vector<8x32xf32>
    %21 = arith.subf %13, %20 : vector<8x32xf32>
    %22 = arith.mulf %21, %21 : vector<8x32xf32>
    %cst_17 = arith.constant dense<0.000000e+00> : vector<8xf32>
    %23 = vector.multi_reduction <add>, %22, %cst_17 [1] : vector<8x32xf32> to vector<8xf32>
    %24 = vector.shape_cast %23 : vector<8xf32> to vector<8x1xf32>
    %cst_18 = arith.constant 3.200000e+01 : f32
    %25 = vector.broadcast %cst_18 : f32 to vector<8x1xf32>
    %26 = arith.divf %24, %25 : vector<8x1xf32>
    %cst_19 = arith.constant 9.99999974E-6 : f32
    %27 = vector.broadcast %cst_19 : f32 to vector<8x1xf32>
    %28 = arith.addf %26, %27 : vector<8x1xf32>
    %29 = math.rsqrt %28 : vector<8x1xf32>
    %30 = vector.broadcast %29 : vector<8x1xf32> to vector<8x32xf32>
    %31 = arith.mulf %21, %30 : vector<8x32xf32>
    %32 = vector.broadcast %14 : vector<1x32xf32> to vector<8x32xf32>
    %33 = arith.mulf %31, %32 : vector<8x32xf32>
    %34 = vector.broadcast %15 : vector<1x32xf32> to vector<8x32xf32>
    %35 = arith.addf %33, %34 : vector<8x32xf32>
    %c0_20 = arith.constant 0 : index
    %c0_21 = arith.constant 0 : index
    %36 = vector.load %arg8[%c0_20, %c0_21] : memref<8x32xf32, #tpu.memory_space<vmem>>, vector<8x32xf32>
    tpu.vector_store %arg8[%c0_20, %c0_21], %35 {strides = array<i32>} : memref<8x32xf32, #tpu.memory_space<vmem>>, vector<8x32xf32>,
    return
  }
  func.func @transform_0(%arg0: i32) -> (i32, i32) {
    %c0_i32 = arith.constant 0 : i32
    %c0_i32_0 = arith.constant 0 : i32
    return %arg0, %c0_i32 : i32, i32
  }
  func.func @transform_1(%arg0: i32) -> (i32, i32) {
    %c0_i32 = arith.constant 0 : i32
    %c0_i32_0 = arith.constant 0 : i32
    %c0_i32_1 = arith.constant 0 : i32
    return %c0_i32, %c0_i32_0 : i32, i32
  }
  func.func @transform_2(%arg0: i32) -> (i32, i32) {
    %c0_i32 = arith.constant 0 : i32
    %c0_i32_0 = arith.constant 0 : i32
    %c0_i32_1 = arith.constant 0 : i32
    return %c0_i32, %c0_i32_0 : i32, i32
  }
  func.func @transform_3(%arg0: i32) -> (i32, i32) {
    %c0_i32 = arith.constant 0 : i32
    %c0_i32_0 = arith.constant 0 : i32
    %c0_i32_1 = arith.constant 0 : i32
    return %c0_i32, %c0_i32_0 : i32, i32
  }
  func.func @transform_4(%arg0: i32) -> (i32, i32) {
    %c0_i32 = arith.constant 0 : i32
    %c0_i32_0 = arith.constant 0 : i32
    %c0_i32_1 = arith.constant 0 : i32
    return %c0_i32, %c0_i32_0 : i32, i32
  }
  func.func @transform_5(%arg0: i32) -> (i32, i32) {
    %c0_i32 = arith.constant 0 : i32
    %c0_i32_0 = arith.constant 0 : i32
    %c0_i32_1 = arith.constant 0 : i32
    return %c0_i32, %c0_i32_0 : i32, i32
  }
  func.func @transform_6(%arg0: i32) -> (i32, i32) {
    %c0_i32 = arith.constant 0 : i32
    %c0_i32_0 = arith.constant 0 : i32
    %c0_i32_1 = arith.constant 0 : i32
    return %c0_i32, %c0_i32_0 : i32, i32
  }
  func.func @transform_7(%arg0: i32) -> (i32, i32) {
    %c0_i32 = arith.constant 0 : i32
    %c0_i32_0 = arith.constant 0 : i32
    return %arg0, %c0_i32 : i32, i32
  }
}

</mosaic_0001>

<bundles_post_ra>
// kernel: decoder_layer_forward.10
= control target key start
LH: loop header
LB: loop body
LE: loop exit
PB: predicated region body
PF: predicated region fallthrough
CT: control target
= control target key end

     0   :  { %s263_s9 = smov 0   ;;  %s286_s0 = inlined_call_operand.vmem [shape: f32[16,32], index: 0, kind: input, shape index: {}]   ;;  %s287_s1 = inlined_call_operand.vmem [shape: f32[32,32], index: 1, kind: input, shape index: {}]   ;;  %s288_s2 = inlined_call_operand.vmem [shape: f32[16,32], index: 2, kind: output, shape index: {}]  }
   0x1 LB: > { %s222_s10 = sadd.s32 4294967295, %s246_s9   ;;  %p226_p0 = scmp.ge.s32.totalorder %s246_s9, 1  ;;  %s246_s9 = sphi %s263_s9, %s12_s9  }
   0x2   : > { %p111_p1 = scmp.lt.s32.totalorder %s246_s9, 3 }
   0x4   : > { %p112_p2 = pnand %p226_p0, %p111_p1 }
   0x5   : > { %p131_p3 = scmp.lt.s32.totalorder (!%p112_p2), %s222_s10, 1 }
   0x6   : > { %115 = sbr.rel (%p112_p2) target bundleno = 146 (0x92), region = 28 }
   0xb   : > { %v143_v0 = vld [vmem:[%s287_s1 + $0x18] sm:$0xff]  ;;  %v142_v1 = vld [vmem:[%s287_s1 + $0x10] sm:$0xff]  ;;  %v141_v2 = vld [vmem:[%s287_s1 + $0x8] sm:$0xff]  ;;  %s290_s10 = smov (!%p131_p3, %s222_s10), 1  ;;  %vm144_vm0 = vcmask 261120  }
   0xc   : > { %160 = vmatpush.msra.mxu0 %v143_v0  ;;  %v140_v3 = vld [vmem:[%s287_s1] sm:$0xff]  ;;  %s227_s19 = sshll.u32 %s290_s10, 3 }
   0xd   : > { %s134_s22 = scalar_lea.vmem %s286_s0, %s227_s19  ;;  %s138_s25 = scalar_lea.vmem %s288_s2, %s227_s19 }
   0xe   : > { %161 = vmatpush.msra.mxu0 %v142_v1  ;;  %v139_v4 = vld [vmem:[%s134_s22] sm:$0xff] }
  0x10   : > { %162 = vmatpush.msra.mxu0 %v141_v2 }
  0x12   : > { %163 = vmatpush.msra.mxu0 %v140_v3 }
  0x13   : > { %229 = vmatmul.msk.f32.vlgmr.msra.gmra.mxu0 %vm144_vm0, %v139_v4 }
  0x90   : > { %v165_v5 = vpop.f32.mrf.mxu0 }
  0x91   : > { %168 = vst.msk [vmem:[%s138_s25] sm:$0xff] %vm144_vm0, %v165_v5 }
  0x92 PF: > { %s12_s9 = sadd.s32 1, %s246_s9  }
  0x93   : > { %p9_p4 = scmp.ge.s32.totalorder %s12_s9, 4  }
  0x95   :  { %11 = sbr.rel (!%p9_p4) target bundleno = 1 (0x1), region = 58 }

// kernel: decoder_layer_forward.9
= control target key start
LH: loop header
LB: loop body
LE: loop exit
PB: predicated region body
PF: predicated region fallthrough
CT: control target
= control target key end

     0   :  { %10 = vsyncpa [#allocation3], 0  ;;  %s506_s15 = smov 0   ;;  %s532_s0 = inlined_call_operand.vmem [shape: f32[16,32], index: 0, kind: input, shape index: {}]   ;;  %s533_s1 = inlined_call_operand.hbm [shape: f32[32,96], index: 1, kind: input, shape index: {}]   ;;  %s534_s2 = inlined_call_operand.vmem [shape: f32[16,32], index: 2, kind: output, shape index: {0}]   ;;  %s535_s3 = inlined_call_operand.vmem [shape: f32[16,32], index: 3, kind: output, shape index: {1}]   ;;  %s536_s4 = inlined_call_operand.vmem [shape: f32[16,32], index: 4, kind: output, shape index: {2}]  }
   0x1 LB: > { %s157_s18 = sshll.u32 %s533_s1, 4  ;;  %s397_s19 = sadd.s32 4294967295, %s474_s15   ;;  %s474_s15 = sphi %s506_s15, %s16_s15   ;;  %s158_s18 = int_to_ptr.hbm [resolvable:$true] %s157_s18 }
   0x2   : > { %p399_p0 = scmp.ge.s32.totalorder %s474_s15, 1  ;;  %p146_p1 = scmp.lt.s32.totalorder %s474_s15, 3 }
   0x3   : > { %p419_p2 = scmp.eq.s32.totalorder %s397_s19, 0  ;;  %s476_s20 = smov [#allocation2]  }
   0x4   : > { %p147_p3 = pnand %p399_p0, %p146_p1  ;;  %s159_s21 = sshll.u32 %s476_s20, 4  ;;  %s160_s21 = int_to_ptr.vmem [resolvable:$true] %s159_s21 }
   0x5   : > { %s477_s22 = smov 128   ;;  %s478_s23 = smov 8  }
   0x6   : > { %p415_p4 = pneg %p147_p3  ;;  %182 = sbr.rel (%p147_p3) target bundleno = 270 (0x10e), region = 28 }
   0x8   : > { %p416_p5 = pnand %p419_p2, %p415_p4 }
   0xa   : > { %418 = dma.hbm_to_vmem [thread:$0]  (!%p416_p5), %s158_s18, 512, %s160_s21, [#allocation3], %s477_s22, %s477_s22, %s478_s23  }
   0xb   : > { %469 = dma.done.wait (%p419_p2), [#allocation3], 512  }
   0xc   : > { %471 = vsyncadd (%p419_p2), [#allocation3], 4294966784  ;;  %p215_p6 = scmp.lt.s32.totalorder %s397_s19, 1  ;;  %v235_v0 = vld [vmem:[#allocation2 + $0x18] sm:$0xff]  ;;  %v234_v1 = vld [vmem:[#allocation2 + $0x10] sm:$0xff]  ;;  %vm236_vm0 = vcmask 261120  }
   0xd   : > { %252 = vmatpush.msra.mxu0 %v235_v0  ;;  %v233_v2 = vld [vmem:[#allocation2 + $0x8] sm:$0xff]  ;;  %v232_v3 = vld [vmem:[#allocation2] sm:$0xff]  ;;  %s479_s5 = smov 96   ;;  %s480_s6 = smov 64  }
   0xe   : > { %s538_s19 = smov (!%p215_p6, %s397_s19), 1 }
   0xf   : > { %s404_s24 = sshll.u32 %s538_s19, 3  ;;  %253 = vmatpush.msra.mxu0 %v234_v1 }
  0x10   : > { %s218_s27 = scalar_lea.vmem %s532_s0, %s404_s24  ;;  %s222_s30 = scalar_lea.vmem %s534_s2, %s404_s24 }
  0x11   : > { %254 = vmatpush.msra.mxu0 %v233_v2  ;;  %v231_v4 = vld [vmem:[%s218_s27] sm:$0xff]  ;;  %s226_s9 = scalar_lea.vmem %s535_s3, %s404_s24  ;;  %s230_s12 = scalar_lea.vmem %s536_s4, %s404_s24 }
  0x13   : > { %255 = vmatpush.msra.mxu0 %v232_v3 }
  0x14   : > { %408 = vmatmul.msk.f32.vlgmr.msra.gmra.mxu0 %vm236_vm0, %v231_v4 }
  0x91   : > { %v257_v5 = vpop.f32.mrf.mxu0 }
  0x92   : > { %260 = vst.msk [vmem:[%s222_s30] sm:$0xff] %vm236_vm0, %v257_v5  ;;  %262 = vrot.lane.b32.xlu0 %v257_v5, %s479_s5 }
  0x9a   : > { %266 = vrot.lane.b32.xlu0 %v257_v5, %s480_s6 }
 0x104   : > { %v263_v6 = vpop.permute.xlu0 %262 }
 0x105   : > { %265 = vst.msk [vmem:[%s226_s9] sm:$0xff] %vm236_vm0, %v263_v6 }
 0x10c   : > { %v267_v7 = vpop.permute.xlu0 %266 }
 0x10d   : > { %269 = vst.msk [vmem:[%s230_s12] sm:$0xff] %vm236_vm0, %v267_v7 }
 0x10e PF: > { %s16_s15 = sadd.s32 1, %s474_s15  }
 0x10f   : > { %p13_p7 = scmp.ge.s32.totalorder %s16_s15, 4  }
 0x111   :  { %15 = sbr.rel (!%p13_p7) target bundleno = 1 (0x1), region = 87 }
 0x116   :  { %317 = vsyncpa [#allocation3], 1 }
 0x117   :  { %319 = vsyncpa [#allocation3 + $0x1], 1 }

// kernel: decoder_layer_forward.12
= control target key start
LH: loop header
LB: loop body
LE: loop exit
PB: predicated region body
PF: predicated region fallthrough
CT: control target
= control target key end

     0   :  { %12 = vsyncpa [#allocation3], 0  ;;  %s751_s0 = inlined_call_operand.vmem [shape: f32[16,32], index: 0, kind: input, shape index: {}]   ;;  %s752_s1 = inlined_call_operand.hbm [shape: f32[32,32], index: 1, kind: input, shape index: {}]   ;;  %s753_s2 = inlined_call_operand.vmem [shape: f32[16,32], index: 2, kind: input, shape index: {}]   ;;  %s754_s3 = inlined_call_operand.vmem [shape: f32[1,32], index: 3, kind: input, shape index: {}]   ;;  %s755_s4 = inlined_call_operand.vmem [shape: f32[1,32], index: 4, kind: input, shape index: {}]   ;;  %s756_s5 = inlined_call_operand.vmem [shape: f32[1,32], index: 5, kind: input, shape index: {}]   ;;  %s757_s6 = inlined_call_operand.hbm [shape: f32[1,32], index: 6, kind: input, shape index: {}]   ;;  %s758_s7 = inlined_call_operand.vmem [shape: f32[16,32], index: 7, kind: output, shape index: {}]  }
   0x1   :  { %13 = vsyncpa [#allocation5], 0  ;;  %s692_s24 = smov 0  }
   0x2 LB: > { %s218_s27 = sshll.u32 %s752_s1, 4  ;;  %s514_s28 = sadd.s32 4294967295, %s645_s24   ;;  %s645_s24 = sphi %s692_s24, %s19_s24   ;;  %s219_s27 = int_to_ptr.hbm [resolvable:$true] %s218_s27 }
   0x3   : > { %p516_p0 = scmp.ge.s32.totalorder %s645_s24, 1  ;;  %p207_p1 = scmp.lt.s32.totalorder %s645_s24, 3 }
   0x4   : > { %p544_p2 = scmp.eq.s32.totalorder %s514_s28, 0  ;;  %s647_s30 = smov [#allocation2]  }
   0x5   : > { %p703_p3 = pnand %p516_p0, %p207_p1  ;;  %s220_s8 = sshll.u32 %s647_s30, 4  ;;  %s221_s8 = int_to_ptr.vmem [resolvable:$true] %s220_s8 }
   0x6   : > { %s242_s11 = sshll.u32 %s757_s6, 4  ;;  %s648_s12 = smov [#allocation4]   ;;  %s243_s11 = int_to_ptr.hbm [resolvable:$true] %s242_s11 }
   0x7   : > { %p537_p4 = pneg %p703_p3  ;;  %s244_s13 = sshll.u32 %s648_s12, 4  ;;  %s245_s13 = int_to_ptr.vmem [resolvable:$true] %s244_s13 }
   0x8   : > { %s649_s14 = smov 128   ;;  %s650_s15 = smov 8  }
   0x9   : > { %p538_p5 = pnand %p544_p2, %p537_p4  ;;  %271 = sbr.rel (%p703_p3) target bundleno = 692 (0x2b4), region = 48 }
   0xb   : > { %540 = dma.hbm_to_vmem [thread:$0]  (!%p538_p5), %s219_s27, 512, %s221_s8, [#allocation3], %s649_s14, %s649_s14, %s650_s15  }
   0xc   : > { %543 = dma.hbm_to_vmem [thread:$0]  (!%p538_p5), %s243_s11, 16, %s245_s13, [#allocation5]  }
   0xe   : > { %636 = dma.done.wait (%p544_p2), [#allocation3], 512  }
   0xf   : > { %638 = vsyncadd (%p544_p2), [#allocation3], 4294966784 }
  0x10   : > { %640 = dma.done.wait (%p544_p2), [#allocation5], 16  }
  0x11   : > { %642 = vsyncadd (%p544_p2), [#allocation5], 4294967280  ;;  %p311_p6 = scmp.lt.s32.totalorder %s514_s28, 1  ;;  %v328_v0 = vld [vmem:[#allocation2 + $0x18] sm:$0xff]  ;;  %v327_v1 = vld [vmem:[#allocation2 + $0x10] sm:$0xff]  ;;  %vm329_vm0 = vcmask 261120  }
  0x12   : > { %345 = vmatpush.msra.mxu0 %v328_v0  ;;  %v326_v2 = vld [vmem:[#allocation2 + $0x8] sm:$0xff]  ;;  %v325_v3 = vld [vmem:[#allocation2] sm:$0xff]  ;;  %v651_v9 = vmov 32.0  }
  0x13   : > { %s761_s28 = smov (!%p311_p6, %s514_s28), 1  ;;  %565 = vrcp.f32 %v651_v9  ;;  %v561_v30 = vld [vmem:[%s754_s3] ss:$0 sm:$0xff] }
  0x14   : > { %s719_s16 = sshll.u32 %s761_s28, 3  ;;  %346 = vmatpush.msra.mxu0 %v327_v1  ;;  %v562_v33 = vld [vmem:[%s755_s4] ss:$0 sm:$0xff] }
  0x15   : > { %s314_s19 = scalar_lea.vmem %s751_s0, %s719_s16  ;;  %s318_s22 = scalar_lea.vmem %s753_s2, %s719_s16  ;;  %v563_v52 = vld [vmem:[%s756_s5] ss:$0 sm:$0xff] }
  0x16   : > { %347 = vmatpush.msra.mxu0 %v326_v2  ;;  %v324_v4 = vld [vmem:[%s314_s19] sm:$0xff]  ;;  %s322_s9 = scalar_lea.vmem %s758_s7, %s719_s16 }
  0x17   : > { %v323_v5 = vld [vmem:[%s318_s22] sm:$0xff] }
  0x18   : > { %348 = vmatpush.msra.mxu0 %v325_v3  ;;  %v564_v54 = vld [vmem:[#allocation4] ss:$0 sm:$0xff] }
  0x19   : > { %526 = vmatmul.msk.f32.vlgmr.msra.gmra.mxu0 %vm329_vm0, %v324_v4  ;;  %v566_v10 = vpop.eup %565 }
  0x1a   : > { %v360_v11 = vmul.f32 32.0, %v566_v10  ;;  %vm364_vm1 = vweird.f32 %v566_v10 }
  0x1c   : > { %v361_v12 = vsub.f32 1.0, %v360_v11 }
  0x1e   : > { %v362_v13 = vmul.f32 %v566_v10, %v361_v12 }
  0x20   : > { %v363_v14 = vadd.f32 %v566_v10, %v362_v13 }
  0x22   : > { %v365_v15 = vsel %vm364_vm1, %v566_v10, %v363_v14 }
  0x96   : > { %v350_v6 = vpop.f32.mrf.mxu0 }
  0x97   : > { %v353_v7 = vadd.f32 %v350_v6, %v323_v5 }
  0x99   : > { %v356_v8 = vsel %vm329_vm0, %v353_v7, 0.0 }
  0x9a   : > { %357 = vadd.xlane.f32.xlu0 %v356_v8 }
 0x10d   : > { %v358_v16 = vpop.xlane.xlu0 %357 }
 0x10e   : > { %v366_v17 = vmul.f32 %v365_v15, %v358_v16 }
 0x110   : > { %v367_v18 = vsub.f32 %v353_v7, %v366_v17 }
 0x112   : > { %v368_v19 = vmul.f32 %v367_v18, %v367_v18 }
 0x114   : > { %v369_v20 = vsel %vm329_vm0, %v368_v19, 0.0 }
 0x115   : > { %370 = vadd.xlane.f32.xlu0 %v369_v20 }
 0x188   : > { %v371_v21 = vpop.xlane.xlu0 %370 }
 0x189   : > { %v372_v22 = vmul.f32 %v371_v21, %v365_v15 }
 0x18b   : > { %v373_v23 = vadd.f32 1e-05, %v372_v22 }
 0x18d   : > { %567 = vrsqrt.f32 %v373_v23  ;;  %vm380_vm3 = vweird.f32 %v373_v23 }
 0x193   : > { %v568_v24 = vpop.eup %567 }
 0x194   : > { %v375_v25 = vmul.f32 %v568_v24, %v373_v23  ;;  %vm381_vm2 = vweird.f32 %v568_v24 }
 0x195   : > { %vm382_vm4 = vmor %vm380_vm3, %vm381_vm2 }
 0x196   : > { %v376_v26 = vmul.f32 %v568_v24, %v375_v25 }
 0x198   : > { %v377_v27 = vmul.f32 0.5, %v376_v26 }
 0x19a   : > { %v378_v28 = vsub.f32 1.5, %v377_v27 }
 0x19c   : > { %v379_v29 = vmul.f32 %v568_v24, %v378_v28 }
 0x19e   : > { %v383_v31 = vsel %vm382_vm4, %v568_v24, %v379_v29 }
 0x19f   : > { %v384_v32 = vmul.f32 %v383_v31, %v367_v18 }
 0x1a1   : > { %v388_v34 = vmul.f32 %v561_v30, %v384_v32 }
 0x1a3   : > { %v392_v35 = vadd.f32 %v562_v33, %v388_v34 }
 0x1a5   : > { %v393_v36 = vadd.f32 %v392_v35, %v323_v5 }
 0x1a7   : > { %v396_v37 = vsel %vm329_vm0, %v393_v36, 0.0 }
 0x1a8   : > { %397 = vadd.xlane.f32.xlu1 %v396_v37 }
 0x21b   : > { %v398_v38 = vpop.xlane.xlu1 %397 }
 0x21c   : > { %v399_v39 = vmul.f32 %v398_v38, %v365_v15 }
 0x21e   : > { %v400_v40 = vsub.f32 %v393_v36, %v399_v39 }
 0x220   : > { %v401_v41 = vmul.f32 %v400_v40, %v400_v40 }
 0x222   : > { %v402_v42 = vsel %vm329_vm0, %v401_v41, 0.0 }
 0x223   : > { %403 = vadd.xlane.f32.xlu1 %v402_v42 }
 0x296   : > { %v404_v43 = vpop.xlane.xlu1 %403 }
 0x297   : > { %v405_v44 = vmul.f32 %v404_v43, %v365_v15 }
 0x299   : > { %v406_v45 = vadd.f32 1e-05, %v405_v44 }
 0x29b   : > { %569 = vrsqrt.f32 %v406_v45  ;;  %vm413_vm6 = vweird.f32 %v406_v45 }
 0x2a1   : > { %v570_v46 = vpop.eup %569 }
 0x2a2   : > { %v408_v47 = vmul.f32 %v570_v46, %v406_v45  ;;  %vm414_vm5 = vweird.f32 %v570_v46 }
 0x2a3   : > { %vm415_vm7 = vmor %vm413_vm6, %vm414_vm5 }
 0x2a4   : > { %v409_v48 = vmul.f32 %v570_v46, %v408_v47 }
 0x2a6   : > { %v410_v49 = vmul.f32 0.5, %v409_v48 }
 0x2a8   : > { %v411_v50 = vsub.f32 1.5, %v410_v49 }
 0x2aa   : > { %v412_v51 = vmul.f32 %v570_v46, %v411_v50 }
 0x2ac   : > { %v416_v53 = vsel %vm415_vm7, %v570_v46, %v412_v51 }
 0x2ad   : > { %v417_v55 = vmul.f32 %v416_v53, %v400_v40 }
 0x2af   : > { %v421_v56 = vmul.f32 %v563_v52, %v417_v55 }
 0x2b1   : > { %v425_v57 = vadd.f32 %v564_v54, %v421_v56 }
 0x2b3   : > { %426 = vst.msk [vmem:[%s322_s9] sm:$0xff] %vm329_vm0, %v425_v57 }
 0x2b4 PF: > { %s19_s24 = sadd.s32 1, %s645_s24  }
 0x2b5   : > { %p16_p7 = scmp.ge.s32.totalorder %s19_s24, 4  }
 0x2b7   :  { %18 = sbr.rel (!%p16_p7) target bundleno = 2 (0x2), region = 90 }
 0x2bc   :  { %446 = vsyncpa [#allocation3], 1 }
 0x2bd   :  { %448 = vsyncpa [#allocation3 + $0x1], 1 }
 0x2be   :  { %449 = vsyncpa [#allocation5], 1 }

// kernel: decoder_layer_forward.11
= control target key start
LH: loop header
LB: loop body
LE: loop exit
PB: predicated region body
PF: predicated region fallthrough
CT: control target
= control target key end

     0   :  { %11 = vsyncpa [#allocation3], 0  ;;  %s1381_s21 = smov 0   ;;  %s1651_s0 = inlined_call_operand.vmem [shape: f32[2,8,32], index: 0, kind: input, shape index: {}]   ;;  %s1652_s1 = inlined_call_operand.vmem [shape: f32[2,8,32], index: 1, kind: input, shape index: {}]   ;;  %s1653_s2 = inlined_call_operand.vmem [shape: f32[2,8,32], index: 2, kind: input, shape index: {}]   ;;  %s1654_s3 = inlined_call_operand.vmem [shape: f32[2,8,32], index: 3, kind: input, shape index: {}]   ;;  %s1655_s4 = inlined_call_operand.vmem [shape: f32[4,8], index: 4, kind: input, shape index: {}]   ;;  %s1656_s5 = inlined_call_operand.hbm [shape: f32[4,8], index: 5, kind: input, shape index: {}]   ;;  %s1657_s6 = inlined_call_operand.vmem [shape: f32[2,8,32], index: 6, kind: output, shape index: {}]  }
   0x1 LB: > { %s1194_s22 = sadd.s32 4294967295, %s1323_s21   ;;  %p1196_p0 = scmp.ge.s32.totalorder %s1323_s21, 1  ;;  %s1323_s21 = sphi %s1381_s21, %s17_s21  }
   0x2   : > { %p194_p1 = scmp.lt.s32.totalorder %s1323_s21, 3  ;;  %s209_s25 = sshll.u32 %s1656_s5, 4  ;;  %s210_s25 = int_to_ptr.hbm [resolvable:$true] %s209_s25 }
   0x3   : > { %p1236_p3 = scmp.eq.s32.totalorder %s1194_s22, 0  ;;  %s1325_s26 = smov [#allocation2]  }
   0x4   : > { %p195_p2 = pnand %p1196_p0, %p194_p1  ;;  %s211_s27 = sshll.u32 %s1325_s26, 4  ;;  %s212_s27 = int_to_ptr.vmem [resolvable:$true] %s211_s27 }
   0x6   : > { %p1232_p4 = pneg %p195_p2  ;;  %252 = sbr.rel (%p195_p2) target bundleno = 1713 (0x6b1), region = 44 }
   0x8   : > { %p1233_p5 = pnand %p1236_p3, %p1232_p4 }
   0xa   : > { %1235 = dma.hbm_to_vmem [thread:$0]  (!%p1233_p5), %s210_s25, 64, %s212_s27, [#allocation3]  }
   0xb   : > { %1318 = dma.done.wait (%p1236_p3), [#allocation3], 64  }
   0xc   : > { %1320 = vsyncadd (%p1236_p3), [#allocation3], 4294967232  ;;  %p293_p6 = scmp.lt.s32.totalorder %s1194_s22, 1  ;;  %vm325_vm0 = vcmask 64512   ;;  %v1402_v0 = vld [vmem:[#allocation2] sm:$0xf] }
   0xd   : > { %v513_v3 = vperm.slane %v1402_v0, 1  ;;  %v322_v4 = vperm.slane %v1402_v0, 0  ;;  %s1326_s11 = smov 120   ;;  %s1327_s12 = smov 8   ;;  %v1428_v12 = vld [vmem:[%s1655_s4] sm:$0xf] }
   0xe   : > { %s1659_s22 = smov (!%p293_p6, %s1194_s22), 1  ;;  %s1328_s13 = smov 1   ;;  %v319_v14 = vperm.slane %v1428_v12, 0  ;;  %vm356_vm1 = vcmask 7168   ;;  %v506_v21 = vperm.slane %v1428_v12, 1  ;;  %vm373_vm2 = vcmask 15360  }
   0xf   : > { %s1392_s28 = sshll.u32 %s1659_s22, 3  ;;  %515 = vrot.lane.b32.xlu0 %v513_v3, %s1327_s12  ;;  %s1329_s19 = smov 121   ;;  %vm418_vm3 = vcmask 1040384   ;;  %vm381_vm4 = vcmask 23552   ;;  %vm420_vm5 = vcmask 1041408   ;;  %vm389_vm6 = vcmask 31744  }
  0x10   : > { %s296_s7 = scalar_lea.vmem %s1651_s0, %s1392_s28  ;;  %s308_s10 = scalar_lea.vmem %s1654_s3, %s1392_s28  ;;  %vm397_vm7 = vcmask 39936   ;;  %vm422_vm8 = vcmask 1042432   ;;  %vm424_vm9 = vcmask 1043456   ;;  %vm405_vm10 = vcmask 48128  }
  0x11   : > { %v1404_v1 = vld [vmem:[%s296_s7] sm:$0xff]  ;;  %s300_s16 = scalar_lea.vmem %s1652_s1, %s1392_s28  ;;  %s1330_s20 = smov 123   ;;  %vm426_vm11 = vcmask 1044480   ;;  %vm413_vm12 = vcmask 56320   ;;  %vm428_vm13 = vcmask 1045504   ;;  %vm430_vm14 = vcmask 1046528  }
  0x12   : > { %v1406_v2 = vld [vmem:[%s308_s10] sm:$0xff]  ;;  %v323_v5 = vadd.f32 %v322_v4, %v1404_v1  ;;  %v320_v15 = vadd.f32 %v319_v14, %v1404_v1  ;;  %s1331_s22 = smov 124   ;;  %s1332_s23 = smov 2  }
  0x13   : > { %1206 = vmatpush.xpose.msk.msra.mxu0 %vm325_vm0, %v1406_v2  ;;  %523 = vrot.lane.b32.xlu1 %v1406_v2, %s1326_s11  ;;  %v1430_v13 = vld [vmem:[%s300_s16] sm:$0xff]  ;;  %s1333_s24 = smov 122   ;;  %s1334_s25 = smov 3  }
  0x14   : > { %v324_v6 = vmul.f32 0.35355338, %v323_v5  ;;  %1208 = vmatpush.xpose.msk.msra.mxu1 %vm325_vm0, %v1430_v13  ;;  %v321_v17 = vmul.f32 0.35355338, %v320_v15  ;;  %s1335_s26 = smov 5   ;;  %s1336_s27 = smov 125  }
  0x15   : > { %s1337_s29 = smov 6   ;;  %s1338_s30 = smov 126  }
  0x16   : > { %1207 = vmatmul.msk.f32.vlgmr.msra.gmra.mxu0 %vm325_vm0, %v324_v6  ;;  %s1339_s7 = smov 127   ;;  %s1340_s8 = smov 4   ;;  %v703_v6 = vperm.slane %v1402_v0, 2 }
  0x17   : > { %1209 = vmatmul.msk.f32.vlgmr.msra.gmra.mxu1 %vm325_vm0, %v321_v17  ;;  %s1341_s9 = smov 7   ;;  %s304_s15 = scalar_lea.vmem %s1653_s2, %s1392_s28 }
  0x18   : > { %v1462_v29 = vld [vmem:[%s304_s15] sm:$0xff]  ;;  %s1342_s16 = smov 16   ;;  %s1343_s17 = smov 104  }
  0x19   : > { %485 = vmatpush.msra.mxu2 %v1462_v29  ;;  %s1344_s18 = smov 24   ;;  %s1345_s10 = smov 112  }
  0x81   : > { %v516_v8 = vpop.permute.xlu0 %515 }
  0x82   : > { %v518_v9 = vadd.f32 %v516_v8, %v1404_v1 }
  0x84   : > { %v519_v10 = vmul.f32 0.35355338, %v518_v9 }
  0x85   : > { %v524_v7 = vpop.permute.xlu1 %523 }
  0x86   : > { %1211 = vmatpush.xpose.msk.msra.mxu3 %vm325_vm0, %v524_v7  ;;  %521 = vrot.lane.b32.xlu1 %v519_v10, %s1326_s11  ;;  %v892_v10 = vperm.slane %v1402_v0, 3 }
  0x93   : > { %v349_v11 = vpop.f32.mrf.mxu0 }
  0x94   : > { %353 = vrot.lane.b32.xlu0 %v349_v11, %s1328_s13  ;;  %v455_v51 = vpop.f32.mrf.mxu1 }
  0xf8   : > { %v522_v16 = vpop.permute.xlu1 %521 }
  0xf9   : > { %1212 = vmatmul.msk.f32.vlgmr.msra.gmra.mxu3 %vm325_vm0, %v522_v16 }
 0x106   : > { %v354_v18 = vpop.permute.xlu0 %353 }
 0x107   : > { %v357_v19 = vsel %vm356_vm1, 0.0, %v354_v18 }
 0x108   : > { %367 = vrot.lane.b32.xlu0 %v357_v19, %s1329_s19  ;;  %383 = vrot.lane.b32.xlu1 %v357_v19, %s1330_s20  ;;  %v362_v20 = vrot.slane %v357_v19, 1 }
 0x109   : > { %359 = vrot.lane.b32.xlu2 %v357_v19, %s1326_s11 }
 0x110   : > { %391 = vrot.lane.b32.xlu0 %v357_v19, %s1331_s22  ;;  %370 = vrot.lane.b32.xlu1 %v362_v20, %s1332_s23 }
 0x111   : > { %375 = vrot.lane.b32.xlu2 %v357_v19, %s1333_s24 }
 0x118   : > { %378 = vrot.lane.b32.xlu0 %v362_v20, %s1334_s25  ;;  %394 = vrot.lane.b32.xlu1 %v362_v20, %s1335_s26 }
 0x119   : > { %399 = vrot.lane.b32.xlu2 %v357_v19, %s1336_s27 }
 0x120   : > { %402 = vrot.lane.b32.xlu0 %v362_v20, %s1337_s29  ;;  %407 = vrot.lane.b32.xlu1 %v357_v19, %s1338_s30 }
 0x121   : > { %363 = vrot.lane.b32.xlu2 %v362_v20, %s1328_s13 }
 0x128   : > { %415 = vrot.lane.b32.xlu0 %v357_v19, %s1339_s7  ;;  %508 = vrot.lane.b32.xlu1 %v506_v21, %s1327_s12 }
 0x129   : > { %386 = vrot.lane.b32.xlu2 %v362_v20, %s1340_s8 }
 0x130   : > { %618 = vrot.lane.b32.xlu0 %v1430_v13, %s1326_s11 }
 0x131   : > { %410 = vrot.lane.b32.xlu2 %v362_v20, %s1341_s9 }
 0x163   : > { %v360_v22 = vpop.permute.xlu2 %359 }
 0x16b   : > { %v376_v23 = vpop.permute.xlu2 %375 }
 0x173   : > { %v400_v24 = vpop.permute.xlu2 %399 }
 0x17a   : > { %v368_v25 = vpop.permute.xlu0 %367  ;;  %v384_v26 = vpop.permute.xlu1 %383 }
 0x17b   : > { %v364_v27 = vpop.permute.xlu2 %363 }
 0x17c   : > { %v546_v28 = vpop.f32.mrf.mxu3  ;;  %v366_v33 = vsel %vm356_vm1, %v360_v22, %v364_v27 }
 0x17d   : > { %550 = vrot.lane.b32.xlu0 %v546_v28, %s1328_s13 }
 0x182   : > { %v392_v30 = vpop.permute.xlu0 %391  ;;  %v371_v31 = vpop.permute.xlu1 %370 }
 0x183   : > { %v374_v32 = vsel %vm373_vm2, %v368_v25, %v371_v31  ;;  %v387_v34 = vpop.permute.xlu2 %386 }
 0x184   : > { %v419_v35 = vsel %vm418_vm3, %v366_v33, %v374_v32  ;;  %v390_v40 = vsel %vm389_vm6, %v384_v26, %v387_v34 }
 0x18a   : > { %v379_v36 = vpop.permute.xlu0 %378  ;;  %v395_v37 = vpop.permute.xlu1 %394 }
 0x18b   : > { %v382_v38 = vsel %vm381_vm4, %v376_v23, %v379_v36  ;;  %v398_v41 = vsel %vm397_vm7, %v392_v30, %v395_v37  ;;  %v411_v43 = vpop.permute.xlu2 %410 }
 0x18c   : > { %v421_v39 = vsel %vm420_vm5, %v419_v35, %v382_v38 }
 0x18d   : > { %v423_v42 = vsel %vm422_vm8, %v421_v39, %v390_v40 }
 0x18e   : > { %v425_v45 = vsel %vm424_vm9, %v423_v42, %v398_v41 }
 0x192   : > { %v403_v44 = vpop.permute.xlu0 %402  ;;  %v408_v46 = vpop.permute.xlu1 %407 }
 0x193   : > { %v406_v47 = vsel %vm405_vm10, %v400_v24, %v403_v44  ;;  %v414_v49 = vsel %vm413_vm12, %v408_v46, %v411_v43  ;;  %v696_v46 = vperm.slane %v1428_v12, 2 }
 0x194   : > { %v427_v48 = vsel %vm426_vm11, %v425_v45, %v406_v47 }
 0x195   : > { %v429_v50 = vsel %vm428_vm13, %v427_v48, %v414_v49 }
 0x19a   : > { %v416_v52 = vpop.permute.xlu0 %415  ;;  %v509_v53 = vpop.permute.xlu1 %508 }
 0x19b   : > { %v431_v54 = vsel %vm430_vm14, %v429_v50, %v416_v52  ;;  %v511_v55 = vadd.f32 %v509_v53, %v1404_v1 }
 0x19c   : > { %v456_v56 = vadd.f32 %v455_v51, %v431_v54 }
 0x19d   : > { %v512_v57 = vmul.f32 0.35355338, %v511_v55 }
 0x19e   : > { %v458_v58 = vsel %vm325_vm0, %v456_v56, -inf }
 0x19f   : > { %459 = vmax.xlane.f32.xlu2 %v458_v58  ;;  %616 = vrot.lane.b32.xlu1 %v512_v57, %s1326_s11  ;;  %v885_v57 = vperm.slane %v1428_v12, 3 }
 0x1a2   : > { %v619_v59 = vpop.permute.xlu0 %618 }
 0x1a3   : > { %1213 = vmatpush.xpose.msk.msrb.mxu2 %vm325_vm0, %v619_v59 }
 0x1ef   : > { %v551_v60 = vpop.permute.xlu0 %550 }
 0x1f0   : > { %v553_v61 = vsel %vm356_vm1, 0.0, %v551_v60 }
 0x1f1   : > { %v558_v62 = vrot.slane %v553_v61, 1  ;;  %584 = vrot.lane.b32.xlu0 %v553_v61, %s1331_s22  ;;  %555 = vrot.lane.b32.xlu1 %v553_v61, %s1326_s11 }
 0x1f3   : > { %580 = vrot.lane.b32.xlu2 %v558_v62, %s1340_s8 }
 0x1f9   : > { %591 = vrot.lane.b32.xlu0 %v553_v61, %s1336_s27  ;;  %563 = vrot.lane.b32.xlu1 %v553_v61, %s1329_s19 }
 0x1fb   : > { %605 = vrot.lane.b32.xlu2 %v553_v61, %s1339_s7 }
 0x201   : > { %559 = vrot.lane.b32.xlu0 %v558_v62, %s1328_s13  ;;  %570 = vrot.lane.b32.xlu1 %v553_v61, %s1333_s24 }
 0x209   : > { %566 = vrot.lane.b32.xlu0 %v558_v62, %s1332_s23  ;;  %577 = vrot.lane.b32.xlu1 %v553_v61, %s1330_s20 }
 0x211   : > { %573 = vrot.lane.b32.xlu0 %v558_v62, %s1334_s25  ;;  %587 = vrot.lane.b32.xlu1 %v558_v62, %s1335_s26  ;;  %v617_v7 = vpop.permute.xlu1 %616 }
 0x212   : > { %v460_v63 = vpop.xlane.xlu2 %459 }
 0x213   : > { %v461_v3 = vsub.f32 %v456_v56, %v460_v63 }
 0x215   : > { %v462_v4 = vmul.f32 1.442695, %v461_v3 }
 0x217   : > { %1267 = vpow2.f32 %v462_v4 }
 0x219   : > { %598 = vrot.lane.b32.xlu0 %v553_v61, %s1338_s30  ;;  %594 = vrot.lane.b32.xlu1 %v558_v62, %s1337_s29 }
 0x21d   : > { %v1499_v5 = vpop.eup %1267 }
 0x21e   : > { %1210 = vmatmul.msk.f32.vlgmr.msra.gmra.mxu2 %vm325_vm0, %v1499_v5 }
 0x221   : > { %705 = vrot.lane.b32.xlu0 %v703_v6, %s1342_s16  ;;  %601 = vrot.lane.b32.xlu1 %v558_v62, %s1341_s9 }
 0x226   : > { %1214 = vmatmul.msk.f32.vlgmr.msrb.gmra.mxu2 %vm325_vm0, %v617_v7 }
 0x229   : > { %654 = vrot.lane.b32.xlu0 %v1462_v29, %s1326_s11  ;;  %894 = vrot.lane.b32.xlu1 %v892_v10, %s1344_s18 }
 0x231   : > { %902 = vrot.lane.b32.xlu0 %v1406_v2, %s1343_s17  ;;  %713 = vrot.lane.b32.xlu1 %v1406_v2, %s1345_s10 }
 0x24d   : > { %v581_v28 = vpop.permute.xlu2 %580 }
 0x255   : > { %v606_v41 = vpop.permute.xlu2 %605 }
 0x263   : > { %v585_v8 = vpop.permute.xlu0 %584  ;;  %v556_v9 = vpop.permute.xlu1 %555 }
 0x26b   : > { %v592_v11 = vpop.permute.xlu0 %591  ;;  %v564_v14 = vpop.permute.xlu1 %563 }
 0x273   : > { %v560_v15 = vpop.permute.xlu0 %559  ;;  %v571_v16 = vpop.permute.xlu1 %570 }
 0x274   : > { %v562_v2 = vsel %vm356_vm1, %v556_v9, %v560_v15 }
 0x27b   : > { %v567_v17 = vpop.permute.xlu0 %566  ;;  %v578_v18 = vpop.permute.xlu1 %577 }
 0x27c   : > { %v569_v25 = vsel %vm373_vm2, %v564_v14, %v567_v17  ;;  %v583_v31 = vsel %vm389_vm6, %v578_v18, %v581_v28 }
 0x27d   : > { %v608_v27 = vsel %vm418_vm3, %v562_v2, %v569_v25 }
 0x283   : > { %v574_v19 = vpop.permute.xlu0 %573  ;;  %v588_v20 = vpop.permute.xlu1 %587 }
 0x284   : > { %v576_v26 = vsel %vm381_vm4, %v571_v16, %v574_v19  ;;  %v590_v36 = vsel %vm397_vm7, %v585_v8, %v588_v20 }
 0x285   : > { %v609_v30 = vsel %vm420_vm5, %v608_v27, %v576_v26 }
 0x286   : > { %v610_v33 = vsel %vm422_vm8, %v609_v30, %v583_v31 }
 0x287   : > { %v611_v38 = vsel %vm424_vm9, %v610_v33, %v590_v36 }
 0x28b   : > { %v599_v21 = vpop.permute.xlu0 %598  ;;  %v595_v22 = vpop.permute.xlu1 %594 }
 0x28c   : > { %v597_v35 = vsel %vm405_vm10, %v592_v11, %v595_v22 }
 0x28d   : > { %v612_v39 = vsel %vm426_vm11, %v611_v38, %v597_v35 }
 0x293   : > { %v706_v23 = vpop.permute.xlu0 %705  ;;  %v602_v32 = vpop.permute.xlu1 %601 }
 0x294   : > { %v708_v0 = vadd.f32 %v706_v23, %v1404_v1  ;;  %v604_v37 = vsel %vm413_vm12, %v599_v21, %v602_v32 }
 0x295   : > { %v613_v40 = vsel %vm428_vm13, %v612_v39, %v604_v37 }
 0x296   : > { %v709_v24 = vmul.f32 0.35355338, %v708_v0  ;;  %v614_v42 = vsel %vm430_vm14, %v613_v40, %v606_v41 }
 0x298   : > { %711 = vrot.lane.b32.xlu1 %v709_v24, %s1345_s10 }
 0x29b   : > { %v895_v47 = vpop.permute.xlu1 %894  ;;  %v655_v51 = vpop.permute.xlu0 %654 }
 0x29c   : > { %v897_v48 = vadd.f32 %v895_v47, %v1404_v1  ;;  %675 = vmatpush.msrb.mxu0 %v655_v51 }
 0x29e   : > { %v898_v49 = vmul.f32 0.35355338, %v897_v48 }
 0x2a0   : > { %698 = vrot.lane.b32.xlu1 %v696_v46, %s1342_s16  ;;  %900 = vrot.lane.b32.xlu0 %v898_v49, %s1343_s17 }
 0x2a1   : > { %v1524_v34 = vpop.f32.mrf.mxu2 }
 0x2a3   : > { %v714_v50 = vpop.permute.xlu1 %713  ;;  %v903_v53 = vpop.permute.xlu0 %902 }
 0x2a4   : > { %1216 = vmatpush.xpose.msk.msrb.mxu1 %vm325_vm0, %v714_v50  ;;  %1221 = vmatpush.xpose.msk.msra.mxu0 %vm325_vm0, %v903_v53 }
 0x2a8   : > { %808 = vrot.lane.b32.xlu1 %v1430_v13, %s1345_s10  ;;  %887 = vrot.lane.b32.xlu0 %v885_v57, %s1344_s18 }
 0x2a9   : > { %v641_v43 = vpop.f32.mrf.mxu2 }
 0x2aa   : > { %v642_v44 = vadd.f32 %v641_v43, %v614_v42 }
 0x2ac   : > { %v644_v45 = vsel %vm325_vm0, %v642_v44, -inf }
 0x2ad   : > { %645 = vmax.xlane.f32.xlu2 %v644_v45 }
 0x2b0   : > { %997 = vrot.lane.b32.xlu1 %v1430_v13, %s1343_s17 }
 0x30a   : > { %v712_v52 = vpop.permute.xlu1 %711 }
 0x30b   : > { %1217 = vmatmul.msk.f32.vlgmr.msrb.gmra.mxu1 %vm325_vm0, %v712_v52 }
 0x312   : > { %v699_v58 = vpop.permute.xlu1 %698  ;;  %v901_v61 = vpop.permute.xlu0 %900 }
 0x313   : > { %v701_v59 = vadd.f32 %v699_v58, %v1404_v1 }
 0x315   : > { %v702_v60 = vmul.f32 0.35355338, %v701_v59 }
 0x317   : > { %806 = vrot.lane.b32.xlu0 %v702_v60, %s1345_s10 }
 0x31a   : > { %v888_v63 = vpop.permute.xlu0 %887  ;;  %v809_v12 = vpop.permute.xlu1 %808 }
 0x31b   : > { %v890_v3 = vadd.f32 %v888_v63, %v1404_v1  ;;  %1218 = vmatpush.xpose.msk.msrb.mxu3 %vm325_vm0, %v809_v12 }
 0x31d   : > { %v891_v4 = vmul.f32 0.35355338, %v890_v3 }
 0x31f   : > { %995 = vrot.lane.b32.xlu2 %v891_v4, %s1343_s17 }
 0x320   : > { %v646_v54 = vpop.xlane.xlu2 %645 }
 0x321   : > { %v647_v55 = vsub.f32 %v642_v44, %v646_v54 }
 0x322   : > { %v998_v1 = vpop.permute.xlu1 %997 }
 0x323   : > { %v648_v13 = vmul.f32 1.442695, %v647_v55  ;;  %1223 = vmatpush.xpose.msk.msra.mxu1 %vm325_vm0, %v998_v1 }
 0x325   : > { %1269 = vpow2.f32 %v648_v13 }
 0x32b   : > { %v1545_v56 = vpop.eup %1269 }
 0x32c   : > { %1215 = vmatmul.msk.f32.vlgmr.msrb.gmra.mxu0 %vm325_vm0, %v1545_v56  ;;  %v650_v42 = vsel %vm325_vm0, %v1545_v56, 0.0 }
 0x334   : > { %1222 = vmatmul.msk.f32.vlgmr.msra.gmra.mxu0 %vm325_vm0, %v901_v61 }
 0x379   : > { %v996_v10 = vpop.permute.xlu2 %995 }
 0x37a   : > { %1224 = vmatmul.msk.f32.vlgmr.msra.gmra.mxu1 %vm325_vm0, %v996_v10 }
 0x388   : > { %v736_v62 = vpop.f32.mrf.mxu1 }
 0x389   : > { %740 = vrot.lane.b32.xlu0 %v736_v62, %s1328_s13  ;;  %v807_v6 = vpop.permute.xlu0 %806 }
 0x38a   : > { %1219 = vmatmul.msk.f32.vlgmr.msrb.gmra.mxu3 %vm325_vm0, %v807_v6 }
 0x3a9   : > { %v1573_v11 = vpop.f32.mrf.mxu0 }
 0x3b1   : > { %v925_v14 = vpop.f32.mrf.mxu0 }
 0x3fb   : > { %v741_v7 = vpop.permute.xlu0 %740 }
 0x3fc   : > { %v743_v8 = vsel %vm356_vm1, 0.0, %v741_v7 }
 0x3fd   : > { %v748_v9 = vrot.slane %v743_v8, 1  ;;  %745 = vrot.lane.b32.xlu0 %v743_v8, %s1326_s11  ;;  %760 = vrot.lane.b32.xlu2 %v743_v8, %s1333_s24 }
 0x3ff   : > { %749 = vrot.lane.b32.xlu1 %v748_v9, %s1328_s13 }
 0x405   : > { %753 = vrot.lane.b32.xlu0 %v743_v8, %s1329_s19  ;;  %767 = vrot.lane.b32.xlu2 %v743_v8, %s1330_s20 }
 0x407   : > { %756 = vrot.lane.b32.xlu1 %v748_v9, %s1332_s23 }
 0x40d   : > { %763 = vrot.lane.b32.xlu0 %v748_v9, %s1334_s25  ;;  %784 = vrot.lane.b32.xlu2 %v748_v9, %s1337_s29  ;;  %v831_v54 = vpop.f32.mrf.mxu3 }
 0x40f   : > { %777 = vrot.lane.b32.xlu1 %v748_v9, %s1335_s26 }
 0x415   : > { %770 = vrot.lane.b32.xlu0 %v748_v9, %s1340_s8  ;;  %788 = vrot.lane.b32.xlu2 %v743_v8, %s1338_s30 }
 0x417   : > { %781 = vrot.lane.b32.xlu1 %v743_v8, %s1336_s27 }
 0x41d   : > { %774 = vrot.lane.b32.xlu0 %v743_v8, %s1331_s22 }
 0x41f   : > { %929 = vrot.lane.b32.xlu1 %v925_v14, %s1328_s13 }
 0x425   : > { %791 = vrot.lane.b32.xlu0 %v748_v9, %s1341_s9 }
 0x457   : > { %v761_v22 = vpop.permute.xlu2 %760 }
 0x45f   : > { %v768_v24 = vpop.permute.xlu2 %767 }
 0x467   : > { %v785_v31 = vpop.permute.xlu2 %784 }
 0x46f   : > { %v746_v15 = vpop.permute.xlu0 %745  ;;  %v789_v41 = vpop.permute.xlu2 %788 }
 0x471   : > { %v750_v16 = vpop.permute.xlu1 %749 }
 0x472   : > { %v752_v19 = vsel %vm356_vm1, %v746_v15, %v750_v16 }
 0x477   : > { %v754_v17 = vpop.permute.xlu0 %753 }
 0x479   : > { %v757_v18 = vpop.permute.xlu1 %756 }
 0x47a   : > { %v759_v20 = vsel %vm373_vm2, %v754_v17, %v757_v18 }
 0x47b   : > { %v798_v21 = vsel %vm418_vm3, %v752_v19, %v759_v20  ;;  %v1020_v19 = vpop.f32.mrf.mxu1 }
 0x47f   : > { %v764_v23 = vpop.permute.xlu0 %763 }
 0x480   : > { %v766_v2 = vsel %vm381_vm4, %v761_v22, %v764_v23 }
 0x481   : > { %v778_v0 = vpop.permute.xlu1 %777  ;;  %v799_v28 = vsel %vm420_vm5, %v798_v21, %v766_v2 }
 0x487   : > { %v771_v25 = vpop.permute.xlu0 %770 }
 0x488   : > { %v773_v27 = vsel %vm389_vm6, %v768_v24, %v771_v25 }
 0x489   : > { %v782_v26 = vpop.permute.xlu1 %781  ;;  %v800_v32 = vsel %vm422_vm8, %v799_v28, %v773_v27  ;;  %v464_v27 = vsel %vm325_vm0, %v1499_v5, 0.0 }
 0x48a   : > { %v787_v35 = vsel %vm405_vm10, %v782_v26, %v785_v31 }
 0x48f   : > { %v775_v30 = vpop.permute.xlu0 %774 }
 0x490   : > { %v780_v33 = vsel %vm397_vm7, %v775_v30, %v778_v0 }
 0x491   : > { %v801_v36 = vsel %vm424_vm9, %v800_v32, %v780_v33  ;;  %v930_v37 = vpop.permute.xlu1 %929 }
 0x492   : > { %v932_v38 = vsel %vm356_vm1, 0.0, %v930_v37  ;;  %v802_v39 = vsel %vm426_vm11, %v801_v36, %v787_v35 }
 0x493   : > { %956 = vrot.lane.b32.xlu2 %v932_v38, %s1330_s20  ;;  %942 = vrot.lane.b32.xlu0 %v932_v38, %s1329_s19  ;;  %v937_v40 = vrot.slane %v932_v38, 1 }
 0x494   : > { %934 = vrot.lane.b32.xlu1 %v932_v38, %s1326_s11 }
 0x497   : > { %v792_v45 = vpop.permute.xlu0 %791 }
 0x498   : > { %v794_v50 = vsel %vm413_vm12, %v789_v41, %v792_v45 }
 0x499   : > { %v803_v52 = vsel %vm428_vm13, %v802_v39, %v794_v50 }
 0x49b   : > { %963 = vrot.lane.b32.xlu0 %v932_v38, %s1331_s22  ;;  %938 = vrot.lane.b32.xlu2 %v937_v40, %s1328_s13  ;;  %s312_s13 = scalar_lea.vmem %s1657_s6, %s1392_s28 }
 0x49c   : > { %949 = vrot.lane.b32.xlu1 %v932_v38, %s1333_s24 }
 0x4a3   : > { %977 = vrot.lane.b32.xlu0 %v932_v38, %s1338_s30  ;;  %952 = vrot.lane.b32.xlu2 %v937_v40, %s1334_s25 }
 0x4a4   : > { %970 = vrot.lane.b32.xlu1 %v932_v38, %s1336_s27 }
 0x4ab   : > { %959 = vrot.lane.b32.xlu0 %v937_v40, %s1340_s8  ;;  %973 = vrot.lane.b32.xlu2 %v937_v40, %s1337_s29 }
 0x4ac   : > { %945 = vrot.lane.b32.xlu1 %v937_v40, %s1332_s23 }
 0x4b3   : > { %984 = vrot.lane.b32.xlu0 %v932_v38, %s1339_s7  ;;  %795 = vrot.lane.b32.xlu2 %v743_v8, %s1339_s7 }
 0x4b4   : > { %966 = vrot.lane.b32.xlu1 %v937_v40, %s1335_s26 }
 0x4bb   : > { %843 = vrot.lane.b32.xlu0 %v1462_v29, %s1345_s10 }
 0x4bc   : > { %980 = vrot.lane.b32.xlu1 %v937_v40, %s1341_s9 }
 0x4c3   : > { %1032 = vrot.lane.b32.xlu0 %v1462_v29, %s1343_s17 }
 0x4ed   : > { %651 = vadd.xlane.f32.xlu0 %v650_v42  ;;  %v957_v43 = vpop.permute.xlu2 %956 }
 0x4f5   : > { %v939_v44 = vpop.permute.xlu2 %938 }
 0x4fd   : > { %v953_v46 = vpop.permute.xlu2 %952 }
 0x505   : > { %v943_v47 = vpop.permute.xlu0 %942  ;;  %v974_v48 = vpop.permute.xlu2 %973 }
 0x506   : > { %v935_v49 = vpop.permute.xlu1 %934 }
 0x507   : > { %v941_v62 = vsel %vm356_vm1, %v935_v49, %v939_v44 }
 0x50d   : > { %v964_v51 = vpop.permute.xlu0 %963  ;;  %v796_v53 = vpop.permute.xlu2 %795 }
 0x50e   : > { %v950_v29 = vpop.permute.xlu1 %949  ;;  %v804_v55 = vsel %vm430_vm14, %v803_v52, %v796_v53 }
 0x50f   : > { %v832_v13 = vadd.f32 %v831_v54, %v804_v55  ;;  %v955_v12 = vsel %vm381_vm4, %v950_v29, %v953_v46 }
 0x511   : > { %v834_v56 = vsel %vm325_vm0, %v832_v13, -inf }
 0x512   : > { %835 = vmax.xlane.f32.xlu1 %v834_v56 }
 0x515   : > { %v978_v57 = vpop.permute.xlu0 %977 }
 0x516   : > { %v971_v58 = vpop.permute.xlu1 %970 }
 0x517   : > { %v976_v14 = vsel %vm405_vm10, %v971_v58, %v974_v48 }
 0x51d   : > { %v960_v59 = vpop.permute.xlu0 %959 }
 0x51e   : > { %v946_v60 = vpop.permute.xlu1 %945  ;;  %v962_v8 = vsel %vm389_vm6, %v957_v43, %v960_v59 }
 0x51f   : > { %v948_v61 = vsel %vm373_vm2, %v943_v47, %v946_v60 }
 0x520   : > { %v987_v63 = vsel %vm418_vm3, %v941_v62, %v948_v61 }
 0x521   : > { %v988_v6 = vsel %vm420_vm5, %v987_v63, %v955_v12 }
 0x522   : > { %v989_v9 = vsel %vm422_vm8, %v988_v6, %v962_v8 }
 0x525   : > { %v985_v3 = vpop.permute.xlu0 %984 }
 0x526   : > { %v967_v4 = vpop.permute.xlu1 %966 }
 0x527   : > { %v969_v7 = vsel %vm397_vm7, %v964_v51, %v967_v4 }
 0x528   : > { %v990_v1 = vsel %vm424_vm9, %v989_v9, %v969_v7 }
 0x529   : > { %v991_v17 = vsel %vm426_vm11, %v990_v1, %v976_v14 }
 0x52d   : > { %v844_v10 = vpop.permute.xlu0 %843 }
 0x52e   : > { %v981_v15 = vpop.permute.xlu1 %980  ;;  %864 = vmatpush.msra.mxu2 %v844_v10 }
 0x52f   : > { %v983_v16 = vsel %vm413_vm12, %v978_v57, %v981_v15 }
 0x530   : > { %v992_v18 = vsel %vm428_vm13, %v991_v17, %v983_v16 }
 0x531   : > { %v993_v20 = vsel %vm430_vm14, %v992_v18, %v985_v3 }
 0x532   : > { %v1021_v21 = vadd.f32 %v1020_v19, %v993_v20 }
 0x534   : > { %v1023_v22 = vsel %vm325_vm0, %v1021_v21, -inf }
 0x535   : > { %1024 = vmax.xlane.f32.xlu2 %v1023_v22  ;;  %v1033_v23 = vpop.permute.xlu0 %1032 }
 0x536   : > { %1053 = vmatpush.msra.mxu3 %v1033_v23 }
 0x560   : > { %v652_v30 = vpop.xlane.xlu0 %651 }
 0x561   : > { %v691_v5 = vand.u32 2147483648, %v652_v30  ;;  %vm685_vm1 = vweird.f32 %v652_v30  ;;  %v689_v41 = vand.u32 2147483647, %v652_v30 }
 0x563   : > { %v692_v43 = vor.u32 1.1754944e-38, %v691_v5  ;;  %vm690_vm3 = vcmp.eq.f32.partialorder %v689_v41, 8.507059e+37 }
 0x585   : > { %v836_v0 = vpop.xlane.xlu1 %835 }
 0x586   : > { %v837_v24 = vsub.f32 %v832_v13, %v836_v0 }
 0x588   : > { %v838_v25 = vmul.f32 1.442695, %v837_v24 }
 0x58a   : > { %1271 = vpow2.f32 %v838_v25 }
 0x58b   : > { %1273 = vrcp.f32 %v652_v30 }
 0x590   : > { %v1272_v26 = vpop.eup %1271 }
 0x591   : > { %1220 = vmatmul.msk.f32.vlgmr.msra.gmra.mxu2 %vm325_vm0, %v1272_v26  ;;  %v840_v2 = vsel %vm325_vm0, %v1272_v26, 0.0  ;;  %v1274_v33 = vpop.eup %1273 }
 0x592   : > { %841 = vadd.xlane.f32.xlu1 %v840_v2  ;;  %v681_v37 = vmul.f32 %v1274_v33, %v652_v30  ;;  %vm686_vm15 = vweird.f32 %v1274_v33 }
 0x593   : > { %vm687_vm2 = vmor %vm685_vm1, %vm686_vm15  ;;  %vm1087_vm1 = vcmask 130048  }
 0x594   : > { %v682_v38 = vsub.f32 1.0, %v681_v37 }
 0x596   : > { %v683_v39 = vmul.f32 %v1274_v33, %v682_v38 }
 0x598   : > { %v684_v40 = vadd.f32 %v1274_v33, %v683_v39 }
 0x59a   : > { %465 = vadd.xlane.f32.xlu1 %v464_v27  ;;  %v688_v42 = vsel %vm687_vm2, %v1274_v33, %v684_v40  ;;  %vm1089_vm2 = vcmask 195584  }
 0x59b   : > { %v693_v44 = vsel %vm690_vm3, %v692_v43, %v688_v42  ;;  %vm1091_vm3 = vcmask 261120  }
 0x59c   : > { %v695_v45 = vmul.f32 %v693_v44, %v1573_v11 }
 0x5a8   : > { %v1025_v28 = vpop.xlane.xlu2 %1024 }
 0x5a9   : > { %v1026_v31 = vsub.f32 %v1021_v21, %v1025_v28 }
 0x5ab   : > { %v1027_v32 = vmul.f32 1.442695, %v1026_v31 }
 0x5ad   : > { %1275 = vpow2.f32 %v1027_v32 }
 0x5b3   : > { %v1276_v35 = vpop.eup %1275 }
 0x5b4   : > { %1225 = vmatmul.msk.f32.vlgmr.msra.gmra.mxu3 %vm325_vm0, %v1276_v35  ;;  %v1029_v36 = vsel %vm325_vm0, %v1276_v35, 0.0 }
 0x5b5   : > { %1030 = vadd.xlane.f32.xlu2 %v1029_v36 }
 0x5cd   : > { %1075 = vrot.lane.b32.xlu2 %v695_v45, %s1327_s12 }
 0x605   : > { %v842_v46 = vpop.xlane.xlu1 %841 }
 0x606   : > { %1277 = vrcp.f32 %v842_v46  ;;  %v880_v50 = vand.u32 2147483648, %v842_v46  ;;  %v878_v52 = vand.u32 2147483647, %v842_v46  ;;  %vm874_vm5 = vweird.f32 %v842_v46 }
 0x608   : > { %v881_v54 = vor.u32 1.1754944e-38, %v880_v50  ;;  %vm879_vm7 = vcmp.eq.f32.partialorder %v878_v52, 8.507059e+37 }
 0x60c   : > { %v1278_v47 = vpop.eup %1277 }
 0x60d   : > { %v870_v48 = vmul.f32 %v1278_v47, %v842_v46  ;;  %vm875_vm4 = vweird.f32 %v1278_v47  ;;  %v466_v8 = vpop.xlane.xlu1 %465 }
 0x60e   : > { %vm876_vm6 = vmor %vm874_vm5, %vm875_vm4  ;;  %v501_v16 = vand.u32 2147483648, %v466_v8  ;;  %vm495_vm13 = vweird.f32 %v466_v8  ;;  %v499_v17 = vand.u32 2147483647, %v466_v8 }
 0x60f   : > { %v871_v49 = vsub.f32 1.0, %v870_v48 }
 0x610   : > { %v502_v19 = vor.u32 1.1754944e-38, %v501_v16  ;;  %vm500_vm15 = vcmp.eq.f32.partialorder %v499_v17, 8.507059e+37 }
 0x611   : > { %v872_v51 = vmul.f32 %v1278_v47, %v871_v49 }
 0x613   : > { %v873_v53 = vadd.f32 %v1278_v47, %v872_v51 }
 0x614   : > { %v866_v55 = vpop.f32.mrf.mxu2 }
 0x615   : > { %v877_v29 = vsel %vm876_vm6, %v1278_v47, %v873_v53 }
 0x616   : > { %v882_v13 = vsel %vm879_vm7, %v881_v54, %v877_v29 }
 0x617   : > { %v884_v11 = vmul.f32 %v882_v13, %v866_v55 }
 0x619   : > { %1079 = vrot.lane.b32.xlu1 %v884_v11, %s1342_s16 }
 0x628   : > { %v1031_v56 = vpop.xlane.xlu2 %1030 }
 0x629   : > { %1279 = vrcp.f32 %v1031_v56  ;;  %v1069_v60 = vand.u32 2147483648, %v1031_v56  ;;  %v1067_v62 = vand.u32 2147483647, %v1031_v56  ;;  %vm1063_vm9 = vweird.f32 %v1031_v56 }
 0x62a   : > { %1281 = vrcp.f32 %v466_v8 }
 0x62b   : > { %v1070_v3 = vor.u32 1.1754944e-38, %v1069_v60  ;;  %vm1068_vm11 = vcmp.eq.f32.partialorder %v1067_v62, 8.507059e+37 }
 0x62f   : > { %v1280_v57 = vpop.eup %1279 }
 0x630   : > { %v1059_v58 = vmul.f32 %v1280_v57, %v1031_v56  ;;  %vm1064_vm8 = vweird.f32 %v1280_v57  ;;  %v1282_v9 = vpop.eup %1281  ;;  %v1076_v21 = vpop.permute.xlu2 %1075 }
 0x631   : > { %vm1065_vm10 = vmor %vm1063_vm9, %vm1064_vm8  ;;  %v491_v1 = vmul.f32 %v1282_v9, %v466_v8  ;;  %vm496_vm12 = vweird.f32 %v1282_v9 }
 0x632   : > { %v1060_v59 = vsub.f32 1.0, %v1059_v58  ;;  %vm497_vm14 = vmor %vm495_vm13, %vm496_vm12 }
 0x633   : > { %v492_v10 = vsub.f32 1.0, %v491_v1 }
 0x634   : > { %v1061_v61 = vmul.f32 %v1280_v57, %v1060_v59 }
 0x635   : > { %v493_v14 = vmul.f32 %v1282_v9, %v492_v10 }
 0x636   : > { %v1062_v63 = vadd.f32 %v1280_v57, %v1061_v61 }
 0x637   : > { %v1055_v12 = vpop.f32.mrf.mxu3  ;;  %v494_v15 = vadd.f32 %v1282_v9, %v493_v14 }
 0x638   : > { %v1066_v4 = vsel %vm1065_vm10, %v1280_v57, %v1062_v63 }
 0x639   : > { %v1071_v6 = vsel %vm1068_vm11, %v1070_v3, %v1066_v4  ;;  %v498_v18 = vsel %vm497_vm14, %v1282_v9, %v494_v15 }
 0x63a   : > { %v1073_v7 = vmul.f32 %v1071_v6, %v1055_v12  ;;  %v503_v20 = vsel %vm500_vm15, %v502_v19, %v498_v18 }
 0x63b   : > { %v505_v22 = vmul.f32 %v503_v20, %v1524_v34 }
 0x63c   : > { %1083 = vrot.lane.b32.xlu0 %v1073_v7, %s1344_s18 }
 0x63d   : > { %v1086_v0 = vsel %vm325_vm0, %v505_v22, %v1076_v21 }
 0x68b   : > { %v1080_v23 = vpop.permute.xlu1 %1079 }
 0x68c   : > { %v1088_v24 = vsel %vm1087_vm1, %v1086_v0, %v1080_v23 }
 0x6ae   : > { %v1084_v25 = vpop.permute.xlu0 %1083 }
 0x6af   : > { %v1090_v26 = vsel %vm1089_vm2, %v1088_v24, %v1084_v25 }
 0x6b0   : > { %1092 = vst.msk [vmem:[%s312_s13] sm:$0xff] %vm1091_vm3, %v1090_v26 }
 0x6b1 PF: > { %s17_s21 = sadd.s32 1, %s1323_s21  }
 0x6b2   : > { %p14_p7 = scmp.ge.s32.totalorder %s17_s21, 4  }
 0x6b4   :  { %16 = sbr.rel (!%p14_p7) target bundleno = 1 (0x1), region = 88 }
 0x6b9   :  { %1112 = vsyncpa [#allocation3], 1 }
 0x6ba   :  { %1114 = vsyncpa [#allocation3 + $0x1], 1 }

// kernel: decoder_layer_forward.13
= control target key start
LH: loop header
LB: loop body
LE: loop exit
PB: predicated region body
PF: predicated region fallthrough
CT: control target
= control target key end

     0   :  { %s365_s15 = smov 0   ;;  %s400_s0 = inlined_call_operand.vmem [shape: f32[16,32], index: 0, kind: input, shape index: {}]   ;;  %s401_s1 = inlined_call_operand.vmem [shape: f32[16,32], index: 1, kind: input, shape index: {}]   ;;  %s402_s2 = inlined_call_operand.vmem [shape: f32[32,32], index: 2, kind: input, shape index: {}]   ;;  %s403_s3 = inlined_call_operand.vmem [shape: f32[1,32], index: 3, kind: input, shape index: {}]   ;;  %s404_s4 = inlined_call_operand.vmem [shape: f32[16,32], index: 4, kind: output, shape index: {}]  }
   0x1 LB: > { %s312_s16 = sadd.s32 4294967295, %s338_s15   ;;  %p316_p0 = scmp.ge.s32.totalorder %s338_s15, 1  ;;  %s338_s15 = sphi %s365_s15, %s14_s15  }
   0x2   : > { %p170_p1 = scmp.lt.s32.totalorder %s338_s15, 3 }
   0x4   : > { %p171_p2 = pnand %p316_p0, %p170_p1 }
   0x5   : > { %p198_p3 = scmp.lt.s32.totalorder (!%p171_p2), %s312_s16, 1 }
   0x6   : > { %174 = sbr.rel (%p171_p2) target bundleno = 150 (0x96), region = 36 }
   0xb   : > { %v216_v0 = vld [vmem:[%s402_s2 + $0x18] sm:$0xff]  ;;  %v215_v1 = vld [vmem:[%s402_s2 + $0x10] sm:$0xff]  ;;  %v214_v2 = vld [vmem:[%s402_s2 + $0x8] sm:$0xff]  ;;  %s406_s16 = smov (!%p198_p3, %s312_s16), 1  ;;  %vm221_vm0 = vcmask 261120  }
   0xc   : > { %237 = vmatpush.msra.mxu0 %v216_v0  ;;  %v213_v3 = vld [vmem:[%s402_s2] sm:$0xff]  ;;  %s317_s25 = sshll.u32 %s406_s16, 3 }
   0xd   : > { %s201_s28 = scalar_lea.vmem %s400_s0, %s317_s25  ;;  %s205_s5 = scalar_lea.vmem %s401_s1, %s317_s25  ;;  %v331_v7 = vld [vmem:[%s403_s3] ss:$0 sm:$0xff] }
   0xe   : > { %238 = vmatpush.msra.mxu0 %v215_v1  ;;  %v210_v4 = vld [vmem:[%s201_s28] sm:$0xff]  ;;  %s209_s10 = scalar_lea.vmem %s404_s4, %s317_s25 }
   0xf   : > { %v211_v5 = vld [vmem:[%s205_s5] sm:$0xff] }
  0x10   : > { %239 = vmatpush.msra.mxu0 %v214_v2  ;;  %v212_v6 = vadd.f32 %v211_v5, %v210_v4 }
  0x12   : > { %240 = vmatpush.msra.mxu0 %v213_v3 }
  0x13   : > { %320 = vmatmul.msk.f32.vlgmr.msra.gmra.mxu0 %vm221_vm0, %v212_v6 }
  0x90   : > { %v242_v8 = vpop.f32.mrf.mxu0 }
  0x91   : > { %v243_v9 = vadd.f32 %v331_v7, %v242_v8 }
  0x93   : > { %v245_v10 = vmul.f32 0.35355338, %v243_v9 }
  0x95   : > { %246 = vst.msk [vmem:[%s209_s10] sm:$0xff] %vm221_vm0, %v245_v10 }
  0x96 PF: > { %s14_s15 = sadd.s32 1, %s338_s15  }
  0x97   : > { %p11_p4 = scmp.ge.s32.totalorder %s14_s15, 4  }
  0x99   :  { %13 = sbr.rel (!%p11_p4) target bundleno = 1 (0x1), region = 69 }

// kernel: decoder_layer_forward.16
= control target key start
LH: loop header
LB: loop body
LE: loop exit
PB: predicated region body
PF: predicated region fallthrough
CT: control target
= control target key end

     0   :  { %s364_s15 = smov 0   ;;  %s399_s0 = inlined_call_operand.vmem [shape: f32[16,32], index: 0, kind: input, shape index: {}]   ;;  %s400_s1 = inlined_call_operand.vmem [shape: f32[32,32], index: 1, kind: input, shape index: {}]   ;;  %s401_s2 = inlined_call_operand.vmem [shape: f32[1,32], index: 2, kind: input, shape index: {}]   ;;  %s402_s3 = inlined_call_operand.vmem [shape: f32[16,32], index: 3, kind: input, shape index: {}]   ;;  %s403_s4 = inlined_call_operand.vmem [shape: f32[16,32], index: 4, kind: output, shape index: {}]  }
   0x1 LB: > { %s311_s16 = sadd.s32 4294967295, %s337_s15   ;;  %p315_p0 = scmp.ge.s32.totalorder %s337_s15, 1  ;;  %s337_s15 = sphi %s364_s15, %s14_s15  }
   0x2   : > { %p170_p1 = scmp.lt.s32.totalorder %s337_s15, 3 }
   0x4   : > { %p171_p2 = pnand %p315_p0, %p170_p1 }
   0x5   : > { %p198_p3 = scmp.lt.s32.totalorder (!%p171_p2), %s311_s16, 1 }
   0x6   : > { %174 = sbr.rel (%p171_p2) target bundleno = 150 (0x96), region = 36 }
   0xb   : > { %v214_v0 = vld [vmem:[%s400_s1 + $0x18] sm:$0xff]  ;;  %v213_v1 = vld [vmem:[%s400_s1 + $0x10] sm:$0xff]  ;;  %v212_v2 = vld [vmem:[%s400_s1 + $0x8] sm:$0xff]  ;;  %s405_s16 = smov (!%p198_p3, %s311_s16), 1  ;;  %vm219_vm0 = vcmask 261120  }
   0xc   : > { %235 = vmatpush.msra.mxu0 %v214_v0  ;;  %v211_v3 = vld [vmem:[%s400_s1] sm:$0xff]  ;;  %s316_s25 = sshll.u32 %s405_s16, 3 }
   0xd   : > { %s201_s28 = scalar_lea.vmem %s399_s0, %s316_s25  ;;  %s205_s5 = scalar_lea.vmem %s402_s3, %s316_s25  ;;  %v330_v5 = vld [vmem:[%s401_s2] ss:$0 sm:$0xff] }
   0xe   : > { %236 = vmatpush.msra.mxu0 %v213_v1  ;;  %v210_v4 = vld [vmem:[%s201_s28] sm:$0xff]  ;;  %s209_s10 = scalar_lea.vmem %s403_s4, %s316_s25 }
   0xf   : > { %v243_v7 = vld [vmem:[%s205_s5] sm:$0xff] }
  0x10   : > { %237 = vmatpush.msra.mxu0 %v212_v2 }
  0x12   : > { %238 = vmatpush.msra.mxu0 %v211_v3 }
  0x13   : > { %319 = vmatmul.msk.f32.vlgmr.msra.gmra.mxu0 %vm219_vm0, %v210_v4 }
  0x90   : > { %v240_v6 = vpop.f32.mrf.mxu0 }
  0x91   : > { %v241_v8 = vadd.f32 %v330_v5, %v240_v6 }
  0x93   : > { %v244_v9 = vadd.f32 %v243_v7, %v241_v8 }
  0x95   : > { %245 = vst.msk [vmem:[%s209_s10] sm:$0xff] %vm219_vm0, %v244_v9 }
  0x96 PF: > { %s14_s15 = sadd.s32 1, %s337_s15  }
  0x97   : > { %p11_p4 = scmp.ge.s32.totalorder %s14_s15, 4  }
  0x99   :  { %13 = sbr.rel (!%p11_p4) target bundleno = 1 (0x1), region = 69 }

// kernel: decoder_layer_forward.14
= control target key start
LH: loop header
LB: loop body
LE: loop exit
PB: predicated region body
PF: predicated region fallthrough
CT: control target
= control target key end

     0   :  { %s537_s24 = smov 0   ;;  %s594_s0 = inlined_call_operand.vmem [shape: f32[24,32], index: 0, kind: input, shape index: {}]   ;;  %s595_s1 = inlined_call_operand.vmem [shape: f32[24,32], index: 1, kind: input, shape index: {}]   ;;  %s596_s2 = inlined_call_operand.vmem [shape: f32[32,32], index: 2, kind: input, shape index: {}]   ;;  %s597_s3 = inlined_call_operand.vmem [shape: f32[1,32], index: 3, kind: input, shape index: {}]   ;;  %s598_s4 = inlined_call_operand.vmem [shape: f32[32,32], index: 4, kind: input, shape index: {}]   ;;  %s599_s5 = inlined_call_operand.vmem [shape: f32[1,32], index: 5, kind: input, shape index: {}]   ;;  %s600_s6 = inlined_call_operand.vmem [shape: f32[24,32], index: 6, kind: output, shape index: {0}]   ;;  %s601_s7 = inlined_call_operand.vmem [shape: f32[24,32], index: 7, kind: output, shape index: {1}]  }
   0x1 LB: > { %s466_s25 = sadd.s32 4294967295, %s495_s24   ;;  %p470_p0 = scmp.ge.s32.totalorder %s495_s24, 1  ;;  %s495_s24 = sphi %s537_s24, %s18_s24  }
   0x2   : > { %p248_p1 = scmp.lt.s32.totalorder %s495_s24, 4 }
   0x4   : > { %p249_p2 = pnand %p470_p0, %p248_p1 }
   0x5   : > { %p286_p3 = scmp.lt.s32.totalorder (!%p249_p2), %s466_s25, 2 }
   0x6   : > { %252 = sbr.rel (%p249_p2) target bundleno = 149 (0x95), region = 44 }
   0xb   : > { %v308_v0 = vld [vmem:[%s596_s2 + $0x18] sm:$0xff]  ;;  %v307_v2 = vld [vmem:[%s596_s2 + $0x10] sm:$0xff]  ;;  %v306_v4 = vld [vmem:[%s596_s2 + $0x8] sm:$0xff]  ;;  %s603_s25 = smov (!%p286_p3, %s466_s25), 2  ;;  %vm313_vm0 = vcmask 261120  }
   0xc   : > { %v341_v1 = vld [vmem:[%s598_s4 + $0x18] sm:$0xff]  ;;  %329 = vmatpush.msra.mxu0 %v308_v0  ;;  %v340_v3 = vld [vmem:[%s598_s4 + $0x10] sm:$0xff]  ;;  %v339_v5 = vld [vmem:[%s598_s4 + $0x8] sm:$0xff]  ;;  %s471_s19 = sshll.u32 %s603_s25, 3 }
   0xd   : > { %361 = vmatpush.msra.mxu1 %v341_v1  ;;  %v305_v6 = vld [vmem:[%s596_s2] sm:$0xff]  ;;  %s289_s22 = scalar_lea.vmem %s594_s0, %s471_s19  ;;  %s293_s27 = scalar_lea.vmem %s595_s1, %s471_s19 }
   0xe   : > { %330 = vmatpush.msra.mxu0 %v307_v2  ;;  %v338_v7 = vld [vmem:[%s598_s4] sm:$0xff]  ;;  %s301_s10 = scalar_lea.vmem %s601_s7, %s471_s19  ;;  %s297_s13 = scalar_lea.vmem %s600_s6, %s471_s19 }
   0xf   : > { %362 = vmatpush.msra.mxu1 %v340_v3  ;;  %v302_v8 = vld [vmem:[%s289_s22] sm:$0xff] }
  0x10   : > { %331 = vmatpush.msra.mxu0 %v306_v4  ;;  %v303_v9 = vld [vmem:[%s293_s27] sm:$0xff] }
  0x11   : > { %363 = vmatpush.msra.mxu1 %v339_v5  ;;  %v304_v10 = vadd.f32 %v303_v9, %v302_v8  ;;  %v488_v11 = vld [vmem:[%s599_s5] ss:$0 sm:$0xff] }
  0x12   : > { %332 = vmatpush.msra.mxu0 %v305_v6  ;;  %v487_v12 = vld [vmem:[%s597_s3] ss:$0 sm:$0xff] }
  0x13   : > { %364 = vmatpush.msra.mxu1 %v338_v7  ;;  %475 = vmatmul.msk.f32.vlgmr.msra.gmra.mxu0 %vm313_vm0, %v304_v10 }
  0x14   : > { %476 = vmatmul.msk.f32.vlgmr.msra.gmra.mxu1 %vm313_vm0, %v302_v8 }
  0x90   : > { %v334_v14 = vpop.f32.mrf.mxu0 }
  0x91   : > { %v366_v13 = vpop.f32.mrf.mxu1  ;;  %v335_v16 = vadd.f32 %v487_v12, %v334_v14 }
  0x92   : > { %v367_v15 = vadd.f32 %v488_v11, %v366_v13 }
  0x93   : > { %337 = vst.msk [vmem:[%s297_s13] sm:$0xff] %vm313_vm0, %v335_v16 }
  0x94   : > { %369 = vst.msk [vmem:[%s301_s10] sm:$0xff] %vm313_vm0, %v367_v15 }
  0x95 PF: > { %s18_s24 = sadd.s32 1, %s495_s24  }
  0x96   : > { %p15_p4 = scmp.ge.s32.totalorder %s18_s24, 5  }
  0x98   :  { %17 = sbr.rel (!%p15_p4) target bundleno = 1 (0x1), region = 89 }

// kernel: decoder_layer_forward.15
= control target key start
LH: loop header
LB: loop body
LE: loop exit
PB: predicated region body
PF: predicated region fallthrough
CT: control target
= control target key end

     0   :  { %s751_s12 = smov 0   ;;  %s829_s0 = inlined_call_operand.vmem [shape: f32[2,8,32], index: 0, kind: input, shape index: {}]   ;;  %s830_s1 = inlined_call_operand.vmem [shape: f32[2,12,32], index: 1, kind: input, shape index: {}]   ;;  %s831_s2 = inlined_call_operand.vmem [shape: f32[2,12,32], index: 2, kind: input, shape index: {}]   ;;  %s832_s3 = inlined_call_operand.vmem [shape: f32[2,8,32], index: 3, kind: output, shape index: {}]  }
   0x1 LB: > { %s652_s13 = sadd.s32 4294967295, %s723_s12   ;;  %p656_p0 = scmp.ge.s32.totalorder %s723_s12, 1  ;;  %s723_s12 = sphi %s751_s12, %s13_s12  }
   0x2   : > { %p156_p1 = scmp.lt.s32.totalorder %s723_s12, 3 }
   0x4   : > { %p157_p2 = pnand %p656_p0, %p156_p1 }
   0x5   : > { %p188_p3 = scmp.lt.s32.totalorder (!%p157_p2), %s652_s13, 1  ;;  %s725_s19 = smov (!%p157_p2), 120  }
   0x6   : > { %160 = sbr.rel (%p157_p2) target bundleno = 792 (0x318), region = 32  ;;  %s726_s23 = smov (!%p157_p2), 112  }
   0x7   : > { %s727_s24 = smov (!%p157_p2), 104   ;;  %s728_s28 = smov (!%p157_p2), 8  }
   0x8   : > { %s729_s29 = smov (!%p157_p2), 24   ;;  %s730_s30 = smov (!%p157_p2), 16  }
   0xb   : > { %s834_s13 = smov (!%p188_p3, %s652_s13), 1  ;;  %vm211_vm0 = vcmask 64512   ;;  %vm254_vm1 = vcmask 1043456   ;;  %vm241_vm2 = vcmask 97280  }
   0xc   : > { %s685_s14 = sshll.u32 %s834_s13, 4  ;;  %s657_s18 = sshll.u32 %s834_s13, 3 }
   0xd   : > { %s196_s17 = scalar_lea.vmem %s830_s1, %s685_s14  ;;  %s191_s22 = scalar_lea.vmem %s829_s0, %s657_s18 }
   0xe   : > { %v208_v0 = vld [vmem:[%s196_s17 + $0x8] sm:$0xf]  ;;  %v207_v1 = vld [vmem:[%s196_s17] sm:$0xff]  ;;  %s201_s27 = scalar_lea.vmem %s831_s2, %s685_s14  ;;  %s205_s6 = scalar_lea.vmem %s832_s3, %s657_s18 }
   0xf   : > { %663 = vmatpush.xpose.msk.msra.mxu0 %vm211_vm0, %v208_v0  ;;  %296 = vrot.lane.b32.xlu1 %v207_v1, %s725_s19  ;;  %v206_v2 = vld [vmem:[%s191_s22] sm:$0xff]  ;;  %v210_v5 = vld [vmem:[%s201_s27 + $0x8] sm:$0xf] }
  0x10   : > { %298 = vrot.lane.b32.xlu0 %v208_v0, %s725_s19  ;;  %386 = vrot.lane.b32.xlu2 %v208_v0, %s726_s23  ;;  %v209_v11 = vld [vmem:[%s201_s27] sm:$0xff] }
  0x11   : > { %666 = vmatpush.msk.msra.mxu1 %vm254_vm1, %v210_v5 }
  0x13   : > { %664 = vmatpush.xpose.msk.msra.mxu0 %vm211_vm0, %v207_v1  ;;  %273 = vmatpush.msra.mxu1 %v209_v11 }
  0x16   : > { %665 = vmatmul.msk.f32.vlgmr.msra.gmra.mxu0 %vm211_vm0, %v206_v2 }
  0x17   : > { %294 = vrot.lane.b32.xlu1 %v206_v2, %s725_s19 }
  0x18   : > { %473 = vrot.lane.b32.xlu2 %v208_v0, %s727_s24 }
  0x1f   : > { %384 = vrot.lane.b32.xlu1 %v207_v1, %s726_s23 }
  0x20   : > { %471 = vrot.lane.b32.xlu2 %v207_v1, %s727_s24 }
  0x27   : > { %382 = vrot.lane.b32.xlu1 %v206_v2, %s726_s23 }
  0x28   : > { %469 = vrot.lane.b32.xlu2 %v206_v2, %s727_s24 }
  0x2f   : > { %425 = vrot.lane.b32.xlu1 %v210_v5, %s726_s23 }
  0x30   : > { %336 = vrot.lane.b32.xlu2 %v209_v11, %s725_s19 }
  0x38   : > { %512 = vrot.lane.b32.xlu2 %v210_v5, %s727_s24 }
  0x6a   : > { %v387_v3 = vpop.permute.xlu2 %386 }
  0x6b   : > { %673 = vmatpush.xpose.msk.msrb.mxu1 %vm211_vm0, %v387_v3 }
  0x72   : > { %v474_v4 = vpop.permute.xlu2 %473 }
  0x73   : > { %678 = vmatpush.xpose.msk.msrb.mxu0 %vm211_vm0, %v474_v4 }
  0x7a   : > { %v472_v6 = vpop.permute.xlu2 %471 }
  0x7b   : > { %679 = vmatpush.xpose.msk.msrb.mxu0 %vm211_vm0, %v472_v6 }
  0x81   : > { %v297_v7 = vpop.permute.xlu1 %296 }
  0x82   : > { %v299_v8 = vpop.permute.xlu0 %298  ;;  %v470_v9 = vpop.permute.xlu2 %469 }
  0x83   : > { %668 = vmatpush.xpose.msk.msra.mxu2 %vm211_vm0, %v299_v8  ;;  %680 = vmatmul.msk.f32.vlgmr.msrb.gmra.mxu0 %vm211_vm0, %v470_v9 }
  0x87   : > { %669 = vmatpush.xpose.msk.msra.mxu2 %vm211_vm0, %v297_v7 }
  0x89   : > { %v295_v10 = vpop.permute.xlu1 %294 }
  0x8a   : > { %670 = vmatmul.msk.f32.vlgmr.msra.gmra.mxu2 %vm211_vm0, %v295_v10  ;;  %v337_v25 = vpop.permute.xlu2 %336 }
  0x91   : > { %v385_v14 = vpop.permute.xlu1 %384 }
  0x92   : > { %674 = vmatpush.xpose.msk.msrb.mxu1 %vm211_vm0, %v385_v14  ;;  %v513_v33 = vpop.permute.xlu2 %512 }
  0x93   : > { %v238_v12 = vpop.f32.mrf.mxu0  ;;  %681 = vmatpush.msk.msrb.mxu2 %vm254_vm1, %v513_v33 }
  0x94   : > { %v242_v13 = vsel %vm241_vm2, %v238_v12, -inf }
  0x95   : > { %243 = vmax.xlane.f32.xlu0 %v242_v13 }
  0x99   : > { %v383_v23 = vpop.permute.xlu1 %382 }
  0xa1   : > { %v426_v26 = vpop.permute.xlu1 %425 }
  0xa9   : > { %338 = vrot.lane.b32.xlu0 %v210_v5, %s725_s19 }
 0x100   : > { %v498_v15 = vpop.f32.mrf.mxu0 }
 0x101   : > { %v501_v16 = vsel %vm241_vm2, %v498_v15, -inf }
 0x102   : > { %502 = vmax.xlane.f32.xlu0 %v501_v16 }
 0x108   : > { %v244_v17 = vpop.xlane.xlu0 %243 }
 0x109   : > { %v245_v18 = vsub.f32 %v238_v12, %v244_v17 }
 0x10b   : > { %v246_v19 = vmul.f32 1.442695, %v245_v18 }
 0x10d   : > { %701 = vpow2.f32 %v246_v19  ;;  %v323_v20 = vpop.f32.mrf.mxu2 }
 0x10e   : > { %v326_v21 = vsel %vm241_vm2, %v323_v20, -inf }
 0x10f   : > { %327 = vmax.xlane.f32.xlu1 %v326_v21 }
 0x113   : > { %v702_v22 = vpop.eup %701 }
 0x114   : > { %667 = vmatmul.msk.f32.vlgmr.msra.gmra.mxu1 %vm241_vm2, %v702_v22  ;;  %v248_v51 = vsel %vm241_vm2, %v702_v22, 0.0 }
 0x11b   : > { %v339_v24 = vpop.permute.xlu0 %338 }
 0x11c   : > { %675 = vmatmul.msk.f32.vlgmr.msrb.gmra.mxu1 %vm211_vm0, %v383_v23  ;;  %671 = vmatpush.msk.msra.mxu3 %vm254_vm1, %v339_v24 }
 0x11e   : > { %361 = vmatpush.msra.mxu3 %v337_v25 }
 0x120   : > { %676 = vmatpush.msk.msrb.mxu3 %vm254_vm1, %v426_v26 }
 0x128   : > { %423 = vrot.lane.b32.xlu1 %v209_v11, %s726_s23 }
 0x175   : > { %v503_v37 = vpop.xlane.xlu0 %502 }
 0x176   : > { %v504_v38 = vsub.f32 %v498_v15, %v503_v37 }
 0x178   : > { %v505_v39 = vmul.f32 1.442695, %v504_v38 }
 0x182   : > { %v328_v27 = vpop.xlane.xlu1 %327 }
 0x183   : > { %v329_v28 = vsub.f32 %v323_v20, %v328_v27 }
 0x185   : > { %v330_v29 = vmul.f32 1.442695, %v329_v28 }
 0x187   : > { %703 = vpow2.f32 %v330_v29 }
 0x188   : > { %705 = vpow2.f32 %v505_v39 }
 0x18d   : > { %v704_v30 = vpop.eup %703 }
 0x18e   : > { %v332_v31 = vsel %vm241_vm2, %v704_v30, 0.0  ;;  %672 = vmatmul.msk.f32.vlgmr.msra.gmra.mxu3 %vm241_vm2, %v704_v30  ;;  %v706_v40 = vpop.eup %705 }
 0x18f   : > { %333 = vadd.xlane.f32.xlu1 %v332_v31  ;;  %v507_v41 = vsel %vm241_vm2, %v706_v40, 0.0 }
 0x191   : > { %v809_v32 = vpop.f32.mrf.mxu1 }
 0x199   : > { %v411_v34 = vpop.f32.mrf.mxu1 }
 0x19a   : > { %v414_v35 = vsel %vm241_vm2, %v411_v34, -inf  ;;  %v424_v36 = vpop.permute.xlu1 %423 }
 0x19b   : > { %415 = vmax.xlane.f32.xlu2 %v414_v35  ;;  %448 = vmatpush.msrb.mxu3 %v424_v36 }
 0x1b3   : > { %510 = vrot.lane.b32.xlu2 %v209_v11, %s727_s24 }
 0x1dc   : > { %508 = vadd.xlane.f32.xlu2 %v507_v41 }
 0x202   : > { %v334_v45 = vpop.xlane.xlu1 %333 }
 0x203   : > { %v377_v54 = vand.u32 2147483648, %v334_v45  ;;  %vm371_vm3 = vweird.f32 %v334_v45  ;;  %v375_v56 = vand.u32 2147483647, %v334_v45 }
 0x205   : > { %v378_v57 = vor.u32 1.1754944e-38, %v377_v54  ;;  %vm376_vm6 = vcmp.eq.f32.partialorder %v375_v56, 8.507059e+37 }
 0x20e   : > { %v416_v42 = vpop.xlane.xlu2 %415 }
 0x20f   : > { %v417_v43 = vsub.f32 %v411_v34, %v416_v42 }
 0x211   : > { %v418_v44 = vmul.f32 1.442695, %v417_v43  ;;  %v363_v59 = vpop.f32.mrf.mxu3 }
 0x213   : > { %707 = vpow2.f32 %v418_v44 }
 0x214   : > { %709 = vrcp.f32 %v334_v45 }
 0x216   : > { %v511_v46 = vpop.permute.xlu2 %510 }
 0x217   : > { %535 = vmatpush.msrb.mxu2 %v511_v46 }
 0x218   : > { %682 = vmatmul.msk.f32.vlgmr.msrb.gmra.mxu2 %vm241_vm2, %v706_v40 }
 0x219   : > { %v708_v47 = vpop.eup %707 }
 0x21a   : > { %677 = vmatmul.msk.f32.vlgmr.msrb.gmra.mxu3 %vm241_vm2, %v708_v47  ;;  %v420_v48 = vsel %vm241_vm2, %v708_v47, 0.0  ;;  %v710_v49 = vpop.eup %709 }
 0x21b   : > { %421 = vadd.xlane.f32.xlu0 %v420_v48  ;;  %v367_v50 = vmul.f32 %v710_v49, %v334_v45  ;;  %vm372_vm4 = vweird.f32 %v710_v49 }
 0x21c   : > { %vm373_vm5 = vmor %vm371_vm3, %vm372_vm4  ;;  %vm569_vm4 = vcmask 130048  }
 0x21d   : > { %v368_v52 = vsub.f32 1.0, %v367_v50 }
 0x21f   : > { %v369_v53 = vmul.f32 %v710_v49, %v368_v52 }
 0x221   : > { %v370_v55 = vadd.f32 %v710_v49, %v369_v53 }
 0x223   : > { %249 = vadd.xlane.f32.xlu0 %v248_v51  ;;  %v374_v58 = vsel %vm373_vm5, %v710_v49, %v370_v55  ;;  %vm571_vm5 = vcmask 195584  }
 0x224   : > { %v379_v60 = vsel %vm376_vm6, %v378_v57, %v374_v58  ;;  %vm573_vm6 = vcmask 261120  }
 0x225   : > { %v381_v61 = vmul.f32 %v379_v60, %v363_v59 }
 0x237   : > { %557 = vrot.lane.b32.xlu0 %v381_v61, %s728_s28 }
 0x24f   : > { %v509_v62 = vpop.xlane.xlu2 %508 }
 0x250   : > { %711 = vrcp.f32 %v509_v62  ;;  %v551_v6 = vand.u32 2147483648, %v509_v62  ;;  %vm545_vm8 = vweird.f32 %v509_v62  ;;  %v549_v8 = vand.u32 2147483647, %v509_v62 }
 0x252   : > { %v552_v11 = vor.u32 1.1754944e-38, %v551_v6  ;;  %vm550_vm10 = vcmp.eq.f32.partialorder %v549_v8, 8.507059e+37 }
 0x256   : > { %v712_v63 = vpop.eup %711 }
 0x257   : > { %v541_v0 = vmul.f32 %v712_v63, %v509_v62  ;;  %vm546_vm7 = vweird.f32 %v712_v63 }
 0x258   : > { %vm547_vm9 = vmor %vm545_vm8, %vm546_vm7 }
 0x259   : > { %v542_v1 = vsub.f32 1.0, %v541_v0 }
 0x25b   : > { %v543_v3 = vmul.f32 %v712_v63, %v542_v1 }
 0x25d   : > { %v544_v4 = vadd.f32 %v712_v63, %v543_v3 }
 0x25f   : > { %v548_v10 = vsel %vm547_vm9, %v712_v63, %v544_v4 }
 0x260   : > { %v553_v16 = vsel %vm550_vm10, %v552_v11, %v548_v10 }
 0x28e   : > { %v422_v2 = vpop.xlane.xlu0 %421 }
 0x28f   : > { %713 = vrcp.f32 %v422_v2  ;;  %v464_v12 = vand.u32 2147483648, %v422_v2  ;;  %v462_v14 = vand.u32 2147483647, %v422_v2  ;;  %vm458_vm12 = vweird.f32 %v422_v2 }
 0x291   : > { %v465_v19 = vor.u32 1.1754944e-38, %v464_v12  ;;  %vm463_vm14 = vcmp.eq.f32.partialorder %v462_v14, 8.507059e+37 }
 0x295   : > { %v714_v5 = vpop.eup %713 }
 0x296   : > { %v454_v7 = vmul.f32 %v714_v5, %v422_v2  ;;  %vm459_vm11 = vweird.f32 %v714_v5  ;;  %v250_v24 = vpop.xlane.xlu0 %249 }
 0x297   : > { %vm460_vm13 = vmor %vm458_vm12, %vm459_vm11  ;;  %715 = vrcp.f32 %v250_v24  ;;  %v289_v30 = vand.u32 2147483648, %v250_v24  ;;  %vm283_vm1 = vweird.f32 %v250_v24  ;;  %v287_v31 = vand.u32 2147483647, %v250_v24 }
 0x298   : > { %v455_v9 = vsub.f32 1.0, %v454_v7 }
 0x299   : > { %v290_v34 = vor.u32 1.1754944e-38, %v289_v30  ;;  %vm288_vm3 = vcmp.eq.f32.partialorder %v287_v31, 8.507059e+37 }
 0x29a   : > { %v456_v13 = vmul.f32 %v714_v5, %v455_v9 }
 0x29b   : > { %v537_v15 = vpop.f32.mrf.mxu2 }
 0x29c   : > { %v555_v17 = vmul.f32 %v553_v16, %v537_v15  ;;  %v457_v18 = vadd.f32 %v714_v5, %v456_v13 }
 0x29d   : > { %v450_v21 = vpop.f32.mrf.mxu3  ;;  %v716_v25 = vpop.eup %715 }
 0x29e   : > { %v461_v20 = vsel %vm460_vm13, %v714_v5, %v457_v18  ;;  %565 = vrot.lane.b32.xlu1 %v555_v17, %s729_s29  ;;  %v279_v26 = vmul.f32 %v716_v25, %v250_v24  ;;  %vm284_vm15 = vweird.f32 %v716_v25 }
 0x29f   : > { %v466_v22 = vsel %vm463_vm14, %v465_v19, %v461_v20  ;;  %vm285_vm2 = vmor %vm283_vm1, %vm284_vm15 }
 0x2a0   : > { %v468_v23 = vmul.f32 %v466_v22, %v450_v21  ;;  %v280_v27 = vsub.f32 1.0, %v279_v26 }
 0x2a2   : > { %561 = vrot.lane.b32.xlu0 %v468_v23, %s730_s30  ;;  %v281_v28 = vmul.f32 %v716_v25, %v280_v27 }
 0x2a4   : > { %v282_v29 = vadd.f32 %v716_v25, %v281_v28 }
 0x2a6   : > { %v286_v33 = vsel %vm285_vm2, %v716_v25, %v282_v29 }
 0x2a7   : > { %v291_v36 = vsel %vm288_vm3, %v290_v34, %v286_v33 }
 0x2a8   : > { %v293_v37 = vmul.f32 %v291_v36, %v809_v32 }
 0x2a9   : > { %v558_v35 = vpop.permute.xlu0 %557 }
 0x2aa   : > { %v568_v38 = vsel %vm211_vm0, %v293_v37, %v558_v35 }
 0x310   : > { %v566_v40 = vpop.permute.xlu1 %565 }
 0x314   : > { %v562_v39 = vpop.permute.xlu0 %561 }
 0x315   : > { %v570_v41 = vsel %vm569_vm4, %v568_v38, %v562_v39 }
 0x316   : > { %v572_v42 = vsel %vm571_vm5, %v570_v41, %v566_v40 }
 0x317   : > { %574 = vst.msk [vmem:[%s205_s6] sm:$0xff] %vm573_vm6, %v572_v42 }
 0x318 PF: > { %s13_s12 = sadd.s32 1, %s723_s12  }
 0x319   : > { %p10_p4 = scmp.ge.s32.totalorder %s13_s12, 4  }
 0x31b   :  { %12 = sbr.rel (!%p10_p4) target bundleno = 1 (0x1), region = 68 }

// kernel: decoder_layer_forward.17
= control target key start
LH: loop header
LB: loop body
LE: loop exit
PB: predicated region body
PF: predicated region fallthrough
CT: control target
= control target key end

     0   :  { %s515_s24 = smov 0   ;;  %s591_s0 = inlined_call_operand.vmem [shape: f32[16,32], index: 0, kind: input, shape index: {}]   ;;  %s592_s1 = inlined_call_operand.vmem [shape: f32[32,64], index: 1, kind: input, shape index: {}]   ;;  %s593_s2 = inlined_call_operand.vmem [shape: f32[1,64], index: 2, kind: input, shape index: {}]   ;;  %s594_s3 = inlined_call_operand.vmem [shape: f32[64,32], index: 3, kind: input, shape index: {}]   ;;  %s595_s4 = inlined_call_operand.vmem [shape: f32[1,32], index: 4, kind: input, shape index: {}]   ;;  %s596_s5 = inlined_call_operand.vmem [shape: f32[1,32], index: 5, kind: input, shape index: {}]   ;;  %s597_s6 = inlined_call_operand.vmem [shape: f32[1,32], index: 6, kind: input, shape index: {}]   ;;  %s598_s7 = inlined_call_operand.vmem [shape: f32[16,32], index: 7, kind: output, shape index: {}]  }
   0x1 LB: > { %s438_s25 = sadd.s32 4294967295, %s472_s24   ;;  %p442_p0 = scmp.ge.s32.totalorder %s472_s24, 1  ;;  %s472_s24 = sphi %s515_s24, %s17_s24  }
   0x2   : > { %p236_p1 = scmp.lt.s32.totalorder %s472_s24, 3 }
   0x4   : > { %p237_p2 = pnand %p442_p0, %p236_p1 }
   0x5   : > { %p266_p3 = scmp.lt.s32.totalorder (!%p237_p2), %s438_s25, 1 }
   0x6   : > { %240 = sbr.rel (%p237_p2) target bundleno = 548 (0x224), region = 48 }
   0xb   : > { %v278_v0 = vld [vmem:[%s592_s1 + $0x18] sm:$0xff]  ;;  %v277_v1 = vld [vmem:[%s592_s1 + $0x10] sm:$0xff]  ;;  %v276_v4 = vld [vmem:[%s592_s1 + $0x8] sm:$0xff]  ;;  %s600_s25 = smov (!%p266_p3, %s438_s25), 1  ;;  %vm283_vm0 = vcmask 261120   ;;  %vm320_vm1 = vcmask 523264  }
   0xc   : > { %299 = vmatpush.msra.mxu0 %v278_v0  ;;  %v315_v2 = vld [vmem:[%s594_s3 + $0x38] sm:$0xff]  ;;  %v314_v3 = vld [vmem:[%s594_s3 + $0x30] sm:$0xff]  ;;  %v313_v5 = vld [vmem:[%s594_s3 + $0x28] sm:$0xff]  ;;  %s443_s17 = sshll.u32 %s600_s25, 3  ;;  %v474_v22 = vmov 32.0  }
   0xd   : > { %332 = vmatpush.msra.mxu1 %v315_v2  ;;  %v275_v6 = vld [vmem:[%s592_s1] sm:$0xff]  ;;  %s269_s20 = scalar_lea.vmem %s591_s0, %s443_s17  ;;  %v311_v9 = vld [vmem:[%s594_s3 + $0x18] sm:$0xff]  ;;  %v310_v10 = vld [vmem:[%s594_s3 + $0x10] sm:$0xff]  ;;  %462 = vrcp.f32 %v474_v22  ;;  %s273_s21 = scalar_lea.vmem %s598_s7, %s443_s17 }
   0xe   : > { %300 = vmatpush.msra.mxu0 %v277_v1  ;;  %v312_v7 = vld [vmem:[%s594_s3 + $0x20] sm:$0xff]  ;;  %v309_v11 = vld [vmem:[%s594_s3 + $0x8] sm:$0xff] }
   0xf   : > { %333 = vmatpush.msra.mxu1 %v314_v3  ;;  %v274_v8 = vld [vmem:[%s269_s20] sm:$0xff] }
  0x10   : > { %301 = vmatpush.msra.mxu0 %v276_v4  ;;  %v308_v12 = vld [vmem:[%s594_s3] sm:$0xff] }
  0x11   : > { %334 = vmatpush.msra.mxu1 %v313_v5  ;;  %v458_v13 = vld [vmem:[%s593_s2] ss:$0 sm:$0xff] }
  0x12   : > { %302 = vmatpush.msra.mxu0 %v275_v6  ;;  %v459_v17 = vld [vmem:[%s595_s4] ss:$0 sm:$0xff] }
  0x13   : > { %445 = vmatmul.msk.f32.vlgmr.msra.gmra.mxu0 %vm283_vm0, %v274_v8  ;;  %335 = vmatpush.msra.mxu1 %v312_v7  ;;  %v463_v23 = vpop.eup %462  ;;  %v460_v43 = vld [vmem:[%s596_s5] ss:$0 sm:$0xff] }
  0x14   : > { %v351_v24 = vmul.f32 32.0, %v463_v23  ;;  %vm355_vm2 = vweird.f32 %v463_v23  ;;  %v461_v45 = vld [vmem:[%s597_s6] ss:$0 sm:$0xff] }
  0x15   : > { %336 = vmatpush.msra.mxu1 %v311_v9 }
  0x16   : > { %v352_v25 = vsub.f32 1.0, %v351_v24 }
  0x17   : > { %337 = vmatpush.msra.mxu1 %v310_v10 }
  0x18   : > { %v353_v26 = vmul.f32 %v463_v23, %v352_v25 }
  0x19   : > { %338 = vmatpush.msra.mxu1 %v309_v11 }
  0x1a   : > { %v354_v27 = vadd.f32 %v463_v23, %v353_v26 }
  0x1b   : > { %339 = vmatpush.msra.mxu1 %v308_v12 }
  0x1c   : > { %v356_v28 = vsel %vm355_vm2, %v463_v23, %v354_v27 }
  0x90   : > { %v304_v14 = vpop.f32.mrf.mxu0 }
  0x91   : > { %v305_v15 = vadd.f32 %v458_v13, %v304_v14 }
  0x93   : > { %v307_v16 = vmax.f32 %v305_v15, 0.0 }
  0x95   : > { %446 = vmatmul.msk.f32.vlgmr.msra.gmra.mxu1 %vm320_vm1, %v307_v16 }
 0x112   : > { %v341_v18 = vpop.f32.mrf.mxu1 }
 0x113   : > { %v342_v19 = vadd.f32 %v459_v17, %v341_v18 }
 0x115   : > { %v344_v20 = vadd.f32 %v342_v19, %v274_v8 }
 0x117   : > { %v347_v21 = vsel %vm283_vm0, %v344_v20, 0.0 }
 0x118   : > { %348 = vadd.xlane.f32.xlu0 %v347_v21 }
 0x18b   : > { %v349_v29 = vpop.xlane.xlu0 %348 }
 0x18c   : > { %v357_v30 = vmul.f32 %v356_v28, %v349_v29 }
 0x18e   : > { %v358_v31 = vsub.f32 %v344_v20, %v357_v30 }
 0x190   : > { %v359_v32 = vmul.f32 %v358_v31, %v358_v31 }
 0x192   : > { %v360_v33 = vsel %vm283_vm0, %v359_v32, 0.0 }
 0x193   : > { %361 = vadd.xlane.f32.xlu0 %v360_v33 }
 0x206   : > { %v362_v34 = vpop.xlane.xlu0 %361 }
 0x207   : > { %v363_v35 = vmul.f32 %v362_v34, %v356_v28 }
 0x209   : > { %v364_v36 = vadd.f32 1e-05, %v363_v35 }
 0x20b   : > { %464 = vrsqrt.f32 %v364_v36  ;;  %vm371_vm4 = vweird.f32 %v364_v36 }
 0x211   : > { %v465_v37 = vpop.eup %464 }
 0x212   : > { %v366_v38 = vmul.f32 %v465_v37, %v364_v36  ;;  %vm372_vm3 = vweird.f32 %v465_v37 }
 0x213   : > { %vm373_vm5 = vmor %vm371_vm4, %vm372_vm3 }
 0x214   : > { %v367_v39 = vmul.f32 %v465_v37, %v366_v38 }
 0x216   : > { %v368_v40 = vmul.f32 0.5, %v367_v39 }
 0x218   : > { %v369_v41 = vsub.f32 1.5, %v368_v40 }
 0x21a   : > { %v370_v42 = vmul.f32 %v465_v37, %v369_v41 }
 0x21c   : > { %v374_v44 = vsel %vm373_vm5, %v465_v37, %v370_v42 }
 0x21d   : > { %v375_v46 = vmul.f32 %v374_v44, %v358_v31 }
 0x21f   : > { %v379_v47 = vmul.f32 %v460_v43, %v375_v46 }
 0x221   : > { %v383_v48 = vadd.f32 %v461_v45, %v379_v47 }
 0x223   : > { %384 = vst.msk [vmem:[%s273_s21] sm:$0xff] %vm283_vm0, %v383_v48 }
 0x224 PF: > { %s17_s24 = sadd.s32 1, %s472_s24  }
 0x225   : > { %p14_p4 = scmp.ge.s32.totalorder %s17_s24, 4  }
 0x227   :  { %16 = sbr.rel (!%p14_p4) target bundleno = 1 (0x1), region = 78 }

</bundles_post_ra>
